<compile_context>
chip_gen: v7x
topology: tpu7x:2x2x1
jax: 0.10.0
libtpu: 0.0.40
codegen_flags: <defaults>
</compile_context>

<pallas_src>
import jax
import jax.numpy as jnp
from jax import lax
from jax.experimental import pallas as pl
from jax.experimental.pallas import tpu as pltpu

NUM_CLASSES = 10
L0 = 32                    # 32 -> pool4 -> 8 -> pool4 -> 2 ; 32*2 = 64 = Linear in-features
C1, C2 = 16, 32
BN_EPS = 1e-5


# ----------------------------- kernel ---------------------------------------

def _elu(v):
    # exp only evaluated on the (clamped) negative branch to avoid transient inf.
    return jnp.where(v > 0, v, jnp.exp(jnp.minimum(v, 0.0)) - 1.0)


def eegnet_kernel(x_ref, w1_ref, w2_ref, w23_ref, wc_ref, b_ref, o_ref):
    bvec = b_ref[...]                                              # (4, 1024)
    # firstconv + BN + ELU   : (TB, 32) @ (32, 512)
    h = _elu(jnp.dot(x_ref[...], w1_ref[...],
                     preferred_element_type=jnp.float32) + bvec[0:1, :L0 * C1])
    # depthwiseConv + BN + ELU : (TB, 512) @ (512, 1024)
    h = _elu(jnp.dot(h, w2_ref[...],
                     preferred_element_type=jnp.float32) + bvec[1:2, :])
    # AvgPool(4) folded into separableConv + BN + ELU : (TB, 1024) @ (1024, 256)
    h = _elu(jnp.dot(h, w23_ref[...],
                     preferred_element_type=jnp.float32) + bvec[2:3, :(L0 // 4) * C2])
    # AvgPool(4) + flatten folded into classifier : (TB, 256) @ (256, 10)
    o_ref[...] = (jnp.dot(h, wc_ref[...], preferred_element_type=jnp.float32)
                  + bvec[3:4, :NUM_CLASSES])


# ----------------------------- parameter setup (glue) -----------------------

def init_params(key):
    ks = jax.random.split(key, 24)
    p = {}
    # firstconv
    p["w1"] = 0.3 * jax.random.normal(ks[0], (16, 1, 3), jnp.float32)
    p["b1"] = 0.1 * jax.random.normal(ks[1], (16,), jnp.float32)
    p["g1"] = 1.0 + 0.1 * jax.random.normal(ks[2], (16,), jnp.float32)
    p["be1"] = 0.1 * jax.random.normal(ks[3], (16,), jnp.float32)
    p["m1"] = 0.1 * jax.random.normal(ks[4], (16,), jnp.float32)
    p["v1"] = 1.0 + 0.1 * jax.random.uniform(ks[5], (16,), jnp.float32)
    # depthwiseConv (groups=16, weight (32, 1, 3))
    p["w2"] = 0.3 * jax.random.normal(ks[6], (32, 1, 3), jnp.float32)
    p["b2"] = 0.1 * jax.random.normal(ks[7], (32,), jnp.float32)
    p["g2"] = 1.0 + 0.1 * jax.random.normal(ks[8], (32,), jnp.float32)
    p["be2"] = 0.1 * jax.random.normal(ks[9], (32,), jnp.float32)
    p["m2"] = 0.1 * jax.random.normal(ks[10], (32,), jnp.float32)
    p["v2"] = 1.0 + 0.1 * jax.random.uniform(ks[11], (32,), jnp.float32)
    # separableConv
    p["w3"] = 0.2 * jax.random.normal(ks[12], (32, 32, 3), jnp.float32)
    p["b3"] = 0.1 * jax.random.normal(ks[13], (32,), jnp.float32)
    p["g3"] = 1.0 + 0.1 * jax.random.normal(ks[14], (32,), jnp.float32)
    p["be3"] = 0.1 * jax.random.normal(ks[15], (32,), jnp.float32)
    p["m3"] = 0.1 * jax.random.normal(ks[16], (32,), jnp.float32)
    p["v3"] = 1.0 + 0.1 * jax.random.uniform(ks[17], (32,), jnp.float32)
    # classify
    p["wl"] = 0.2 * jax.random.normal(ks[18], (NUM_CLASSES, 64), jnp.float32)
    p["bl"] = 0.1 * jax.random.normal(ks[19], (NUM_CLASSES,), jnp.float32)
    return p


def _fold_bn(bias, gamma, beta, mean, var):
    s = gamma / jnp.sqrt(var + BN_EPS)
    t = beta + (bias - mean) * s
    return s, t


def make_kernel_params(p):
    f32 = jnp.float32
    s1, t1 = _fold_bn(p["b1"], p["g1"], p["be1"], p["m1"], p["v1"])   # (16,)
    s2, t2 = _fold_bn(p["b2"], p["g2"], p["be2"], p["m2"], p["v2"])   # (32,)
    s3, t3 = _fold_bn(p["b3"], p["g3"], p["be3"], p["m3"], p["v3"])   # (32,)

    # Banded tap selectors: conv 'same' (k=3, pad=1) along the time axis.
    t_idx = jnp.arange(L0)
    k_t = t_idx[:, None] - t_idx[None, :] + 1                # [t_src, t_dst] -> tap
    valid_t = (k_t >= 0) & (k_t <= 2)
    k_t = jnp.clip(k_t, 0, 2)
    j_idx = jnp.arange(L0 // 4)
    k_j = j_idx[:, None] - j_idx[None, :] + 1
    valid_j = (k_j >= 0) & (k_j <= 2)
    k_j = jnp.clip(k_j, 0, 2)

    # firstconv: Conv1d(1,16,k3,p1)+BN -> W1 (32, 512); col index = t*16 + c.
    w1eff = (p["w1"][:, 0, :] * s1[:, None]).T               # (3, 16)  [k, c]
    W1 = jnp.where(valid_t[:, :, None], w1eff[k_t], 0.0)     # (32, 32, 16)
    W1 = W1.reshape(L0, L0 * C1).astype(f32)

    # depthwiseConv: Conv1d(16,32,k3,groups=16,p1)+BN -> W2 (512, 1024).
    # out channel c2 reads in channel c2 // 2.
    onehot = (jnp.arange(C2)[None, :] // 2 ==
              jnp.arange(C1)[:, None]).astype(f32)           # (16, 32) [ci, co]
    w2eff = onehot[None, :, :] * (p["w2"][:, 0, :].T * s2[None, :])[:, None, :]  # (3,16,32)
    W2 = jnp.where(valid_t[:, None, :, None],
                   w2eff[k_t].transpose(0, 2, 1, 3), 0.0)    # (32, 16, 32, 32)
    W2 = W2.reshape(L0 * C1, L0 * C2).astype(f32)

    # AvgPool(4) folded into separableConv: W23 = P1 @ W3  (1024, 256).
    poolsel = ((t_idx[:, None] // 4) == j_idx[None, :]).astype(f32) * 0.25   # (32, 8)
    P1 = poolsel[:, None, :, None] * jnp.eye(C2, dtype=f32)[None, :, None, :]
    P1 = P1.reshape(L0 * C2, (L0 // 4) * C2)
    w3eff = jnp.transpose(p["w3"] * s3[:, None, None], (2, 1, 0))            # (3, 32, 32)
    W3 = jnp.where(valid_j[:, None, :, None],
                   w3eff[k_j].transpose(0, 2, 1, 3), 0.0)    # (8, 32, 8, 32)
    W3 = W3.reshape((L0 // 4) * C2, (L0 // 4) * C2)
    W23 = (P1 @ W3).astype(f32)

    # AvgPool(4) + channel-major flatten (flat[c*2+u]) folded into classifier.
    wl_t = jnp.transpose(p["wl"].reshape(NUM_CLASSES, C2, 2), (2, 1, 0))     # (2, 32, 10)
    Wcls = (0.25 * wl_t[jnp.arange(L0 // 4) // 4]).reshape(
        (L0 // 4) * C2, NUM_CLASSES).astype(f32)

    # Per-layer shifts + final bias packed into a single (4, 1024) array.
    bias = jnp.zeros((4, L0 * C2), f32)
    bias = bias.at[0, :L0 * C1].set(jnp.tile(t1, L0))
    bias = bias.at[1, :].set(jnp.tile(t2, L0))
    bias = bias.at[2, :(L0 // 4) * C2].set(jnp.tile(t3, L0 // 4))
    bias = bias.at[3, :NUM_CLASSES].set(p["bl"])
    return (W1, W2, W23, Wcls, bias)


# ----------------------------- wrapper ---------------------------------------

def _pick_tb(B):
    # Largest batch tile <= 256 that divides B (keeps VMEM modest on v7x too).
    for tb in (256, 128, 64, 32, 16, 8):
        if B % tb == 0:
            return tb
    return B   # tiny / odd batches: single block covering the full batch


def eegnet1d_pallas(x_ncl, kparams, tb=None):
    B, cin, L = x_ncl.shape
    assert cin == 1 and L == L0
    W1, W2, W23, Wcls, bias = kparams
    if tb is None:
        tb = _pick_tb(B)
    assert B % tb == 0
    x2d = x_ncl[:, 0, :].astype(jnp.float32)                  # (B, 32): dense input block

    def full(shape):
        return pl.BlockSpec(shape, lambda i, s=shape: (0,) * len(s))

    out = pl.pallas_call(
        eegnet_kernel,
        out_shape=jax.ShapeDtypeStruct((B, NUM_CLASSES), jnp.float32),
        grid=(B // tb,),
        in_specs=[
            pl.BlockSpec((tb, L0), lambda i: (i, 0)),
            full(W1.shape), full(W2.shape), full(W23.shape), full(Wcls.shape),
            full(bias.shape),
        ],
        out_specs=pl.BlockSpec((tb, NUM_CLASSES), lambda i: (i, 0)),
        compiler_params=pltpu.CompilerParams(
            dimension_semantics=("parallel",),
            vmem_limit_bytes=32 * 1024 * 1024),
    )(x2d, W1, W2, W23, Wcls, bias)
    return out                                                # (B, num_classes)


# ----------------------------- pure-JAX reference ----------------------------

def ref_forward(x, p):
    def conv1d(y, w, b, groups=1):
        z = lax.conv_general_dilated(y, w, (1,), ((1, 1),),
                                     dimension_numbers=("NCH", "OIH", "NCH"),
                                     feature_group_count=groups)
        return z + b[None, :, None]

    def bn(y, g, be, m, v):
        return (y - m[None, :, None]) / jnp.sqrt(v[None, :, None] + BN_EPS) * g[None, :, None] + be[None, :, None]

    def elu(y):
        return jnp.where(y > 0, y, jnp.exp(y) - 1.0)

    def pool4(y):
        B, C, L = y.shape
        return y.reshape(B, C, L // 4, 4).mean(-1)

    y = elu(bn(conv1d(x, p["w1"], p["b1"]), p["g1"], p["be1"], p["m1"], p["v1"]))
    y = pool4(elu(bn(conv1d(y, p["w2"], p["b2"], groups=16), p["g2"], p["be2"], p["m2"], p["v2"])))
    y = pool4(elu(bn(conv1d(y, p["w3"], p["b3"]), p["g3"], p["be3"], p["m3"], p["v3"])))
    flat = y.reshape(y.shape[0], -1)                           # (B, 64) channel-major
    return flat @ p["wl"].T + p["bl"]


# ----------------------------- main -------------------------------------------

if __name__ == "__main__":
    key = jax.random.PRNGKey(0)
    k_param, k_x = jax.random.split(key)
    params = init_params(k_param)
    kparams = make_kernel_params(params)

    B = 16
    x = jax.random.normal(k_x, (B, 1, L0), jnp.float32)

    # Small batch tile so the test exercises a multi-step ("parallel") grid.
    out = eegnet1d_pallas(x, kparams, tb=8)
    out = jax.block_until_ready(out)

    ref = jax.block_until_ready(ref_forward(x, params))
    assert out.shape == (B, NUM_CLASSES)
    if not bool(jnp.allclose(out, ref, rtol=1e-4, atol=1e-4)):
        raise AssertionError(f"mismatch: max abs err = {float(jnp.max(jnp.abs(out - ref)))}")
    print("KERNEL_OK")
</pallas_src>

<mosaic_0001>
module attributes {stable_mosaic.version = 11 : i64} {
  func.func @eegnet_kernel(%arg0: i32, %arg1: memref<8x32xf32, #tpu.memory_space<vmem>>, %arg2: memref<32x512xf32, #tpu.memory_space<vmem>>, %arg3: memref<512x1024xf32, #tpu.memory_space<vmem>>, %arg4: memref<1024x256xf32, #tpu.memory_space<vmem>>, %arg5: memref<256x10xf32, #tpu.memory_space<vmem>>, %arg6: memref<4x1024xf32, #tpu.memory_space<vmem>>, %arg7: memref<8x10xf32, #tpu.memory_space<vmem>>) attributes {dimension_semantics = [#tpu.dimension_semantics<parallel>], iteration_bounds = array<i64: 2>, scalar_prefetch = 0 : i64, scratch_operands = 0 : i64, tpu.core_type = #tpu.core_type<tc>, window_params = [{transform_indices = @transform_0, window_bounds = array<i64: 8, 32>}, {pipeline_mode = #tpu.pipeline_mode<synchronous>, transform_indices = @transform_1, window_bounds = array<i64: 32, 512>}, {pipeline_mode = #tpu.pipeline_mode<synchronous>, transform_indices = @transform_2, window_bounds = array<i64: 512, 1024>}, {pipeline_mode = #tpu.pipeline_mode<synchronous>, transform_indices = @transform_3, window_bounds = array<i64: 1024, 256>}, {pipeline_mode = #tpu.pipeline_mode<synchronous>, transform_indices = @transform_4, window_bounds = array<i64: 256, 10>}, {pipeline_mode = #tpu.pipeline_mode<synchronous>, transform_indices = @transform_5, window_bounds = array<i64: 4, 1024>}, {transform_indices = @transform_6, window_bounds = array<i64: 8, 10>}]} {
    %c0 = arith.constant 0 : index
    %c0_0 = arith.constant 0 : index
    %0 = vector.load %arg6[%c0, %c0_0] : memref<4x1024xf32, #tpu.memory_space<vmem>>, vector<4x1024xf32>
    %c0_1 = arith.constant 0 : index
    %c0_2 = arith.constant 0 : index
    %1 = vector.load %arg1[%c0_1, %c0_2] : memref<8x32xf32, #tpu.memory_space<vmem>>, vector<8x32xf32>
    %c0_3 = arith.constant 0 : index
    %c0_4 = arith.constant 0 : index
    %2 = vector.load %arg2[%c0_3, %c0_4] : memref<32x512xf32, #tpu.memory_space<vmem>>, vector<32x512xf32>
    %cst = arith.constant dense<0.000000e+00> : vector<8x512xf32>
    %3 = tpu.matmul %1, %2, %cst {dimension_numbers = #tpu.dot_dimension_numbers<[1], [0], [0], [1], [0, 0, 1, 1], [], []>} : vector<8x32xf32>, vector<32x512xf32>, vector<8x512xf32> -> vector<8x512xf32>
    %4 = vector.extract_strided_slice %0 {offsets = [0, 0], sizes = [1, 512], strides = [1, 1]} : vector<4x1024xf32> to vector<1x512xf32>
    %5 = vector.broadcast %4 : vector<1x512xf32> to vector<8x512xf32>
    %6 = arith.addf %3, %5 : vector<8x512xf32>
    %cst_5 = arith.constant 0.000000e+00 : f32
    %7 = vector.broadcast %cst_5 : f32 to vector<8x512xf32>
    %8 = arith.cmpf ogt, %6, %7 : vector<8x512xf32>
    %cst_6 = arith.constant 0.000000e+00 : f32
    %9 = vector.broadcast %cst_6 : f32 to vector<8x512xf32>
    %10 = arith.minimumf %6, %9 : vector<8x512xf32>
    %11 = math.exp %10 : vector<8x512xf32>
    %cst_7 = arith.constant 1.000000e+00 : f32
    %12 = vector.broadcast %cst_7 : f32 to vector<8x512xf32>
    %13 = arith.subf %11, %12 : vector<8x512xf32>
    %14 = arith.select %8, %6, %13 : vector<8x512xi1>, vector<8x512xf32>
    %c0_8 = arith.constant 0 : index
    %c0_9 = arith.constant 0 : index
    %15 = vector.load %arg3[%c0_8, %c0_9] : memref<512x1024xf32, #tpu.memory_space<vmem>>, vector<512x1024xf32>
    %cst_10 = arith.constant dense<0.000000e+00> : vector<8x1024xf32>
    %16 = tpu.matmul %14, %15, %cst_10 {dimension_numbers = #tpu.dot_dimension_numbers<[1], [0], [0], [1], [0, 0, 1, 1], [], []>} : vector<8x512xf32>, vector<512x1024xf32>, vector<8x1024xf32> -> vector<8x1024xf32>
    %17 = vector.extract_strided_slice %0 {offsets = [1, 0], sizes = [1, 1024], strides = [1, 1]} : vector<4x1024xf32> to vector<1x1024xf32>
    %18 = vector.broadcast %17 : vector<1x1024xf32> to vector<8x1024xf32>
    %19 = arith.addf %16, %18 : vector<8x1024xf32>
    %cst_11 = arith.constant 0.000000e+00 : f32
    %20 = vector.broadcast %cst_11 : f32 to vector<8x1024xf32>
    %21 = arith.cmpf ogt, %19, %20 : vector<8x1024xf32>
    %cst_12 = arith.constant 0.000000e+00 : f32
    %22 = vector.broadcast %cst_12 : f32 to vector<8x1024xf32>
    %23 = arith.minimumf %19, %22 : vector<8x1024xf32>
    %24 = math.exp %23 : vector<8x1024xf32>
    %cst_13 = arith.constant 1.000000e+00 : f32
    %25 = vector.broadcast %cst_13 : f32 to vector<8x1024xf32>
    %26 = arith.subf %24, %25 : vector<8x1024xf32>
    %27 = arith.select %21, %19, %26 : vector<8x1024xi1>, vector<8x1024xf32>
    %c0_14 = arith.constant 0 : index
    %c0_15 = arith.constant 0 : index
    %28 = vector.load %arg4[%c0_14, %c0_15] : memref<1024x256xf32, #tpu.memory_space<vmem>>, vector<1024x256xf32>
    %cst_16 = arith.constant dense<0.000000e+00> : vector<8x256xf32>
    %29 = tpu.matmul %27, %28, %cst_16 {dimension_numbers = #tpu.dot_dimension_numbers<[1], [0], [0], [1], [0, 0, 1, 1], [], []>} : vector<8x1024xf32>, vector<1024x256xf32>, vector<8x256xf32> -> vector<8x256xf32>
    %30 = vector.extract_strided_slice %0 {offsets = [2, 0], sizes = [1, 256], strides = [1, 1]} : vector<4x1024xf32> to vector<1x256xf32>
    %31 = vector.broadcast %30 : vector<1x256xf32> to vector<8x256xf32>
    %32 = arith.addf %29, %31 : vector<8x256xf32>
    %cst_17 = arith.constant 0.000000e+00 : f32
    %33 = vector.broadcast %cst_17 : f32 to vector<8x256xf32>
    %34 = arith.cmpf ogt, %32, %33 : vector<8x256xf32>
    %cst_18 = arith.constant 0.000000e+00 : f32
    %35 = vector.broadcast %cst_18 : f32 to vector<8x256xf32>
    %36 = arith.minimumf %32, %35 : vector<8x256xf32>
    %37 = math.exp %36 : vector<8x256xf32>
    %cst_19 = arith.constant 1.000000e+00 : f32
    %38 = vector.broadcast %cst_19 : f32 to vector<8x256xf32>
    %39 = arith.subf %37, %38 : vector<8x256xf32>
    %40 = arith.select %34, %32, %39 : vector<8x256xi1>, vector<8x256xf32>
    %c0_20 = arith.constant 0 : index
    %c0_21 = arith.constant 0 : index
    %41 = vector.load %arg5[%c0_20, %c0_21] : memref<256x10xf32, #tpu.memory_space<vmem>>, vector<256x10xf32>
    %cst_22 = arith.constant dense<0.000000e+00> : vector<8x10xf32>
    %42 = tpu.matmul %40, %41, %cst_22 {dimension_numbers = #tpu.dot_dimension_numbers<[1], [0], [0], [1], [0, 0, 1, 1], [], []>} : vector<8x256xf32>, vector<256x10xf32>, vector<8x10xf32> -> vector<8x10xf32>
    %43 = vector.extract_strided_slice %0 {offsets = [3, 0], sizes = [1, 10], strides = [1, 1]} : vector<4x1024xf32> to vector<1x10xf32>
    %44 = vector.broadcast %43 : vector<1x10xf32> to vector<8x10xf32>
    %45 = arith.addf %42, %44 : vector<8x10xf32>
    %c0_23 = arith.constant 0 : index
    %c0_24 = arith.constant 0 : index
    %46 = vector.load %arg7[%c0_23, %c0_24] : memref<8x10xf32, #tpu.memory_space<vmem>>, vector<8x10xf32>
    tpu.vector_store %arg7[%c0_23, %c0_24], %45 {strides = array<i32>} : memref<8x10xf32, #tpu.memory_space<vmem>>, vector<8x10xf32>,
    return
  }
  func.func @transform_0(%arg0: i32) -> (i32, i32) {
    %c0_i32 = arith.constant 0 : i32
    %c0_i32_0 = arith.constant 0 : i32
    return %arg0, %c0_i32 : i32, i32
  }
  func.func @transform_1(%arg0: i32) -> (i32, i32) {
    %c0_i32 = arith.constant 0 : i32
    %c0_i32_0 = arith.constant 0 : i32
    %c0_i32_1 = arith.constant 0 : i32
    return %c0_i32, %c0_i32_0 : i32, i32
  }
  func.func @transform_2(%arg0: i32) -> (i32, i32) {
    %c0_i32 = arith.constant 0 : i32
    %c0_i32_0 = arith.constant 0 : i32
    %c0_i32_1 = arith.constant 0 : i32
    return %c0_i32, %c0_i32_0 : i32, i32
  }
  func.func @transform_3(%arg0: i32) -> (i32, i32) {
    %c0_i32 = arith.constant 0 : i32
    %c0_i32_0 = arith.constant 0 : i32
    %c0_i32_1 = arith.constant 0 : i32
    return %c0_i32, %c0_i32_0 : i32, i32
  }
  func.func @transform_4(%arg0: i32) -> (i32, i32) {
    %c0_i32 = arith.constant 0 : i32
    %c0_i32_0 = arith.constant 0 : i32
    %c0_i32_1 = arith.constant 0 : i32
    return %c0_i32, %c0_i32_0 : i32, i32
  }
  func.func @transform_5(%arg0: i32) -> (i32, i32) {
    %c0_i32 = arith.constant 0 : i32
    %c0_i32_0 = arith.constant 0 : i32
    %c0_i32_1 = arith.constant 0 : i32
    return %c0_i32, %c0_i32_0 : i32, i32
  }
  func.func @transform_6(%arg0: i32) -> (i32, i32) {
    %c0_i32 = arith.constant 0 : i32
    %c0_i32_0 = arith.constant 0 : i32
    return %arg0, %c0_i32 : i32, i32
  }
}

</mosaic_0001>

<bundles_post_ra>
// kernel: tpu_custom_call.1
= control target key start
LH: loop header
LB: loop body
LE: loop exit
PB: predicated region body
PF: predicated region fallthrough
CT: control target
= control target key end

     0   :  { %11 = vsyncpa [#allocation3], 0  ;;  %s4335_s0 = inlined_call_operand.hbm [shape: f32[16,32], index: 0, kind: input, shape index: {}]   ;;  %s4336_s1 = inlined_call_operand.hbm [shape: f32[32,512], index: 1, kind: input, shape index: {}]   ;;  %s4337_s2 = inlined_call_operand.hbm [shape: f32[512,1024], index: 2, kind: input, shape index: {}]   ;;  %s4338_s3 = inlined_call_operand.hbm [shape: f32[1024,256], index: 3, kind: input, shape index: {}]   ;;  %s4339_s4 = inlined_call_operand.vmem [shape: f32[256,10], index: 4, kind: input, shape index: {}]   ;;  %s4340_s5 = inlined_call_operand.hbm [shape: f32[4,1024], index: 5, kind: input, shape index: {}]   ;;  %s4341_s6 = inlined_call_operand.hbm [shape: f32[16,10], index: 6, kind: output, shape index: {}]  }
   0x1   :  { %13 = vsyncpa [#allocation3 + $0x1], 0 }
   0x2   :  { %14 = vsyncpa [#allocation6], 0 }
   0x3   :  { %15 = vsyncpa [#allocation9], 0 }
   0x4   :  { %16 = vsyncpa [#allocation4], 0 }
   0x5   :  { %18 = vsyncpa [#allocation4 + $0x1], 0  ;;  %s3856_s21 = smov 0   ;;  %s3858_s22 = smov 0  }
   0x6   :  { %s3860_s23 = smov 0   ;;  %s3862_s24 = smov 0  }
   0x7 LB: > { %s3808_s25 = smov [#allocation5]   ;;  %s3877_s27 = sadd.s32 4294967295, %s3806_s24   ;;  %s3806_s24 = sphi %s3862_s24, %s4365_s24   ;;  %s3802_s23 = sphi %s3860_s23, %s4364_s23   ;;  %s3798_s22 = sphi %s3858_s22, %s4363_s22   ;;  %s3794_s21 = sphi %s3856_s21, %s4362_s21  }
   0x8   : > { %s198_s26 = sshll.u32 %s3808_s25, 4  ;;  %p2555_p0 = scmp.ge.s32.totalorder %s3806_s24, 1  ;;  %s3882_s26 = int_to_ptr.vmem [resolvable:$true] %s198_s26 }
   0x9   : > { %p4342_p1 = scmp.eq.s32.totalorder %s3877_s27, 0  ;;  %p186_p2 = scmp.lt.s32.totalorder %s3806_s24, 3 }
   0xa   : > { %s3809_s29 = smov [#allocation8]   ;;  %s3810_s8 = smov [#allocation7]  }
   0xb   : > { %p3884_p3 = pnand %p2555_p0, %p186_p2  ;;  %s224_s30 = sshll.u32 %s3809_s29, 4  ;;  %s3897_s30 = int_to_ptr.vmem [resolvable:$true] %s224_s30 }
   0xc   : > { %s3899_s9 = sshll.u32 %s3810_s8, 4  ;;  %s3590_s12 = scalar_lea.hbm %s4336_s1, 2048  ;;  %s212_s9 = int_to_ptr.vmem [resolvable:$true] %s3899_s9 }
   0xd   : > { %s4345_s28 = scalar_select %p3884_p3, 1, 0 }
   0xe   : > { %p3485_p5 = pneg %p3884_p3  ;;  %p3591_p7 = scmp.ne.s32.totalorder %s4336_s1, %s3590_s12 }
   0xf   : > { %p3597_p11 = scmp.lt.u32.totalorder %s3590_s12, %s4336_s1 }
  0x10   : > { %p3893_p6 = pnand %p3485_p5, %p4342_p1 }
  0x12   : > { %p3909_p8 = pneg %p3893_p6 }
  0x14   : > { %p3593_p9 = pnand %p3909_p8, %p3591_p7 }
  0x16   : > { %p3594_p10 = pneg %p3593_p9 }
  0x18   : > { %p3599_p12 = pnand %p3597_p11, %p3594_p10 }
  0x1a   : > { %3602 = shalt.err (!%p3599_p12)
}
  0x1b   : > { %s3603_s18 = scalar_lea.vmem %s3882_s26, 2048  ;;  %p3611_p5 = scmp.lt.s32.totalorder %s3882_s26, %s3882_s26 }
  0x1c   : > { %p3604_p13 = scmp.ne.s32.totalorder %s3882_s26, %s3603_s18  ;;  %p3612_p4 = scmp.lt.s32.totalorder %s3603_s18, %s3603_s18 }
  0x1e   : > { %p3606_p0 = pnand %p3604_p13, %p3909_p8  ;;  %p3613_p7 = por %p3612_p4, %p3611_p5 }
  0x20   : > { %p3607_p2 = pneg %p3606_p0 }
  0x22   : > { %p3614_p9 = pnand %p3613_p7, %p3607_p2 }
  0x24   : > { %3617 = shalt.err (!%p3614_p9)
}
  0x25   : > { %s3811_s19 = smov 512   ;;  %s3812_s20 = smov 32  }
  0x26   : > { %3488 = dma.hbm_to_vmem [thread:$0]  (!%p3893_p6), %s4336_s1, 2048, %s3882_s26, [#allocation6], %s3811_s19, %s3811_s19, %s3812_s20  }
  0x27   : > { %s3618_s11 = scalar_lea.hbm %s4338_s3, 32768 }
  0x28   : > { %p3619_p4 = scmp.ne.s32.totalorder %s4338_s3, %s3618_s11  ;;  %p3625_p12 = scmp.lt.u32.totalorder %s3618_s11, %s4338_s3 }
  0x2a   : > { %p3621_p10 = pnand %p3619_p4, %p3909_p8 }
  0x2c   : > { %p3622_p11 = pneg %p3621_p10 }
  0x2e   : > { %p3627_p13 = pnand %p3625_p12, %p3622_p11 }
  0x30   : > { %3630 = shalt.err (!%p3627_p13)
}
  0x31   : > { %s3631_s26 = scalar_lea.vmem %s3897_s30, 32768  ;;  %p3639_p7 = scmp.lt.s32.totalorder %s3897_s30, %s3897_s30 }
  0x32   : > { %p3632_p0 = scmp.ne.s32.totalorder %s3897_s30, %s3631_s26  ;;  %p3640_p9 = scmp.lt.s32.totalorder %s3631_s26, %s3631_s26 }
  0x34   : > { %p3634_p2 = pnand %p3632_p0, %p3909_p8  ;;  %p3641_p4 = por %p3640_p9, %p3639_p7 }
  0x36   : > { %p3635_p5 = pneg %p3634_p2 }
  0x38   : > { %p3642_p10 = pnand %p3641_p4, %p3635_p5 }
  0x3a   : > { %3645 = shalt.err (!%p3642_p10)
}
  0x3b   : > { %s3813_s17 = smov 256   ;;  %s3814_s18 = smov 16  }
  0x3c   : > { %3494 = dma.hbm_to_vmem [thread:$0]  (!%p3893_p6), %s4338_s3, 32768, %s3897_s30, [#allocation9], %s3813_s17, %s3813_s17, %s3814_s18  }
  0x3d   : > { %s3646_s8 = scalar_lea.hbm %s4337_s2, 65536 }
  0x3e   : > { %p3647_p11 = scmp.ne.s32.totalorder %s4337_s2, %s3646_s8  ;;  %p3653_p0 = scmp.lt.u32.totalorder %s3646_s8, %s4337_s2 }
  0x40   : > { %p3649_p12 = pnand %p3647_p11, %p3909_p8 }
  0x42   : > { %p3650_p13 = pneg %p3649_p12 }
  0x44   : > { %p3655_p2 = pnand %p3653_p0, %p3650_p13 }
  0x46   : > { %3658 = shalt.err (!%p3655_p2)
}
  0x47   : > { %s3659_s14 = scalar_lea.vmem %s212_s9, 65536  ;;  %p3667_p4 = scmp.lt.s32.totalorder %s212_s9, %s212_s9 }
  0x48   : > { %p3660_p5 = scmp.ne.s32.totalorder %s212_s9, %s3659_s14  ;;  %p3668_p10 = scmp.lt.s32.totalorder %s3659_s14, %s3659_s14 }
  0x4a   : > { %p3662_p7 = pnand %p3660_p5, %p3909_p8  ;;  %p3669_p1 = por %p3668_p10, %p3667_p4 }
  0x4c   : > { %p3663_p9 = pneg %p3662_p7 }
  0x4e   : > { %p3670_p3 = pnand %p3669_p1, %p3663_p9 }
  0x50   : > { %3673 = shalt.err (!%p3670_p3)
}
  0x51   : > { %s3815_s30 = smov 1024   ;;  %s3816_s16 = smov 64  }
  0x52   : > { %3491 = dma.hbm_to_vmem [thread:$0]  (!%p3893_p6), %s4337_s2, 65536, %s212_s9, [#allocation6], %s3815_s30, %s3815_s30, %s3816_s16  }
  0x53   : > { %s3817_s18 = smov [#allocation10]   ;;  %s3674_s29 = scalar_lea.hbm %s4340_s5, 512 }
  0x54   : > { %s241_s19 = sshll.u32 %s3817_s18, 4  ;;  %p3675_p1 = scmp.ne.s32.totalorder %s4340_s5, %s3674_s29  ;;  %s242_s19 = int_to_ptr.vmem [resolvable:$true] %s241_s19 }
  0x55   : > { %p3681_p12 = scmp.lt.u32.totalorder %s3674_s29, %s4340_s5 }
  0x56   : > { %p3677_p3 = pnand %p3675_p1, %p3909_p8 }
  0x58   : > { %p3678_p11 = pneg %p3677_p3 }
  0x5a   : > { %p3683_p13 = pnand %p3681_p12, %p3678_p11 }
  0x5c   : > { %3686 = shalt.err (!%p3683_p13)
}
  0x5d   : > { %s3687_s9 = scalar_lea.vmem %s242_s19, 512  ;;  %p3695_p7 = scmp.lt.s32.totalorder %s242_s19, %s242_s19 }
  0x5e   : > { %p3688_p0 = scmp.ne.s32.totalorder %s242_s19, %s3687_s9  ;;  %p3696_p9 = scmp.lt.s32.totalorder %s3687_s9, %s3687_s9 }
  0x60   : > { %p3690_p2 = pnand %p3688_p0, %p3909_p8  ;;  %p3697_p4 = por %p3696_p9, %p3695_p7 }
  0x62   : > { %p3691_p5 = pneg %p3690_p2 }
  0x64   : > { %p3698_p10 = pnand %p3697_p4, %p3691_p5 }
  0x66   : > { %3701 = shalt.err (!%p3698_p10)
}
  0x67   : > { %3497 = dma.hbm_to_vmem [thread:$0]  (!%p3893_p6), %s4340_s5, 512, %s242_s19, [#allocation9]  }
  0x68   : > { %s2554_s15 = sadd.s32 4294967294, %s3806_s24   ;;  %s3992_s7 = sadd.s32 1, %s3806_s24  }
  0x69   : > { %s28_s30 = ssub.s32 %s3806_s24, %s3992_s7  ;;  %s31_s16 = sadd.s32 1, %s3802_s23 }
  0x6a   : > { %p29_p8 = scmp.eq.s32.totalorder %s28_s30, 0  ;;  %p38_p1 = scmp.ne.s32.totalorder %s3802_s23, %s3798_s22 }
  0x6b   : > { %p39_p3 = scmp.eq.s32.totalorder %s3806_s24, 0  ;;  %p44_p11 = scmp.ne.s32.totalorder %s3798_s22, %s3794_s21 }
  0x6c   : > { %s4003_s26 = scalar_select %p29_p8, %s3802_s23, %s31_s16  }
  0x6d   : > { %p4005_p12 = por %p39_p3, %p38_p1  ;;  %p4349_p13 = scmp.eq.s32.totalorder %s3877_s27, 0 }
  0x6e   : > { %p173_p0 = scmp.eq.s32.totalorder %s3877_s27, 1  ;;  %p179_p2 = scmp.eq.s32.totalorder %s2554_s15, 1 }
  0x6f   : > { %p4011_p6 = por %p4349_p13, %p44_p11  ;;  %p3510_p5 = scmp.lt.s32.totalorder %s3806_s24, 2 }
  0x70   : > { %s252_s19 = sand.u32 1, %s3802_s23   ;;  %p4018_p7 = por %p173_p0, %p38_p1 }
  0x71   : > { %p4022_p9 = por %p179_p2, %p44_p11  ;;  %s2561_s29 = sshll.u32 %s252_s19, 3 }
  0x72   : > { %s4351_s20 = scalar_select %p4018_p7, 1, 0 }
  0x73   : > { %s4352_s25 = scalar_select %p4022_p9, 1, 0 }
  0x74   : > { %s2562_s8 = sshll.u32 %s3806_s24, 7  ;;  %s256_s9 = scalar_lea.vmem [#allocation2], %s2561_s29 }
  0x75   : > { %s4030_s12 = scalar_lea.hbm %s4335_s0, %s2562_s8  ;;  %s263_s13 = sshll.u32 %s256_s9, 4  ;;  %s4032_s13 = int_to_ptr.vmem [resolvable:$true] %s263_s13 }
  0x76   : > { %p4036_p4 = pnand %p3510_p5, %p4005_p12  ;;  %s253_s15 = scalar_lea.sflag [#allocation3], %s252_s19 }
  0x77   : > { %s3702_s30 = scalar_lea.hbm %s4030_s12, 128  ;;  %s3707_s8 = scalar_lea.hbm %s4335_s0, 256 }
  0x78   : > { %p3703_p10 = scmp.ne.s32.totalorder %s4030_s12, %s3702_s30  ;;  %p3704_p8 = pneg %p4036_p4 }
  0x79   : > { %p3708_p11 = scmp.lt.u32.totalorder %s4030_s12, %s4335_s0  ;;  %p3709_p12 = scmp.lt.u32.totalorder %s3707_s8, %s3702_s30 }
  0x7a   : > { %p3705_p1 = pnand %p3704_p8, %p3703_p10  ;;  %p3711_p0 = scmp.lt.u32.totalorder %s3702_s30, %s4030_s12 }
  0x7b   : > { %p3710_p13 = por %p3709_p12, %p3708_p11 }
  0x7c   : > { %p3706_p3 = pneg %p3705_p1 }
  0x7d   : > { %p3712_p2 = por %p3711_p0, %p3710_p13 }
  0x7f   : > { %p3713_p5 = pnand %p3712_p2, %p3706_p3 }
  0x81   : > { %3716 = shalt.err (!%p3713_p5)
}
  0x82   : > { %s3717_s19 = scalar_lea.vmem %s4032_s13, 128  ;;  %s3818_s11 = smov [#allocation2]  }
  0x83   : > { %p3718_p10 = scmp.ne.s32.totalorder %s4032_s13, %s3717_s19  ;;  %s3722_s9 = sshll.u32 %s3818_s11, 4  ;;  %s3723_s9 = int_to_ptr.vmem [resolvable:$false] %s3722_s9 }
  0x84   : > { %s3724_s16 = scalar_lea.vmem %s3723_s9, 256  ;;  %p3725_p7 = scmp.lt.s32.totalorder %s4032_s13, %s3723_s9 }
  0x85   : > { %p3720_p1 = pnand %p3718_p10, %p3704_p8  ;;  %p3726_p11 = scmp.lt.s32.totalorder %s3724_s16, %s3717_s19 }
  0x87   : > { %p3721_p9 = pneg %p3720_p1  ;;  %p3727_p12 = por %p3726_p11, %p3725_p7 }
  0x89   : > { %p3728_p13 = pnand %p3727_p12, %p3721_p9 }
  0x8b   : > { %3731 = shalt.err (!%p3728_p13)
}
  0x8c   : > { %3501 = dma.hbm_to_vmem [thread:$0]  (!%p4036_p4), %s4030_s12, 128, %s4032_s13, %s253_s15  }
  0x8d   : > { %p4354_p3 = scmp.ne.s32.totalorder %s4345_s28, 0 }
  0x8e   : > { %s4068_s30 = sand.u32 (!%p4354_p3), 1, %s3798_s22  }
  0x8f   : > { %272 = sbr.rel (%p4354_p3) target bundleno = 1422 (0x58e), region = 44  ;;  %s2564_s29 = sshll.u32 (!%p4354_p3), %s4068_s30, 3 }
  0x90   : > { %s275_s8 = scalar_lea.sflag (!%p4354_p3), [#allocation3], %s4068_s30  ;;  %s4074_s17 = scalar_lea.vmem (!%p4354_p3), [#allocation2], %s2564_s29 }
  0x96   : > { %3777 = dma.done.wait (%p4011_p6), %s275_s8, 128  }
  0x97   : > { %3779 = vsyncadd (%p4011_p6), %s275_s8, 4294967168  ;;  %p4355_p7 = scmp.eq.s32.totalorder %s3877_s27, 0 }
  0x99   : > { %3781 = dma.done.wait (%p4355_p7), [#allocation6], 67584   ;;  %p4356_p9 = pmov %p4355_p7 }
  0x9a   : > { %p4357_p4 = pmov %p4355_p7 }
  0x9b   : > { %3783 = vsyncadd (%p4356_p9), [#allocation6], 4294899712 }
  0x9c   : > { %3785 = dma.done.wait (%p4357_p4), [#allocation9], 33280   ;;  %p4358_p8 = pmov %p4357_p4 }
  0x9d   : > { %v3819_v0 = vmov 0.0   ;;  %v329_v1 = vld [vmem:[#allocation5 + $0x8] sm:$0xff]  ;;  %v328_v3 = vld [vmem:[#allocation5] sm:$0xff]  ;;  %v331_v12 = vld [vmem:[#allocation5 + $0x18] sm:$0xff]  ;;  %vm382_vm0 = vcmask 261120   ;;  %s322_s28 = scalar_lea.vmem [#allocation11], %s2564_s29 }
  0x9e   : > { %3787 = vsyncadd (%p4358_p8), [#allocation9], 4294934016  ;;  %450 = vmatprep.mubr.f32.mxu0 %v3819_v0  ;;  %v333_v2 = vld [vmem:[#allocation5 + $0x28] sm:$0xff]  ;;  %v332_v5 = vld [vmem:[#allocation5 + $0x20] sm:$0xff]  ;;  %s2446_s18 = sshll.u32 %s322_s28, 4  ;;  %vm2430_vm15 = vcmask 80896   ;;  %s4293_s18 = int_to_ptr.vmem [resolvable:$true] %s2446_s18 }
  0x9f   : > { %v2625_v4 = vpack.c.bf16 %v333_v2, %v329_v1  ;;  %v337_v6 = vld [vmem:[#allocation5 + $0x48] sm:$0xff]  ;;  %v2627_v8 = vpack.c.bf16 %v332_v5, %v328_v3  ;;  %v336_v10 = vld [vmem:[#allocation5 + $0x40] sm:$0xff]  ;;  %v335_v13 = vld [vmem:[#allocation5 + $0x38] sm:$0xff]  ;;  %s2433_s15 = scalar_lea.sflag [#allocation4], %s4068_s30  ;;  %s3732_s10 = scalar_lea.vmem %s4293_s18, 128 }
  0xa0   : > { %v341_v7 = vld [vmem:[#allocation5 + $0x68] sm:$0xff]  ;;  %v340_v11 = vld [vmem:[#allocation5 + $0x60] sm:$0xff]  ;;  %v2633_v15 = vpack.c.bf16 %v335_v13, %v331_v12  ;;  %v330_v16 = vld [vmem:[#allocation5 + $0x10] sm:$0xff]  ;;  %p3733_p6 = scmp.ne.s32.totalorder %s4293_s18, %s3732_s10  ;;  %p4359_p0 = scmp.ne.s32.totalorder %s4351_s20, 0 }
  0xa1   : > { %v2629_v9 = vpack.c.bf16 %v341_v7, %v337_v6  ;;  %2626 = vmatprep.subr.bf16.mxu0 %v2625_v4  ;;  %v2631_v14 = vpack.c.bf16 %v340_v11, %v336_v10  ;;  %v334_v17 = vld [vmem:[#allocation5 + $0x30] sm:$0xff]  ;;  %v553_v18 = vld [vmem:[#allocation7 + $0x8] sm:$0xff]  ;;  %v339_v19 = vld [vmem:[#allocation5 + $0x58] sm:$0xff] }
  0xa2   : > { %2628 = vmatpush1.bf16.msra.mxu0 %v2627_v8  ;;  %v343_v20 = vld [vmem:[#allocation5 + $0x78] sm:$0xff]  ;;  %v561_v21 = vld [vmem:[#allocation7 + $0x48] sm:$0xff]  ;;  %v552_v23 = vld [vmem:[#allocation7] sm:$0xff]  ;;  %v2635_v26 = vpack.c.bf16 %v334_v17, %v330_v16  ;;  %p3734_p2 = pnand %p3733_p6, %p4359_p0 }
  0xa3   : > { %2630 = vmatprep.subr.bf16.mxu0 %v2629_v9  ;;  %v2641_v22 = vpack.c.bf16 %v561_v21, %v553_v18  ;;  %v560_v24 = vld [vmem:[#allocation7 + $0x40] sm:$0xff]  ;;  %v327_v25 = vld [vmem:[%s4074_s17] sm:$0xff]  ;;  %v569_v28 = vld [vmem:[#allocation7 + $0x88] sm:$0xff]  ;;  %v2637_v30 = vpack.c.bf16 %v343_v20, %v339_v19  ;;  %s2587_s17 = sshll.u32 %s3877_s27, 7  ;;  %s3820_s27 = smov [#allocation11]  }
  0xa4   : > { %v2643_v27 = vpack.c.bf16 %v560_v24, %v552_v23  ;;  %v577_v29 = vld [vmem:[#allocation7 + $0xc8] sm:$0xff]  ;;  %v338_v31 = vld [vmem:[#allocation5 + $0x50] sm:$0xff]  ;;  %v568_v34 = vld [vmem:[#allocation7 + $0x80] sm:$0xff]  ;;  %s4291_s14 = scalar_lea.hbm %s4341_s6, %s2587_s17  ;;  %p3735_p5 = pneg %p3734_p2 }
  0xa5   : > { %v342_v32 = vld [vmem:[#allocation5 + $0x70] sm:$0xff]  ;;  %2642 = vmatprep.subr.bf16.mxu1 %v2641_v22  ;;  %v2645_v33 = vpack.c.bf16 %v577_v29, %v569_v28  ;;  %v557_v35 = vld [vmem:[#allocation7 + $0x28] sm:$0xff]  ;;  %v576_v37 = vld [vmem:[#allocation7 + $0xc0] sm:$0xff]  ;;  %s3736_s29 = sshll.u32 %s3820_s27, 4  ;;  %s3737_s29 = int_to_ptr.vmem [resolvable:$false] %s3736_s29 }
  0xa6   : > { %2632 = vmatpush1.bf16.msra.mxu0 %v2631_v14  ;;  %v565_v36 = vld [vmem:[#allocation7 + $0x68] sm:$0xff]  ;;  %2644 = vmatpush1.bf16.msra.mxu1 %v2643_v27  ;;  %v2647_v38 = vpack.c.bf16 %v576_v37, %v568_v34  ;;  %v2639_v41 = vpack.c.bf16 %v342_v32, %v338_v31  ;;  %v584_v43 = vld [vmem:[#allocation7 + $0x100] sm:$0xff]  ;;  %s3738_s19 = scalar_lea.vmem %s3737_s29, 256  ;;  %p3739_p10 = scmp.lt.s32.totalorder %s4293_s18, %s3737_s29 }
  0xa7   : > { %2634 = vmatprep.subr.bf16.mxu0 %v2633_v15  ;;  %2646 = vmatprep.subr.bf16.mxu1 %v2645_v33  ;;  %v585_v39 = vld [vmem:[#allocation7 + $0x108] sm:$0xff]  ;;  %v592_v44 = vld [vmem:[#allocation7 + $0x140] sm:$0xff]  ;;  %v2897_v45 = vpack.c.bf16 %v565_v36, %v557_v35  ;;  %p3740_p1 = scmp.lt.s32.totalorder %s3738_s19, %s3732_s10 }
  0xa8   : > { %v593_v40 = vld [vmem:[#allocation7 + $0x148] sm:$0xff]  ;;  %v556_v46 = vld [vmem:[#allocation7 + $0x20] sm:$0xff]  ;;  %v2651_v51 = vpack.c.bf16 %v592_v44, %v584_v43 }
  0xa9   : > { %2570 = vmatmul.mubr.msk.f32.vlgmr.msra.gmra.mrb[0].mxu0 %vm382_vm0, %v327_v25  ;;  %v2649_v42 = vpack.c.bf16 %v593_v40, %v585_v39  ;;  %v564_v47 = vld [vmem:[#allocation7 + $0x60] sm:$0xff]  ;;  %v601_v48 = vld [vmem:[#allocation7 + $0x188] sm:$0xff]  ;;  %p3741_p11 = por %p3740_p1, %p3739_p10 }
  0xaa   : > { %2636 = vmatpush1.bf16.msra.mxu0 %v2635_v26  ;;  %521 = vmatprep.mubr.f32.mxu0 %v3819_v0  ;;  %v573_v49 = vld [vmem:[#allocation7 + $0xa8] sm:$0xff]  ;;  %v600_v54 = vld [vmem:[#allocation7 + $0x180] sm:$0xff]  ;;  %v2899_v56 = vpack.c.bf16 %v564_v47, %v556_v46 }
  0xab   : > { %2638 = vmatprep.subr.bf16.mxu0 %v2637_v30  ;;  %v581_v50 = vld [vmem:[#allocation7 + $0xe8] sm:$0xff]  ;;  %2648 = vmatpush1.bf16.msra.mxu1 %v2647_v38  ;;  %v608_v55 = vld [vmem:[#allocation7 + $0x1c0] sm:$0xff]  ;;  %p3742_p12 = pnand %p3741_p11, %p3735_p5 }
  0xac   : > { %v609_v52 = vld [vmem:[#allocation7 + $0x1c8] sm:$0xff]  ;;  %2650 = vmatprep.subr.bf16.mxu1 %v2649_v42  ;;  %v2901_v59 = vpack.c.bf16 %v581_v50, %v573_v49  ;;  %v572_v60 = vld [vmem:[#allocation7 + $0xa0] sm:$0xff]  ;;  %v2655_v0 = vpack.c.bf16 %v608_v55, %v600_v54 }
  0xad   : > { %v2653_v53 = vpack.c.bf16 %v609_v52, %v601_v48  ;;  %v617_v57 = vld [vmem:[#allocation7 + $0x208] sm:$0xff]  ;;  %v580_v61 = vld [vmem:[#allocation7 + $0xe0] sm:$0xff] }
  0xae   : > { %2640 = vmatpush1.bf16.msra.mxu0 %v2639_v41  ;;  %v625_v58 = vld [vmem:[#allocation7 + $0x248] sm:$0xff]  ;;  %v616_v2 = vld [vmem:[#allocation7 + $0x200] sm:$0xff]  ;;  %v2903_v4 = vpack.c.bf16 %v580_v61, %v572_v60 }
  0xaf   : > { %2898 = vmatprep.subr.bf16.mxu0 %v2897_v45  ;;  %v589_v62 = vld [vmem:[#allocation7 + $0x128] sm:$0xff]  ;;  %2652 = vmatpush1.bf16.msra.mxu1 %v2651_v51  ;;  %v2657_v1 = vpack.c.bf16 %v625_v58, %v617_v57  ;;  %v624_v3 = vld [vmem:[#allocation7 + $0x240] sm:$0xff] }
  0xb0   : > { %v597_v63 = vld [vmem:[#allocation7 + $0x168] sm:$0xff]  ;;  %2654 = vmatprep.subr.bf16.mxu1 %v2653_v53  ;;  %v588_v8 = vld [vmem:[#allocation7 + $0x120] sm:$0xff]  ;;  %v2659_v12 = vpack.c.bf16 %v624_v3, %v616_v2 }
  0xb1   : > { %2571 = vmatmul.mubr.msk.f32.vlgmr.msra.gmra.mrb[2].mxu0 %vm382_vm0, %v327_v25  ;;  %v633_v5 = vld [vmem:[#allocation7 + $0x288] sm:$0xff]  ;;  %v2905_v7 = vpack.c.bf16 %v597_v63, %v589_v62  ;;  %v596_v9 = vld [vmem:[#allocation7 + $0x160] sm:$0xff] }
  0xb2   : > { %2900 = vmatpush1.bf16.msra.mxu0 %v2899_v56  ;;  %v641_v6 = vld [vmem:[#allocation7 + $0x2c8] sm:$0xff]  ;;  %v632_v14 = vld [vmem:[#allocation7 + $0x280] sm:$0xff]  ;;  %v2907_v16 = vpack.c.bf16 %v596_v9, %v588_v8 }
  0xb3   : > { %2902 = vmatprep.subr.bf16.mxu0 %v2901_v59  ;;  %v605_v10 = vld [vmem:[#allocation7 + $0x1a8] sm:$0xff]  ;;  %2656 = vmatpush1.bf16.msra.mxu1 %v2655_v0  ;;  %v2661_v13 = vpack.c.bf16 %v641_v6, %v633_v5  ;;  %v640_v15 = vld [vmem:[#allocation7 + $0x2c0] sm:$0xff] }
  0xb4   : > { %v613_v11 = vld [vmem:[#allocation7 + $0x1e8] sm:$0xff]  ;;  %2658 = vmatprep.subr.bf16.mxu1 %v2657_v1  ;;  %v604_v20 = vld [vmem:[#allocation7 + $0x1a0] sm:$0xff]  ;;  %v2663_v24 = vpack.c.bf16 %v640_v15, %v632_v14 }
  0xb5   : > { %v649_v17 = vld [vmem:[#allocation7 + $0x308] sm:$0xff]  ;;  %v2909_v19 = vpack.c.bf16 %v613_v11, %v605_v10  ;;  %v612_v21 = vld [vmem:[#allocation7 + $0x1e0] sm:$0xff] }
  0xb6   : > { %2904 = vmatpush1.bf16.msra.mxu0 %v2903_v4  ;;  %v657_v18 = vld [vmem:[#allocation7 + $0x348] sm:$0xff]  ;;  %v648_v26 = vld [vmem:[#allocation7 + $0x300] sm:$0xff]  ;;  %v2911_v28 = vpack.c.bf16 %v612_v21, %v604_v20 }
  0xb7   : > { %2906 = vmatprep.subr.bf16.mxu0 %v2905_v7  ;;  %v621_v22 = vld [vmem:[#allocation7 + $0x228] sm:$0xff]  ;;  %2660 = vmatpush1.bf16.msra.mxu1 %v2659_v12  ;;  %v2665_v25 = vpack.c.bf16 %v657_v18, %v649_v17  ;;  %v656_v27 = vld [vmem:[#allocation7 + $0x340] sm:$0xff] }
  0xb8   : > { %v629_v23 = vld [vmem:[#allocation7 + $0x268] sm:$0xff]  ;;  %2662 = vmatprep.subr.bf16.mxu1 %v2661_v13  ;;  %v620_v32 = vld [vmem:[#allocation7 + $0x220] sm:$0xff]  ;;  %v2667_v36 = vpack.c.bf16 %v656_v27, %v648_v26 }
  0xb9   : > { %v665_v29 = vld [vmem:[#allocation7 + $0x388] sm:$0xff]  ;;  %v2913_v31 = vpack.c.bf16 %v629_v23, %v621_v22  ;;  %v628_v33 = vld [vmem:[#allocation7 + $0x260] sm:$0xff] }
  0xba   : > { %2908 = vmatpush1.bf16.msra.mxu0 %v2907_v16  ;;  %v673_v30 = vld [vmem:[#allocation7 + $0x3c8] sm:$0xff]  ;;  %v664_v38 = vld [vmem:[#allocation7 + $0x380] sm:$0xff]  ;;  %v2915_v40 = vpack.c.bf16 %v628_v33, %v620_v32 }
  0xbb   : > { %2910 = vmatprep.subr.bf16.mxu0 %v2909_v19  ;;  %v637_v34 = vld [vmem:[#allocation7 + $0x2a8] sm:$0xff]  ;;  %2664 = vmatpush1.bf16.msra.mxu1 %v2663_v24  ;;  %v2669_v37 = vpack.c.bf16 %v673_v30, %v665_v29  ;;  %v672_v39 = vld [vmem:[#allocation7 + $0x3c0] sm:$0xff] }
  0xbc   : > { %v645_v35 = vld [vmem:[#allocation7 + $0x2e8] sm:$0xff]  ;;  %2666 = vmatprep.subr.bf16.mxu1 %v2665_v25  ;;  %v636_v44 = vld [vmem:[#allocation7 + $0x2a0] sm:$0xff]  ;;  %v2671_v48 = vpack.c.bf16 %v672_v39, %v664_v38 }
  0xbd   : > { %v681_v41 = vld [vmem:[#allocation7 + $0x408] sm:$0xff]  ;;  %v2917_v43 = vpack.c.bf16 %v645_v35, %v637_v34  ;;  %v644_v45 = vld [vmem:[#allocation7 + $0x2e0] sm:$0xff] }
  0xbe   : > { %2912 = vmatpush1.bf16.msra.mxu0 %v2911_v28  ;;  %v689_v42 = vld [vmem:[#allocation7 + $0x448] sm:$0xff]  ;;  %v680_v50 = vld [vmem:[#allocation7 + $0x400] sm:$0xff]  ;;  %v2919_v52 = vpack.c.bf16 %v644_v45, %v636_v44 }
  0xbf   : > { %2914 = vmatprep.subr.bf16.mxu0 %v2913_v31  ;;  %v653_v46 = vld [vmem:[#allocation7 + $0x328] sm:$0xff]  ;;  %2668 = vmatpush1.bf16.msra.mxu1 %v2667_v36  ;;  %v2673_v49 = vpack.c.bf16 %v689_v42, %v681_v41  ;;  %v688_v51 = vld [vmem:[#allocation7 + $0x440] sm:$0xff] }
  0xc0   : > { %v661_v47 = vld [vmem:[#allocation7 + $0x368] sm:$0xff]  ;;  %2670 = vmatprep.subr.bf16.mxu1 %v2669_v37  ;;  %v652_v56 = vld [vmem:[#allocation7 + $0x320] sm:$0xff]  ;;  %v2675_v60 = vpack.c.bf16 %v688_v51, %v680_v50 }
  0xc1   : > { %v697_v53 = vld [vmem:[#allocation7 + $0x488] sm:$0xff]  ;;  %v2921_v55 = vpack.c.bf16 %v661_v47, %v653_v46  ;;  %v660_v57 = vld [vmem:[#allocation7 + $0x360] sm:$0xff] }
  0xc2   : > { %2916 = vmatpush1.bf16.msra.mxu0 %v2915_v40  ;;  %v705_v54 = vld [vmem:[#allocation7 + $0x4c8] sm:$0xff]  ;;  %v696_v62 = vld [vmem:[#allocation7 + $0x480] sm:$0xff]  ;;  %v2923_v0 = vpack.c.bf16 %v660_v57, %v652_v56 }
  0xc3   : > { %2918 = vmatprep.subr.bf16.mxu0 %v2917_v43  ;;  %v669_v58 = vld [vmem:[#allocation7 + $0x3a8] sm:$0xff]  ;;  %2672 = vmatpush1.bf16.msra.mxu1 %v2671_v48  ;;  %v2677_v61 = vpack.c.bf16 %v705_v54, %v697_v53  ;;  %v704_v63 = vld [vmem:[#allocation7 + $0x4c0] sm:$0xff] }
  0xc4   : > { %v677_v59 = vld [vmem:[#allocation7 + $0x3e8] sm:$0xff]  ;;  %2674 = vmatprep.subr.bf16.mxu1 %v2673_v49  ;;  %v668_v4 = vld [vmem:[#allocation7 + $0x3a0] sm:$0xff]  ;;  %v2679_v8 = vpack.c.bf16 %v704_v63, %v696_v62 }
  0xc5   : > { %v713_v1 = vld [vmem:[#allocation7 + $0x508] sm:$0xff]  ;;  %v2925_v3 = vpack.c.bf16 %v677_v59, %v669_v58  ;;  %v676_v5 = vld [vmem:[#allocation7 + $0x3e0] sm:$0xff] }
  0xc6   : > { %2920 = vmatpush1.bf16.msra.mxu0 %v2919_v52  ;;  %v721_v2 = vld [vmem:[#allocation7 + $0x548] sm:$0xff]  ;;  %v712_v10 = vld [vmem:[#allocation7 + $0x500] sm:$0xff]  ;;  %v2927_v12 = vpack.c.bf16 %v676_v5, %v668_v4 }
  0xc7   : > { %2922 = vmatprep.subr.bf16.mxu0 %v2921_v55  ;;  %v685_v6 = vld [vmem:[#allocation7 + $0x428] sm:$0xff]  ;;  %2676 = vmatpush1.bf16.msra.mxu1 %v2675_v60  ;;  %v2681_v9 = vpack.c.bf16 %v721_v2, %v713_v1  ;;  %v720_v11 = vld [vmem:[#allocation7 + $0x540] sm:$0xff] }
  0xc8   : > { %v693_v7 = vld [vmem:[#allocation7 + $0x468] sm:$0xff]  ;;  %2678 = vmatprep.subr.bf16.mxu1 %v2677_v61  ;;  %v684_v14 = vld [vmem:[#allocation7 + $0x420] sm:$0xff]  ;;  %v2683_v18 = vpack.c.bf16 %v720_v11, %v712_v10 }
  0xc9   : > { %v2929_v13 = vpack.c.bf16 %v693_v7, %v685_v6  ;;  %v692_v15 = vld [vmem:[#allocation7 + $0x460] sm:$0xff]  ;;  %v701_v16 = vld [vmem:[#allocation7 + $0x4a8] sm:$0xff] }
  0xca   : > { %2924 = vmatpush1.bf16.msra.mxu0 %v2923_v0  ;;  %v709_v17 = vld [vmem:[#allocation7 + $0x4e8] sm:$0xff]  ;;  %v2931_v19 = vpack.c.bf16 %v692_v15, %v684_v14  ;;  %v700_v21 = vld [vmem:[#allocation7 + $0x4a0] sm:$0xff] }
  0xcb   : > { %2926 = vmatprep.subr.bf16.mxu0 %v2925_v3  ;;  %2680 = vmatpush1.bf16.msra.mxu1 %v2679_v8  ;;  %v2933_v20 = vpack.c.bf16 %v709_v17, %v701_v16  ;;  %v708_v22 = vld [vmem:[#allocation7 + $0x4e0] sm:$0xff]  ;;  %v717_v23 = vld [vmem:[#allocation7 + $0x528] sm:$0xff] }
  0xcc   : > { %2682 = vmatprep.subr.bf16.mxu1 %v2681_v9  ;;  %v725_v24 = vld [vmem:[#allocation7 + $0x568] sm:$0xff]  ;;  %v2935_v25 = vpack.c.bf16 %v708_v22, %v700_v21  ;;  %v716_v27 = vld [vmem:[#allocation7 + $0x520] sm:$0xff] }
  0xcd   : > { %v2937_v26 = vpack.c.bf16 %v725_v24, %v717_v23  ;;  %v724_v28 = vld [vmem:[#allocation7 + $0x560] sm:$0xff]  ;;  %v729_v30 = vld [vmem:[#allocation7 + $0x588] sm:$0xff] }
  0xce   : > { %2928 = vmatpush1.bf16.msra.mxu0 %v2927_v12  ;;  %v2939_v29 = vpack.c.bf16 %v724_v28, %v716_v27  ;;  %v737_v31 = vld [vmem:[#allocation7 + $0x5c8] sm:$0xff]  ;;  %v728_v35 = vld [vmem:[#allocation7 + $0x580] sm:$0xff] }
  0xcf   : > { %2930 = vmatprep.subr.bf16.mxu0 %v2929_v13  ;;  %2684 = vmatpush1.bf16.msra.mxu1 %v2683_v18  ;;  %v733_v32 = vld [vmem:[#allocation7 + $0x5a8] sm:$0xff]  ;;  %v2685_v33 = vpack.c.bf16 %v737_v31, %v729_v30  ;;  %v736_v36 = vld [vmem:[#allocation7 + $0x5c0] sm:$0xff] }
  0xd0   : > { %v741_v34 = vld [vmem:[#allocation7 + $0x5e8] sm:$0xff]  ;;  %v2687_v38 = vpack.c.bf16 %v736_v36, %v728_v35  ;;  %v732_v39 = vld [vmem:[#allocation7 + $0x5a0] sm:$0xff] }
  0xd1   : > { %v2941_v37 = vpack.c.bf16 %v741_v34, %v733_v32  ;;  %v740_v40 = vld [vmem:[#allocation7 + $0x5e0] sm:$0xff]  ;;  %2686 = vmatprep.subr.bf16.mxu1 %v2685_v33  ;;  %v745_v42 = vld [vmem:[#allocation7 + $0x608] sm:$0xff]  ;;  %v346_v32 = vlaneseq }
  0xd2   : > { %2932 = vmatpush1.bf16.msra.mxu0 %v2931_v19  ;;  %v2943_v41 = vpack.c.bf16 %v740_v40, %v732_v39  ;;  %v753_v43 = vld [vmem:[#allocation7 + $0x648] sm:$0xff]  ;;  %v744_v47 = vld [vmem:[#allocation7 + $0x600] sm:$0xff] }
  0xd3   : > { %2934 = vmatprep.subr.bf16.mxu0 %v2933_v20  ;;  %2688 = vmatpush1.bf16.msra.mxu1 %v2687_v38  ;;  %v749_v44 = vld [vmem:[#allocation7 + $0x628] sm:$0xff]  ;;  %v2689_v45 = vpack.c.bf16 %v753_v43, %v745_v42  ;;  %v752_v48 = vld [vmem:[#allocation7 + $0x640] sm:$0xff]  ;;  %v4091_v33 = vshrl.u32 %v346_v32, 7 }
  0xd4   : > { %v757_v46 = vld [vmem:[#allocation7 + $0x668] sm:$0xff]  ;;  %v2691_v50 = vpack.c.bf16 %v752_v48, %v744_v47  ;;  %v748_v51 = vld [vmem:[#allocation7 + $0x620] sm:$0xff] }
  0xd5   : > { %v2945_v49 = vpack.c.bf16 %v757_v46, %v749_v44  ;;  %v756_v52 = vld [vmem:[#allocation7 + $0x660] sm:$0xff]  ;;  %2690 = vmatprep.subr.bf16.mxu1 %v2689_v45  ;;  %v761_v54 = vld [vmem:[#allocation7 + $0x688] sm:$0xff]  ;;  %v4094_v34 = vsub.s32 0, %v4091_v33  ;;  %v352_v36 = vsub.s32 4, %v4091_v33 }
  0xd6   : > { %2936 = vmatpush1.bf16.msra.mxu0 %v2935_v25  ;;  %v2947_v53 = vpack.c.bf16 %v756_v52, %v748_v51  ;;  %v769_v55 = vld [vmem:[#allocation7 + $0x6c8] sm:$0xff]  ;;  %v760_v59 = vld [vmem:[#allocation7 + $0x680] sm:$0xff] }
  0xd7   : > { %2938 = vmatprep.subr.bf16.mxu0 %v2937_v26  ;;  %2692 = vmatpush1.bf16.msra.mxu1 %v2691_v50  ;;  %v765_v56 = vld [vmem:[#allocation7 + $0x6a8] sm:$0xff]  ;;  %v2693_v57 = vpack.c.bf16 %v769_v55, %v761_v54  ;;  %v768_v60 = vld [vmem:[#allocation7 + $0x6c0] sm:$0xff] }
  0xd8   : > { %v773_v58 = vld [vmem:[#allocation7 + $0x6e8] sm:$0xff]  ;;  %v2695_v62 = vpack.c.bf16 %v768_v60, %v760_v59  ;;  %v764_v63 = vld [vmem:[#allocation7 + $0x6a0] sm:$0xff] }
  0xd9   : > { %v2949_v61 = vpack.c.bf16 %v773_v58, %v765_v56  ;;  %v772_v0 = vld [vmem:[#allocation7 + $0x6e0] sm:$0xff]  ;;  %v777_v1 = vld [vmem:[#allocation7 + $0x708] sm:$0xff]  ;;  %2694 = vmatprep.subr.bf16.mxu1 %v2693_v57 }
  0xda   : > { %2940 = vmatpush1.bf16.msra.mxu0 %v2939_v29  ;;  %v2951_v2 = vpack.c.bf16 %v772_v0, %v764_v63  ;;  %v785_v3 = vld [vmem:[#allocation7 + $0x748] sm:$0xff]  ;;  %v776_v8 = vld [vmem:[#allocation7 + $0x700] sm:$0xff] }
  0xdb   : > { %2942 = vmatprep.subr.bf16.mxu0 %v2941_v37  ;;  %v781_v4 = vld [vmem:[#allocation7 + $0x728] sm:$0xff]  ;;  %2696 = vmatpush1.bf16.msra.mxu1 %v2695_v62  ;;  %v2697_v6 = vpack.c.bf16 %v785_v3, %v777_v1  ;;  %v784_v9 = vld [vmem:[#allocation7 + $0x740] sm:$0xff] }
  0xdc   : > { %v789_v5 = vld [vmem:[#allocation7 + $0x768] sm:$0xff]  ;;  %v780_v10 = vld [vmem:[#allocation7 + $0x720] sm:$0xff]  ;;  %v2699_v11 = vpack.c.bf16 %v784_v9, %v776_v8 }
  0xdd   : > { %v2953_v7 = vpack.c.bf16 %v789_v5, %v781_v4  ;;  %v788_v12 = vld [vmem:[#allocation7 + $0x760] sm:$0xff]  ;;  %v793_v13 = vld [vmem:[#allocation7 + $0x788] sm:$0xff]  ;;  %2698 = vmatprep.subr.bf16.mxu1 %v2697_v6 }
  0xde   : > { %2944 = vmatpush1.bf16.msra.mxu0 %v2943_v41  ;;  %v801_v14 = vld [vmem:[#allocation7 + $0x7c8] sm:$0xff]  ;;  %v2955_v15 = vpack.c.bf16 %v788_v12, %v780_v10  ;;  %v792_v19 = vld [vmem:[#allocation7 + $0x780] sm:$0xff] }
  0xdf   : > { %2946 = vmatprep.subr.bf16.mxu0 %v2945_v49  ;;  %v2701_v16 = vpack.c.bf16 %v801_v14, %v793_v13  ;;  %v797_v17 = vld [vmem:[#allocation7 + $0x7a8] sm:$0xff]  ;;  %v800_v21 = vld [vmem:[#allocation7 + $0x7c0] sm:$0xff]  ;;  %2700 = vmatpush1.bf16.msra.mxu1 %v2699_v11 }
  0xe0   : > { %v805_v18 = vld [vmem:[#allocation7 + $0x7e8] sm:$0xff]  ;;  %v796_v22 = vld [vmem:[#allocation7 + $0x7a0] sm:$0xff]  ;;  %v2703_v24 = vpack.c.bf16 %v800_v21, %v792_v19 }
  0xe1   : > { %v2957_v20 = vpack.c.bf16 %v805_v18, %v797_v17  ;;  %v804_v23 = vld [vmem:[#allocation7 + $0x7e0] sm:$0xff]  ;;  %2702 = vmatprep.subr.bf16.mxu1 %v2701_v16  ;;  %v809_v26 = vld [vmem:[#allocation7 + $0x808] sm:$0xff] }
  0xe2   : > { %2948 = vmatpush1.bf16.msra.mxu0 %v2947_v53  ;;  %v2959_v25 = vpack.c.bf16 %v804_v23, %v796_v22  ;;  %v817_v27 = vld [vmem:[#allocation7 + $0x848] sm:$0xff]  ;;  %v323_v35 = vld [vmem:[#allocation10] sm:$0xff] }
  0xe3   : > { %2950 = vmatprep.subr.bf16.mxu0 %v2949_v61  ;;  %2704 = vmatpush1.bf16.msra.mxu1 %v2703_v24  ;;  %v813_v28 = vld [vmem:[#allocation7 + $0x828] sm:$0xff]  ;;  %v2705_v29 = vpack.c.bf16 %v817_v27, %v809_v26  ;;  %v349_v37 = vrot.slane %v323_v35, %v4094_v34  ;;  %v353_v38 = vrot.slane %v323_v35, %v352_v36  ;;  %v808_v57 = vld [vmem:[#allocation7 + $0x800] sm:$0xff] }
  0xe4   : > { %v821_v30 = vld [vmem:[#allocation7 + $0x868] sm:$0xff]  ;;  %v816_v58 = vld [vmem:[#allocation7 + $0x840] sm:$0xff] }
  0xe5   : > { %v2961_v31 = vpack.c.bf16 %v821_v30, %v813_v28  ;;  %2706 = vmatprep.subr.bf16.mxu1 %v2705_v29  ;;  %v369_v39 = vrot.slane %v349_v37, %v4094_v34  ;;  %v373_v40 = vrot.slane %v353_v38, %v4094_v34  ;;  %v4100_v41 = vld [vmem:[#allocation10 + $0x8] sm:$0xff]  ;;  %v812_v60 = vld [vmem:[#allocation7 + $0x820] sm:$0xff]  ;;  %v2707_v5 = vpack.c.bf16 %v816_v58, %v808_v57 }
  0xe6   : > { %2952 = vmatpush1.bf16.msra.mxu0 %v2951_v2  ;;  %v361_v46 = vrot.slane %v4100_v41, %v352_v36  ;;  %v820_v61 = vld [vmem:[#allocation7 + $0x860] sm:$0xff]  ;;  %v825_v62 = vld [vmem:[#allocation7 + $0x888] sm:$0xff] }
  0xe7   : > { %2954 = vmatprep.subr.bf16.mxu0 %v2953_v7  ;;  %v833_v1 = vld [vmem:[#allocation7 + $0x8c8] sm:$0xff]  ;;  %v2963_v6 = vpack.c.bf16 %v820_v61, %v812_v60  ;;  %v824_v7 = vld [vmem:[#allocation7 + $0x880] sm:$0xff] }
  0xe8   : > { %v381_v51 = vrot.slane %v361_v46, %v4094_v34  ;;  %v829_v2 = vld [vmem:[#allocation7 + $0x8a8] sm:$0xff]  ;;  %v832_v8 = vld [vmem:[#allocation7 + $0x8c0] sm:$0xff]  ;;  %v2709_v10 = vpack.c.bf16 %v833_v1, %v825_v62 }
  0xe9   : > { %v837_v3 = vld [vmem:[#allocation7 + $0x8e8] sm:$0xff]  ;;  %v828_v12 = vld [vmem:[#allocation7 + $0x8a0] sm:$0xff]  ;;  %v2711_v19 = vpack.c.bf16 %v832_v8, %v824_v7 }
  0xea   : > { %2956 = vmatpush1.bf16.msra.mxu0 %v2955_v15  ;;  %v2965_v11 = vpack.c.bf16 %v837_v3, %v829_v2  ;;  %v836_v13 = vld [vmem:[#allocation7 + $0x8e0] sm:$0xff]  ;;  %v841_v14 = vld [vmem:[#allocation7 + $0x908] sm:$0xff] }
  0xeb   : > { %2958 = vmatprep.subr.bf16.mxu0 %v2957_v20  ;;  %v849_v16 = vld [vmem:[#allocation7 + $0x948] sm:$0xff]  ;;  %v2967_v20 = vpack.c.bf16 %v836_v13, %v828_v12  ;;  %v840_v21 = vld [vmem:[#allocation7 + $0x900] sm:$0xff] }
  0xec   : > { %v845_v17 = vld [vmem:[#allocation7 + $0x928] sm:$0xff]  ;;  %v848_v22 = vld [vmem:[#allocation7 + $0x940] sm:$0xff]  ;;  %v2713_v23 = vpack.c.bf16 %v849_v16, %v841_v14 }
  0xed   : > { %v853_v18 = vld [vmem:[#allocation7 + $0x968] sm:$0xff]  ;;  %v852_v26 = vld [vmem:[#allocation7 + $0x960] sm:$0xff]  ;;  %v2715_v35 = vpack.c.bf16 %v848_v22, %v840_v21 }
  0xee   : > { %2960 = vmatpush1.bf16.msra.mxu0 %v2959_v25  ;;  %v2969_v24 = vpack.c.bf16 %v853_v18, %v845_v17  ;;  %v844_v25 = vld [vmem:[#allocation7 + $0x920] sm:$0xff]  ;;  %v857_v27 = vld [vmem:[#allocation7 + $0x988] sm:$0xff] }
  0xef   : > { %2962 = vmatprep.subr.bf16.mxu0 %v2961_v31  ;;  %v865_v29 = vld [vmem:[#allocation7 + $0x9c8] sm:$0xff]  ;;  %v2971_v36 = vpack.c.bf16 %v852_v26, %v844_v25  ;;  %v856_v37 = vld [vmem:[#allocation7 + $0x980] sm:$0xff] }
  0xf0   : > { %v861_v30 = vld [vmem:[#allocation7 + $0x9a8] sm:$0xff]  ;;  %v864_v38 = vld [vmem:[#allocation7 + $0x9c0] sm:$0xff] }
  0xf1   : > { %v869_v31 = vld [vmem:[#allocation7 + $0x9e8] sm:$0xff]  ;;  %v876_v57 = vld [vmem:[#allocation7 + $0xa20] sm:$0xff] }
  0xf2   : > { %v881_v46 = vld [vmem:[#allocation7 + $0xa48] sm:$0xff]  ;;  %v896_v1 = vld [vmem:[#allocation7 + $0xac0] sm:$0xff] }
  0xf3   : > { %v889_v58 = vld [vmem:[#allocation7 + $0xa88] sm:$0xff]  ;;  %v904_v13 = vld [vmem:[#allocation7 + $0xb00] sm:$0xff] }
  0xf4   : > { %v893_v60 = vld [vmem:[#allocation7 + $0xaa8] sm:$0xff]  ;;  %v912_v14 = vld [vmem:[#allocation7 + $0xb40] sm:$0xff] }
  0xf5   : > { %v901_v61 = vld [vmem:[#allocation7 + $0xae8] sm:$0xff]  ;;  %v908_v18 = vld [vmem:[#allocation7 + $0xb20] sm:$0xff] }
  0xf6   : > { %v2981_v3 = vpack.c.bf16 %v901_v61, %v893_v60  ;;  %v913_v7 = vld [vmem:[#allocation7 + $0xb48] sm:$0xff]  ;;  %v920_v26 = vld [vmem:[#allocation7 + $0xb80] sm:$0xff] }
  0xf7   : > { %v909_v8 = vld [vmem:[#allocation7 + $0xb28] sm:$0xff]  ;;  %v956_v60 = vld [vmem:[#allocation7 + $0xca0] sm:$0xff] }
  0xf8   : > { %v929_v21 = vld [vmem:[#allocation7 + $0xbc8] sm:$0xff]  ;;  %v964_v61 = vld [vmem:[#allocation7 + $0xce0] sm:$0xff] }
  0xf9   : > { %v925_v22 = vld [vmem:[#allocation7 + $0xba8] sm:$0xff] }
 0x17c   : > { %v452_v42 = vpop.f32.mrb[0].mxu0 }
 0x17d   : > { %v453_v43 = vadd.f32 %v452_v42, %v369_v39  ;;  %v454_v44 = vpop.f32.mrb[1].mxu0  ;;  %v2717_v39 = vpack.c.bf16 %v865_v29, %v857_v27  ;;  %v860_v42 = vld [vmem:[#allocation7 + $0x9a0] sm:$0xff] }
 0x17e   : > { %v455_v45 = vadd.f32 %v454_v44, %v373_v40  ;;  %v2973_v40 = vpack.c.bf16 %v869_v31, %v861_v30  ;;  %v873_v44 = vld [vmem:[#allocation7 + $0xa08] sm:$0xff]  ;;  %v928_v27 = vld [vmem:[#allocation7 + $0xbc0] sm:$0xff] }
 0x17f   : > { %v532_v47 = vmin.f32 %v453_v43, 0.0  ;;  %vm528_vm2 = vcmp.gt.f32.partialorder %v453_v43, 0.0  ;;  %v924_v30 = vld [vmem:[#allocation7 + $0xba0] sm:$0xff] }
 0x180   : > { %v533_v48 = vmin.f32 %v455_v45, 0.0  ;;  %vm529_vm1 = vcmp.gt.f32.partialorder %v455_v45, 0.0  ;;  %v932_v31 = vld [vmem:[#allocation7 + $0xbe0] sm:$0xff] }
 0x181   : > { %v536_v49 = vmul.f32 1.442695, %v532_v47  ;;  %v877_v47 = vld [vmem:[#allocation7 + $0xa28] sm:$0xff] }
 0x182   : > { %v538_v50 = vmul.f32 1.442695, %v533_v48  ;;  %v885_v48 = vld [vmem:[#allocation7 + $0xa68] sm:$0xff] }
 0x183   : > { %3559 = vpow2.f32 %v536_v49  ;;  %v2719_v49 = vpack.c.bf16 %v864_v38, %v856_v37  ;;  %v949_v37 = vld [vmem:[#allocation7 + $0xc68] sm:$0xff]  ;;  %v2735_v38 = vpack.c.bf16 %v928_v27, %v920_v26 }
 0x184   : > { %3561 = vpow2.f32 %v538_v50  ;;  %v4104_v52 = vpop.f32.mrb[2].mxu0  ;;  %v1005_v26 = vld [vmem:[#allocation7 + $0xe28] sm:$0xff] }
 0x185   : > { %v525_v53 = vpop.f32.mrb[3].mxu0  ;;  %v1013_v27 = vld [vmem:[#allocation7 + $0xe68] sm:$0xff] }
 0x186   : > { %v4106_v54 = vadd.f32 %v525_v53, %v381_v51  ;;  %v872_v51 = vld [vmem:[#allocation7 + $0xa00] sm:$0xff] }
 0x187   : > { %v880_v53 = vld [vmem:[#allocation7 + $0xa40] sm:$0xff] }
 0x188   : > { %v535_v55 = vmin.f32 %v4106_v54, 0.0  ;;  %vm531_vm3 = vcmp.gt.f32.partialorder %v4106_v54, 0.0  ;;  %v2723_v62 = vpack.c.bf16 %v880_v53, %v872_v51  ;;  %v957_v51 = vld [vmem:[#allocation7 + $0xca8] sm:$0xff] }
 0x189   : > { %v965_v53 = vld [vmem:[#allocation7 + $0xce8] sm:$0xff] }
 0x18a   : > { %v542_v56 = vmul.f32 1.442695, %v535_v55  ;;  %v2721_v55 = vpack.c.bf16 %v881_v46, %v873_v44 }
 0x18c   : > { %3563 = vpow2.f32 %v542_v56  ;;  %v2977_v56 = vpack.c.bf16 %v885_v48, %v877_v47  ;;  %v940_v47 = vld [vmem:[#allocation7 + $0xc20] sm:$0xff] }
 0x18d   : > { %v3560_v59 = vpop.eup %3559  ;;  %v948_v48 = vld [vmem:[#allocation7 + $0xc60] sm:$0xff] }
 0x18e   : > { %v3562_v63 = vpop.eup %3561  ;;  %v2572_v0 = vadd.f32 -1.0, %v3560_v59  ;;  %v897_v59 = vld [vmem:[#allocation7 + $0xac8] sm:$0xff] }
 0x18f   : > { %v2573_v4 = vadd.f32 -1.0, %v3562_v63  ;;  %v2725_v2 = vpack.c.bf16 %v897_v59, %v889_v58  ;;  %v2997_v59 = vpack.c.bf16 %v965_v53, %v957_v51  ;;  %v1020_v51 = vld [vmem:[#allocation7 + $0xea0] sm:$0xff] }
 0x190   : > { %v4113_v15 = vsel %vm528_vm2, %v453_v43, %v2572_v0  ;;  %v868_v43 = vld [vmem:[#allocation7 + $0x9e0] sm:$0xff] }
 0x191   : > { %v4109_v9 = vsel %vm529_vm1, %v455_v45, %v2573_v4  ;;  %v2975_v50 = vpack.c.bf16 %v868_v43, %v860_v42  ;;  %v888_v0 = vld [vmem:[#allocation7 + $0xa80] sm:$0xff]  ;;  %v357_v43 = vrot.slane %v4100_v41, %v4094_v34 }
 0x192   : > { %1202 = vmatprep.mubr.f32.mxu1 %v4109_v9  ;;  %1486 = vmatprep.mubr.f32.mxu0 %v4109_v9  ;;  %v892_v4 = vld [vmem:[#allocation7 + $0xaa0] sm:$0xff] }
 0x193   : > { %1203 = vmatmul.mubr.f32.vlgmr.msra.gmra.mrb[0].mxu1 %v4113_v15  ;;  %1487 = vmatmul.mubr.f32.vlgmr.msra.gmra.mrb[4].mxu0 %v4113_v15  ;;  %v944_v42 = vld [vmem:[#allocation7 + $0xc40] sm:$0xff]  ;;  %v377_v58 = vrot.slane %v357_v43, %v4094_v34  ;;  %v1029_v43 = vld [vmem:[#allocation7 + $0xee8] sm:$0xff] }
 0x194   : > { %2708 = vmatpush1.bf16.msra.mxu1 %v2707_v5  ;;  %2964 = vmatpush1.bf16.msra.mxu0 %v2963_v6  ;;  %v900_v5 = vld [vmem:[#allocation7 + $0xae0] sm:$0xff]  ;;  %v905_v6 = vld [vmem:[#allocation7 + $0xb08] sm:$0xff] }
 0x195   : > { %2710 = vmatprep.subr.bf16.mxu1 %v2709_v10  ;;  %2966 = vmatprep.subr.bf16.mxu0 %v2965_v11  ;;  %v917_v10 = vld [vmem:[#allocation7 + $0xb68] sm:$0xff]  ;;  %v2727_v11 = vpack.c.bf16 %v896_v1, %v888_v0  ;;  %v2983_v12 = vpack.c.bf16 %v900_v5, %v892_v4  ;;  %v2729_v16 = vpack.c.bf16 %v913_v7, %v905_v6  ;;  %v968_v4 = vld [vmem:[#allocation7 + $0xd00] sm:$0xff] }
 0x196   : > { %v3564_v28 = vpop.eup %3563  ;;  %v2985_v17 = vpack.c.bf16 %v917_v10, %v909_v8  ;;  %v973_v0 = vld [vmem:[#allocation7 + $0xd28] sm:$0xff]  ;;  %v976_v5 = vld [vmem:[#allocation7 + $0xd40] sm:$0xff]  ;;  %v4127_v6 = vadd.f32 %v4104_v52, %v377_v58 }
 0x197   : > { %v2575_v32 = vadd.f32 -1.0, %v3564_v28  ;;  %v981_v1 = vld [vmem:[#allocation7 + $0xd68] sm:$0xff]  ;;  %v972_v8 = vld [vmem:[#allocation7 + $0xd20] sm:$0xff] }
 0x198   : > { %2712 = vmatpush1.bf16.msra.mxu1 %v2711_v19  ;;  %2968 = vmatpush1.bf16.msra.mxu0 %v2967_v20  ;;  %v916_v19 = vld [vmem:[#allocation7 + $0xb60] sm:$0xff]  ;;  %v921_v20 = vld [vmem:[#allocation7 + $0xb88] sm:$0xff]  ;;  %v3001_v7 = vpack.c.bf16 %v981_v1, %v973_v0  ;;  %vm530_vm4 = vcmp.gt.f32.partialorder %v4127_v6, 0.0 }
 0x199   : > { %2714 = vmatprep.subr.bf16.mxu1 %v2713_v23  ;;  %2970 = vmatprep.subr.bf16.mxu0 %v2969_v24  ;;  %v4119_v45 = vsel %vm531_vm3, %v4106_v54, %v2575_v32  ;;  %v884_v54 = vld [vmem:[#allocation7 + $0xa60] sm:$0xff]  ;;  %v933_v23 = vld [vmem:[#allocation7 + $0xbe8] sm:$0xff]  ;;  %v2731_v24 = vpack.c.bf16 %v912_v14, %v904_v13  ;;  %v2987_v25 = vpack.c.bf16 %v916_v19, %v908_v18 }
 0x19a   : > { %1273 = vmatprep.mubr.f32.mxu1 %v4119_v45  ;;  %1557 = vmatprep.mubr.f32.mxu0 %v4119_v45  ;;  %v2979_v63 = vpack.c.bf16 %v884_v54, %v876_v57  ;;  %v2733_v28 = vpack.c.bf16 %v929_v21, %v921_v20  ;;  %v2989_v29 = vpack.c.bf16 %v933_v23, %v925_v22  ;;  %v937_v32 = vld [vmem:[#allocation7 + $0xc08] sm:$0xff]  ;;  %v952_v57 = vld [vmem:[#allocation7 + $0xc80] sm:$0xff]  ;;  %v534_v20 = vmin.f32 %v4127_v6, 0.0 }
 0x19b   : > { %v960_v54 = vld [vmem:[#allocation7 + $0xcc0] sm:$0xff]  ;;  %v989_v13 = vld [vmem:[#allocation7 + $0xda8] sm:$0xff] }
 0x19c   : > { %2716 = vmatpush1.bf16.msra.mxu1 %v2715_v35  ;;  %2972 = vmatpush1.bf16.msra.mxu0 %v2971_v36  ;;  %v945_v35 = vld [vmem:[#allocation7 + $0xc48] sm:$0xff]  ;;  %v980_v10 = vld [vmem:[#allocation7 + $0xd60] sm:$0xff] }
 0x19d   : > { %2718 = vmatprep.subr.bf16.mxu1 %v2717_v39  ;;  %2974 = vmatprep.subr.bf16.mxu0 %v2973_v40  ;;  %v941_v36 = vld [vmem:[#allocation7 + $0xc28] sm:$0xff]  ;;  %v2991_v39 = vpack.c.bf16 %v932_v31, %v924_v30  ;;  %v936_v40 = vld [vmem:[#allocation7 + $0xc00] sm:$0xff]  ;;  %v2737_v44 = vpack.c.bf16 %v945_v35, %v937_v32  ;;  %v540_v32 = vmul.f32 1.442695, %v534_v20 }
 0x19e   : > { %v2993_v46 = vpack.c.bf16 %v949_v37, %v941_v36  ;;  %v997_v14 = vld [vmem:[#allocation7 + $0xde8] sm:$0xff]  ;;  %v984_v18 = vld [vmem:[#allocation7 + $0xd80] sm:$0xff]  ;;  %v3009_v36 = vpack.c.bf16 %v1013_v27, %v1005_v26  ;;  %v570_v27 = vld [vmem:[#allocation7 + $0x90] sm:$0xff] }
 0x19f   : > { %v992_v19 = vld [vmem:[#allocation7 + $0xdc0] sm:$0xff]  ;;  %v3005_v21 = vpack.c.bf16 %v997_v14, %v989_v13  ;;  %3565 = vpow2.f32 %v540_v32  ;;  %v1049_v1 = vld [vmem:[#allocation7 + $0xf88] sm:$0xff]  ;;  %v555_v14 = vld [vmem:[#allocation7 + $0x18] sm:$0xff] }
 0x1a0   : > { %2720 = vmatpush1.bf16.msra.mxu1 %v2719_v49  ;;  %2976 = vmatpush1.bf16.msra.mxu0 %v2975_v50  ;;  %v953_v49 = vld [vmem:[#allocation7 + $0xc88] sm:$0xff]  ;;  %v988_v22 = vld [vmem:[#allocation7 + $0xda0] sm:$0xff] }
 0x1a1   : > { %2722 = vmatprep.subr.bf16.mxu1 %v2721_v55  ;;  %2978 = vmatprep.subr.bf16.mxu0 %v2977_v56  ;;  %v961_v50 = vld [vmem:[#allocation7 + $0xcc8] sm:$0xff]  ;;  %v2739_v55 = vpack.c.bf16 %v944_v42, %v936_v40  ;;  %v2995_v56 = vpack.c.bf16 %v948_v48, %v940_v47  ;;  %v996_v23 = vld [vmem:[#allocation7 + $0xde0] sm:$0xff] }
 0x1a2   : > { %v2741_v41 = vpack.c.bf16 %v961_v50, %v953_v49  ;;  %v1000_v30 = vld [vmem:[#allocation7 + $0xe00] sm:$0xff]  ;;  %v1025_v40 = vld [vmem:[#allocation7 + $0xec8] sm:$0xff] }
 0x1a3   : > { %v1008_v31 = vld [vmem:[#allocation7 + $0xe40] sm:$0xff]  ;;  %v1021_v42 = vld [vmem:[#allocation7 + $0xea8] sm:$0xff] }
 0x1a4   : > { %2724 = vmatpush1.bf16.msra.mxu1 %v2723_v62  ;;  %2980 = vmatpush1.bf16.msra.mxu0 %v2979_v63  ;;  %v969_v62 = vld [vmem:[#allocation7 + $0xd08] sm:$0xff]  ;;  %v1004_v37 = vld [vmem:[#allocation7 + $0xe20] sm:$0xff]  ;;  %v3013_v50 = vpack.c.bf16 %v1029_v43, %v1021_v42  ;;  %v602_v42 = vld [vmem:[#allocation7 + $0x190] sm:$0xff] }
 0x1a5   : > { %2726 = vmatprep.subr.bf16.mxu1 %v2725_v2  ;;  %2982 = vmatprep.subr.bf16.mxu0 %v2981_v3  ;;  %v977_v63 = vld [vmem:[#allocation7 + $0xd48] sm:$0xff]  ;;  %v2743_v2 = vpack.c.bf16 %v960_v54, %v952_v57  ;;  %v2999_v3 = vpack.c.bf16 %v964_v61, %v956_v60  ;;  %v1016_v47 = vld [vmem:[#allocation7 + $0xe80] sm:$0xff]  ;;  %v610_v43 = vld [vmem:[#allocation7 + $0x1d0] sm:$0xff] }
 0x1a6   : > { %v2745_v34 = vpack.c.bf16 %v977_v63, %v969_v62  ;;  %v1024_v48 = vld [vmem:[#allocation7 + $0xec0] sm:$0xff]  ;;  %v1037_v57 = vld [vmem:[#allocation7 + $0xf28] sm:$0xff] }
 0x1a7   : > { %v1028_v53 = vld [vmem:[#allocation7 + $0xee0] sm:$0xff]  ;;  %v1045_v54 = vld [vmem:[#allocation7 + $0xf68] sm:$0xff]  ;;  %v2759_v58 = vpack.c.bf16 %v1024_v48, %v1016_v47  ;;  %v2783_v47 = vpack.c.bf16 %v610_v43, %v602_v42  ;;  %v746_v43 = vld [vmem:[#allocation7 + $0x610] sm:$0xff] }
 0x1a8   : > { %2728 = vmatpush1.bf16.msra.mxu1 %v2727_v11  ;;  %2984 = vmatpush1.bf16.msra.mxu0 %v2983_v12  ;;  %v985_v11 = vld [vmem:[#allocation7 + $0xd88] sm:$0xff]  ;;  %v1040_v60 = vld [vmem:[#allocation7 + $0xf40] sm:$0xff]  ;;  %v3017_v62 = vpack.c.bf16 %v1045_v54, %v1037_v57  ;;  %v634_v57 = vld [vmem:[#allocation7 + $0x290] sm:$0xff] }
 0x1a9   : > { %2730 = vmatprep.subr.bf16.mxu1 %v2729_v16  ;;  %2986 = vmatprep.subr.bf16.mxu0 %v2985_v17  ;;  %v993_v12 = vld [vmem:[#allocation7 + $0xdc8] sm:$0xff]  ;;  %v2747_v16 = vpack.c.bf16 %v976_v5, %v968_v4  ;;  %v3003_v17 = vpack.c.bf16 %v980_v10, %v972_v8  ;;  %v1036_v63 = vld [vmem:[#allocation7 + $0xf20] sm:$0xff]  ;;  %v642_v54 = vld [vmem:[#allocation7 + $0x2d0] sm:$0xff] }
 0x1aa   : > { %v2749_v52 = vpack.c.bf16 %v993_v12, %v985_v11  ;;  %v1044_v0 = vld [vmem:[#allocation7 + $0xf60] sm:$0xff]  ;;  %v1061_v4 = vld [vmem:[#allocation7 + $0xfe8] sm:$0xff] }
 0x1ab   : > { %v1056_v11 = vld [vmem:[#allocation7 + $0xfc0] sm:$0xff] }
 0x1ac   : > { %2732 = vmatpush1.bf16.msra.mxu1 %v2731_v24  ;;  %2988 = vmatpush1.bf16.msra.mxu0 %v2987_v25  ;;  %v1001_v24 = vld [vmem:[#allocation7 + $0xe08] sm:$0xff]  ;;  %v1052_v12 = vld [vmem:[#allocation7 + $0xfa0] sm:$0xff] }
 0x1ad   : > { %2734 = vmatprep.subr.bf16.mxu1 %v2733_v28  ;;  %2990 = vmatprep.subr.bf16.mxu0 %v2989_v29  ;;  %v1009_v25 = vld [vmem:[#allocation7 + $0xe48] sm:$0xff]  ;;  %v2751_v28 = vpack.c.bf16 %v992_v19, %v984_v18  ;;  %v3007_v29 = vpack.c.bf16 %v996_v23, %v988_v22  ;;  %v1060_v13 = vld [vmem:[#allocation7 + $0xfe0] sm:$0xff]  ;;  %v571_v23 = vld [vmem:[#allocation7 + $0x98] sm:$0xff] }
 0x1ae   : > { %v2753_v35 = vpack.c.bf16 %v1009_v25, %v1001_v24  ;;  %v3023_v19 = vpack.c.bf16 %v1060_v13, %v1052_v12  ;;  %v579_v24 = vld [vmem:[#allocation7 + $0xd8] sm:$0xff] }
 0x1af   : > { %v2773_v26 = vpack.c.bf16 %v579_v24, %v571_v23  ;;  %v699_v12 = vld [vmem:[#allocation7 + $0x498] sm:$0xff]  ;;  %v722_v23 = vld [vmem:[#allocation7 + $0x550] sm:$0xff] }
 0x1b0   : > { %2736 = vmatpush1.bf16.msra.mxu1 %v2735_v38  ;;  %2992 = vmatpush1.bf16.msra.mxu0 %v2991_v39  ;;  %v1012_v38 = vld [vmem:[#allocation7 + $0xe60] sm:$0xff]  ;;  %v1017_v39 = vld [vmem:[#allocation7 + $0xe88] sm:$0xff]  ;;  %v707_v13 = vld [vmem:[#allocation7 + $0x4d8] sm:$0xff] }
 0x1b1   : > { %2738 = vmatprep.subr.bf16.mxu1 %v2737_v44  ;;  %2994 = vmatprep.subr.bf16.mxu0 %v2993_v46  ;;  %v2755_v44 = vpack.c.bf16 %v1008_v31, %v1000_v30  ;;  %v3011_v46 = vpack.c.bf16 %v1012_v38, %v1004_v37  ;;  %v2757_v49 = vpack.c.bf16 %v1025_v40, %v1017_v39  ;;  %v587_v30 = vld [vmem:[#allocation7 + $0x118] sm:$0xff]  ;;  %v594_v37 = vld [vmem:[#allocation7 + $0x150] sm:$0xff] }
 0x1b2   : > { %v595_v31 = vld [vmem:[#allocation7 + $0x158] sm:$0xff] }
 0x1b3   : > { %v603_v38 = vld [vmem:[#allocation7 + $0x198] sm:$0xff] }
 0x1b4   : > { %2740 = vmatpush1.bf16.msra.mxu1 %v2739_v55  ;;  %2996 = vmatpush1.bf16.msra.mxu0 %v2995_v56  ;;  %v1033_v55 = vld [vmem:[#allocation7 + $0xf08] sm:$0xff]  ;;  %v611_v39 = vld [vmem:[#allocation7 + $0x1d8] sm:$0xff] }
 0x1b5   : > { %2742 = vmatprep.subr.bf16.mxu1 %v2741_v41  ;;  %2998 = vmatprep.subr.bf16.mxu0 %v2997_v59  ;;  %v1041_v56 = vld [vmem:[#allocation7 + $0xf48] sm:$0xff]  ;;  %v3015_v41 = vpack.c.bf16 %v1028_v53, %v1020_v51  ;;  %v1032_v59 = vld [vmem:[#allocation7 + $0xf00] sm:$0xff]  ;;  %v635_v51 = vld [vmem:[#allocation7 + $0x298] sm:$0xff] }
 0x1b6   : > { %v2761_v61 = vpack.c.bf16 %v1041_v56, %v1033_v55  ;;  %v2763_v5 = vpack.c.bf16 %v1040_v60, %v1032_v59  ;;  %v643_v53 = vld [vmem:[#allocation7 + $0x2d8] sm:$0xff]  ;;  %v2791_v59 = vpack.c.bf16 %v642_v54, %v634_v57  ;;  %v762_v54 = vld [vmem:[#allocation7 + $0x690] sm:$0xff] }
 0x1b7   : > { %v2789_v56 = vpack.c.bf16 %v643_v53, %v635_v51  ;;  %v731_v24 = vld [vmem:[#allocation7 + $0x598] sm:$0xff]  ;;  %v1758_v51 = vld [vmem:[#allocation8 + $0x20] sm:$0xff]  ;;  %v1760_v53 = vld [vmem:[#allocation8 + $0x30] sm:$0xff] }
 0x1b8   : > { %2744 = vmatpush1.bf16.msra.mxu1 %v2743_v2  ;;  %3000 = vmatpush1.bf16.msra.mxu0 %v2999_v3  ;;  %v1057_v2 = vld [vmem:[#allocation7 + $0xfc8] sm:$0xff] }
 0x1b9   : > { %2746 = vmatprep.subr.bf16.mxu1 %v2745_v34  ;;  %3002 = vmatprep.subr.bf16.mxu0 %v3001_v7  ;;  %v1053_v3 = vld [vmem:[#allocation7 + $0xfa8] sm:$0xff]  ;;  %v3019_v34 = vpack.c.bf16 %v1044_v0, %v1036_v63  ;;  %v1048_v7 = vld [vmem:[#allocation7 + $0xf80] sm:$0xff]  ;;  %v2765_v8 = vpack.c.bf16 %v1057_v2, %v1049_v1  ;;  %v667_v63 = vld [vmem:[#allocation7 + $0x398] sm:$0xff] }
 0x1ba   : > { %v3021_v10 = vpack.c.bf16 %v1061_v4, %v1053_v3  ;;  %v2767_v18 = vpack.c.bf16 %v1056_v11, %v1048_v7  ;;  %v675_v0 = vld [vmem:[#allocation7 + $0x3d8] sm:$0xff]  ;;  %v666_v3 = vld [vmem:[#allocation7 + $0x390] sm:$0xff] }
 0x1bb   : > { %v2797_v2 = vpack.c.bf16 %v675_v0, %v667_v63  ;;  %v674_v4 = vld [vmem:[#allocation7 + $0x3d0] sm:$0xff]  ;;  %v1762_v63 = vld [vmem:[#allocation8 + $0x40] sm:$0xff] }
 0x1bc   : > { %2748 = vmatpush1.bf16.msra.mxu1 %v2747_v16  ;;  %3004 = vmatpush1.bf16.msra.mxu0 %v3003_v17  ;;  %v563_v16 = vld [vmem:[#allocation7 + $0x58] sm:$0xff]  ;;  %v3566_v17 = vpop.eup %3565  ;;  %v2799_v7 = vpack.c.bf16 %v674_v4, %v666_v3  ;;  %v690_v11 = vld [vmem:[#allocation7 + $0x450] sm:$0xff] }
 0x1bd   : > { %2750 = vmatprep.subr.bf16.mxu1 %v2749_v52  ;;  %3006 = vmatprep.subr.bf16.mxu0 %v3005_v21  ;;  %v2769_v20 = vpack.c.bf16 %v563_v16, %v555_v14  ;;  %v554_v52 = vld [vmem:[#allocation7 + $0x10] sm:$0xff]  ;;  %v2574_v22 = vadd.f32 -1.0, %v3566_v17  ;;  %v2805_v16 = vpack.c.bf16 %v707_v13, %v699_v12  ;;  %v1766_v12 = vld [vmem:[#allocation8 + $0x60] sm:$0xff] }
 0x1be   : > { %v562_v21 = vld [vmem:[#allocation7 + $0x50] sm:$0xff] }
 0x1bf   : > { %v2771_v25 = vpack.c.bf16 %v562_v21, %v554_v52  ;;  %v698_v17 = vld [vmem:[#allocation7 + $0x490] sm:$0xff] }
 0x1c0   : > { %2752 = vmatpush1.bf16.msra.mxu1 %v2751_v28  ;;  %3008 = vmatpush1.bf16.msra.mxu0 %v3007_v29  ;;  %v578_v28 = vld [vmem:[#allocation7 + $0xd0] sm:$0xff]  ;;  %v4132_v29 = vsel %vm530_vm4, %v4127_v6, %v2574_v22  ;;  %v2781_v6 = vpack.c.bf16 %v611_v39, %v603_v38  ;;  %v1754_v38 = vld [vmem:[#allocation8] sm:$0xff] }
 0x1c1   : > { %2754 = vmatprep.subr.bf16.mxu1 %v2753_v35  ;;  %3010 = vmatprep.subr.bf16.mxu0 %v3009_v36  ;;  %v2775_v32 = vpack.c.bf16 %v578_v28, %v570_v27  ;;  %v2777_v35 = vpack.c.bf16 %v595_v31, %v587_v30  ;;  %v586_v36 = vld [vmem:[#allocation7 + $0x110] sm:$0xff]  ;;  %v747_v31 = vld [vmem:[#allocation7 + $0x618] sm:$0xff] }
 0x1c2   : > { %v2779_v40 = vpack.c.bf16 %v594_v37, %v586_v36  ;;  %v714_v22 = vld [vmem:[#allocation7 + $0x510] sm:$0xff]  ;;  %v1757_v36 = vld [vmem:[#allocation8 + $0x18] sm:$0xff] }
 0x1c3   : > { %v730_v28 = vld [vmem:[#allocation7 + $0x590] sm:$0xff] }
 0x1c4   : > { %2756 = vmatpush1.bf16.msra.mxu1 %v2755_v44  ;;  %3012 = vmatpush1.bf16.msra.mxu0 %v3011_v46  ;;  %v619_v44 = vld [vmem:[#allocation7 + $0x218] sm:$0xff]  ;;  %v738_v30 = vld [vmem:[#allocation7 + $0x5d0] sm:$0xff] }
 0x1c5   : > { %2758 = vmatprep.subr.bf16.mxu1 %v2757_v49  ;;  %3014 = vmatprep.subr.bf16.mxu0 %v3013_v50  ;;  %v627_v46 = vld [vmem:[#allocation7 + $0x258] sm:$0xff]  ;;  %v618_v49 = vld [vmem:[#allocation7 + $0x210] sm:$0xff] }
 0x1c6   : > { %v2785_v48 = vpack.c.bf16 %v627_v46, %v619_v44  ;;  %v626_v50 = vld [vmem:[#allocation7 + $0x250] sm:$0xff]  ;;  %v763_v46 = vld [vmem:[#allocation7 + $0x698] sm:$0xff] }
 0x1c7   : > { %v2787_v55 = vpack.c.bf16 %v626_v50, %v618_v49  ;;  %v1756_v39 = vld [vmem:[#allocation8 + $0x10] sm:$0xff]  ;;  %v1761_v49 = vld [vmem:[#allocation8 + $0x38] sm:$0xff] }
 0x1c8   : > { %2760 = vmatpush1.bf16.msra.mxu1 %v2759_v58  ;;  %3016 = vmatpush1.bf16.msra.mxu0 %v3015_v41  ;;  %v651_v58 = vld [vmem:[#allocation7 + $0x318] sm:$0xff]  ;;  %v754_v44 = vld [vmem:[#allocation7 + $0x650] sm:$0xff] }
 0x1c9   : > { %2762 = vmatprep.subr.bf16.mxu1 %v2761_v61  ;;  %3018 = vmatprep.subr.bf16.mxu0 %v3017_v62  ;;  %v659_v41 = vld [vmem:[#allocation7 + $0x358] sm:$0xff]  ;;  %v650_v61 = vld [vmem:[#allocation7 + $0x310] sm:$0xff] }
 0x1ca   : > { %v2793_v60 = vpack.c.bf16 %v659_v41, %v651_v58  ;;  %v658_v62 = vld [vmem:[#allocation7 + $0x350] sm:$0xff]  ;;  %v779_v41 = vld [vmem:[#allocation7 + $0x718] sm:$0xff] }
 0x1cb   : > { %v2795_v1 = vpack.c.bf16 %v658_v62, %v650_v61  ;;  %v770_v58 = vld [vmem:[#allocation7 + $0x6d0] sm:$0xff]  ;;  %v1765_v61 = vld [vmem:[#allocation8 + $0x58] sm:$0xff] }
 0x1cc   : > { %2764 = vmatpush1.bf16.msra.mxu1 %v2763_v5  ;;  %3020 = vmatpush1.bf16.msra.mxu0 %v3019_v34  ;;  %v683_v5 = vld [vmem:[#allocation7 + $0x418] sm:$0xff]  ;;  %v1764_v0 = vld [vmem:[#allocation8 + $0x50] sm:$0xff] }
 0x1cd   : > { %2766 = vmatprep.subr.bf16.mxu1 %v2765_v8  ;;  %3022 = vmatprep.subr.bf16.mxu0 %v3021_v10  ;;  %v691_v34 = vld [vmem:[#allocation7 + $0x458] sm:$0xff]  ;;  %v682_v10 = vld [vmem:[#allocation7 + $0x410] sm:$0xff] }
 0x1ce   : > { %v2801_v8 = vpack.c.bf16 %v691_v34, %v683_v5  ;;  %v2803_v14 = vpack.c.bf16 %v690_v11, %v682_v10  ;;  %v778_v4 = vld [vmem:[#allocation7 + $0x710] sm:$0xff]  ;;  %v795_v34 = vld [vmem:[#allocation7 + $0x798] sm:$0xff] }
 0x1cf   : > { %v786_v5 = vld [vmem:[#allocation7 + $0x750] sm:$0xff]  ;;  %v1769_v10 = vld [vmem:[#allocation8 + $0x78] sm:$0xff] }
 0x1d0   : > { %2768 = vmatpush1.bf16.msra.mxu1 %v2767_v18  ;;  %3024 = vmatpush1.bf16.msra.mxu0 %v3023_v19  ;;  %v706_v18 = vld [vmem:[#allocation7 + $0x4d0] sm:$0xff]  ;;  %v715_v19 = vld [vmem:[#allocation7 + $0x518] sm:$0xff] }
 0x1d1   : > { %2770 = vmatprep.subr.bf16.mxu1 %v2769_v20  ;;  %v723_v20 = vld [vmem:[#allocation7 + $0x558] sm:$0xff]  ;;  %v2807_v52 = vpack.c.bf16 %v706_v18, %v698_v17  ;;  %v1768_v13 = vld [vmem:[#allocation8 + $0x70] sm:$0xff] }
 0x1d2   : > { %v2809_v21 = vpack.c.bf16 %v723_v20, %v715_v19  ;;  %v794_v18 = vld [vmem:[#allocation7 + $0x790] sm:$0xff]  ;;  %v811_v20 = vld [vmem:[#allocation7 + $0x818] sm:$0xff] }
 0x1d3   : > { %1274 = vmatmul.mubr.f32.vlgmr.msra.gmra.mrb[0].mxu1 %v4132_v29  ;;  %1558 = vmatmul.mubr.f32.vlgmr.msra.gmra.mrb[4].mxu0 %v4132_v29  ;;  %v802_v19 = vld [vmem:[#allocation7 + $0x7d0] sm:$0xff] }
 0x1d4   : > { %2772 = vmatpush1.bf16.msra.mxu1 %v2771_v25  ;;  %1344 = vmatprep.mubr.f32.mxu1 %v4109_v9  ;;  %v739_v25 = vld [vmem:[#allocation7 + $0x5d8] sm:$0xff] }
 0x1d5   : > { %2774 = vmatprep.subr.bf16.mxu1 %v2773_v26  ;;  %v2811_v26 = vpack.c.bf16 %v722_v23, %v714_v22  ;;  %v2813_v27 = vpack.c.bf16 %v739_v25, %v731_v24  ;;  %v1773_v22 = vld [vmem:[#allocation8 + $0x98] sm:$0xff]  ;;  %v1770_v24 = vld [vmem:[#allocation8 + $0x80] sm:$0xff]  ;;  %v1772_v25 = vld [vmem:[#allocation8 + $0x90] sm:$0xff] }
 0x1d8   : > { %2776 = vmatpush1.bf16.msra.mxu1 %v2775_v32  ;;  %v755_v32 = vld [vmem:[#allocation7 + $0x658] sm:$0xff] }
 0x1d9   : > { %2778 = vmatprep.subr.bf16.mxu1 %v2777_v35  ;;  %v1755_v35 = vld [vmem:[#allocation8 + $0x8] sm:$0xff]  ;;  %v2817_v42 = vpack.c.bf16 %v755_v32, %v747_v31  ;;  %v818_v31 = vld [vmem:[#allocation7 + $0x850] sm:$0xff]  ;;  %v827_v32 = vld [vmem:[#allocation7 + $0x898] sm:$0xff] }
 0x1da   : > { %v3153_v37 = vpack.c.bf16 %v1757_v36, %v1755_v35  ;;  %v835_v35 = vld [vmem:[#allocation7 + $0x8d8] sm:$0xff]  ;;  %v1775_v36 = vld [vmem:[#allocation8 + $0xa8] sm:$0xff] }
 0x1dc   : > { %2780 = vmatpush1.bf16.msra.mxu1 %v2779_v40  ;;  %v2815_v40 = vpack.c.bf16 %v738_v30, %v730_v28  ;;  %3154 = vmatprep.subr.bf16.mxu0 %v3153_v37  ;;  %v810_v30 = vld [vmem:[#allocation7 + $0x810] sm:$0xff]  ;;  %v1777_v37 = vld [vmem:[#allocation8 + $0xb8] sm:$0xff] }
 0x1dd   : > { %2782 = vmatprep.subr.bf16.mxu1 %v2781_v6  ;;  %v3155_v6 = vpack.c.bf16 %v1756_v39, %v1754_v38  ;;  %v3173_v38 = vpack.c.bf16 %v1777_v37, %v1775_v36  ;;  %v1774_v39 = vld [vmem:[#allocation8 + $0xa0] sm:$0xff]  ;;  %v915_v36 = vld [vmem:[#allocation7 + $0xb58] sm:$0xff]  ;;  %v1795_v37 = vld [vmem:[#allocation8 + $0x148] sm:$0xff] }
 0x1df   : > { %3156 = vmatpush1.bf16.msra.mxu0 %v3155_v6  ;;  %v2835_v6 = vpack.c.bf16 %v818_v31, %v810_v30  ;;  %v890_v31 = vld [vmem:[#allocation7 + $0xa90] sm:$0xff] }
 0x1e0   : > { %2784 = vmatpush1.bf16.msra.mxu1 %v2783_v47  ;;  %v771_v47 = vld [vmem:[#allocation7 + $0x6d8] sm:$0xff] }
 0x1e1   : > { %2786 = vmatprep.subr.bf16.mxu1 %v2785_v48  ;;  %v1759_v48 = vld [vmem:[#allocation8 + $0x28] sm:$0xff]  ;;  %v2821_v57 = vpack.c.bf16 %v771_v47, %v763_v46  ;;  %v834_v46 = vld [vmem:[#allocation7 + $0x8d0] sm:$0xff]  ;;  %v843_v47 = vld [vmem:[#allocation7 + $0x918] sm:$0xff] }
 0x1e2   : > { %v3157_v50 = vpack.c.bf16 %v1761_v49, %v1759_v48  ;;  %v851_v48 = vld [vmem:[#allocation7 + $0x958] sm:$0xff]  ;;  %v1779_v49 = vld [vmem:[#allocation8 + $0xc8] sm:$0xff] }
 0x1e4   : > { %2788 = vmatpush1.bf16.msra.mxu1 %v2787_v55  ;;  %v2819_v55 = vpack.c.bf16 %v754_v44, %v746_v43  ;;  %3158 = vmatprep.subr.bf16.mxu0 %v3157_v50  ;;  %v2837_v43 = vpack.c.bf16 %v835_v35, %v827_v32  ;;  %v826_v44 = vld [vmem:[#allocation7 + $0x890] sm:$0xff]  ;;  %v1781_v50 = vld [vmem:[#allocation8 + $0xd8] sm:$0xff] }
 0x1e5   : > { %2790 = vmatprep.subr.bf16.mxu1 %v2789_v56  ;;  %v3159_v56 = vpack.c.bf16 %v1760_v53, %v1758_v51  ;;  %v3177_v51 = vpack.c.bf16 %v1781_v50, %v1779_v49  ;;  %v1778_v53 = vld [vmem:[#allocation8 + $0xc0] sm:$0xff]  ;;  %v898_v32 = vld [vmem:[#allocation7 + $0xad0] sm:$0xff]  ;;  %v907_v35 = vld [vmem:[#allocation7 + $0xb18] sm:$0xff] }
 0x1e6   : > { %v931_v49 = vld [vmem:[#allocation7 + $0xbd8] sm:$0xff] }
 0x1e7   : > { %3160 = vmatpush1.bf16.msra.mxu0 %v3159_v56  ;;  %v2839_v56 = vpack.c.bf16 %v834_v46, %v826_v44  ;;  %v906_v44 = vld [vmem:[#allocation7 + $0xb10] sm:$0xff] }
 0x1e8   : > { %2792 = vmatpush1.bf16.msra.mxu1 %v2791_v59  ;;  %v787_v59 = vld [vmem:[#allocation7 + $0x758] sm:$0xff]  ;;  %v914_v46 = vld [vmem:[#allocation7 + $0xb50] sm:$0xff] }
 0x1e9   : > { %2794 = vmatprep.subr.bf16.mxu1 %v2793_v60  ;;  %v1763_v60 = vld [vmem:[#allocation8 + $0x48] sm:$0xff]  ;;  %v2825_v3 = vpack.c.bf16 %v787_v59, %v779_v41  ;;  %v850_v41 = vld [vmem:[#allocation7 + $0x950] sm:$0xff]  ;;  %v859_v59 = vld [vmem:[#allocation7 + $0x998] sm:$0xff]  ;;  %v2859_v50 = vpack.c.bf16 %v914_v46, %v906_v44 }
 0x1ea   : > { %v3161_v62 = vpack.c.bf16 %v1765_v61, %v1763_v60  ;;  %v867_v60 = vld [vmem:[#allocation7 + $0x9d8] sm:$0xff]  ;;  %v1783_v61 = vld [vmem:[#allocation8 + $0xe8] sm:$0xff]  ;;  %v994_v44 = vld [vmem:[#allocation7 + $0xdd0] sm:$0xff] }
 0x1ec   : > { %2796 = vmatpush1.bf16.msra.mxu1 %v2795_v1  ;;  %v2823_v1 = vpack.c.bf16 %v770_v58, %v762_v54  ;;  %3162 = vmatprep.subr.bf16.mxu0 %v3161_v62  ;;  %v2841_v54 = vpack.c.bf16 %v851_v48, %v843_v47  ;;  %v842_v58 = vld [vmem:[#allocation7 + $0x910] sm:$0xff]  ;;  %v1785_v62 = vld [vmem:[#allocation8 + $0xf8] sm:$0xff] }
 0x1ed   : > { %2798 = vmatprep.subr.bf16.mxu1 %v2797_v2  ;;  %v3163_v2 = vpack.c.bf16 %v1764_v0, %v1762_v63  ;;  %v3181_v63 = vpack.c.bf16 %v1785_v62, %v1783_v61  ;;  %v1782_v0 = vld [vmem:[#allocation8 + $0xe0] sm:$0xff]  ;;  %v923_v48 = vld [vmem:[#allocation7 + $0xb98] sm:$0xff] }
 0x1ef   : > { %3164 = vmatpush1.bf16.msra.mxu0 %v3163_v2  ;;  %v2843_v2 = vpack.c.bf16 %v850_v41, %v842_v58  ;;  %v1798_v58 = vld [vmem:[#allocation8 + $0x160] sm:$0xff]  ;;  %v1800_v41 = vld [vmem:[#allocation8 + $0x170] sm:$0xff] }
 0x1f0   : > { %2800 = vmatpush1.bf16.msra.mxu1 %v2799_v7  ;;  %v803_v7 = vld [vmem:[#allocation7 + $0x7d8] sm:$0xff]  ;;  %v3199_v61 = vpack.c.bf16 %v1800_v41, %v1798_v58 }
 0x1f1   : > { %2802 = vmatprep.subr.bf16.mxu1 %v2801_v8  ;;  %v1767_v8 = vld [vmem:[#allocation8 + $0x68] sm:$0xff]  ;;  %v2829_v17 = vpack.c.bf16 %v803_v7, %v795_v34  ;;  %v866_v34 = vld [vmem:[#allocation7 + $0x9d0] sm:$0xff]  ;;  %v875_v7 = vld [vmem:[#allocation7 + $0xa18] sm:$0xff] }
 0x1f2   : > { %v3165_v11 = vpack.c.bf16 %v1769_v10, %v1767_v8  ;;  %v883_v8 = vld [vmem:[#allocation7 + $0xa58] sm:$0xff]  ;;  %v1787_v10 = vld [vmem:[#allocation8 + $0x108] sm:$0xff] }
 0x1f4   : > { %2804 = vmatpush1.bf16.msra.mxu1 %v2803_v14  ;;  %v2827_v14 = vpack.c.bf16 %v786_v5, %v778_v4  ;;  %3166 = vmatprep.subr.bf16.mxu0 %v3165_v11  ;;  %v2845_v4 = vpack.c.bf16 %v867_v60, %v859_v59  ;;  %v858_v5 = vld [vmem:[#allocation7 + $0x990] sm:$0xff]  ;;  %v1789_v11 = vld [vmem:[#allocation8 + $0x118] sm:$0xff] }
 0x1f5   : > { %2806 = vmatprep.subr.bf16.mxu1 %v2805_v16  ;;  %v3167_v16 = vpack.c.bf16 %v1768_v13, %v1766_v12  ;;  %v3185_v12 = vpack.c.bf16 %v1789_v11, %v1787_v10  ;;  %v1786_v13 = vld [vmem:[#allocation8 + $0x100] sm:$0xff]  ;;  %v939_v59 = vld [vmem:[#allocation7 + $0xc18] sm:$0xff] }
 0x1f6   : > { %v947_v60 = vld [vmem:[#allocation7 + $0xc58] sm:$0xff] }
 0x1f7   : > { %3168 = vmatpush1.bf16.msra.mxu0 %v3167_v16  ;;  %v2847_v16 = vpack.c.bf16 %v866_v34, %v858_v5  ;;  %v1802_v5 = vld [vmem:[#allocation8 + $0x180] sm:$0xff]  ;;  %v1804_v34 = vld [vmem:[#allocation8 + $0x190] sm:$0xff] }
 0x1f8   : > { %2808 = vmatpush1.bf16.msra.mxu1 %v2807_v52  ;;  %v819_v52 = vld [vmem:[#allocation7 + $0x858] sm:$0xff]  ;;  %v3203_v10 = vpack.c.bf16 %v1804_v34, %v1802_v5 }
 0x1f9   : > { %2810 = vmatprep.subr.bf16.mxu1 %v2809_v21  ;;  %v1771_v21 = vld [vmem:[#allocation8 + $0x88] sm:$0xff]  ;;  %v2833_v28 = vpack.c.bf16 %v819_v52, %v811_v20  ;;  %v882_v20 = vld [vmem:[#allocation7 + $0xa50] sm:$0xff]  ;;  %v891_v52 = vld [vmem:[#allocation7 + $0xa98] sm:$0xff] }
 0x1fa   : > { %v3169_v23 = vpack.c.bf16 %v1773_v22, %v1771_v21  ;;  %v899_v21 = vld [vmem:[#allocation7 + $0xad8] sm:$0xff]  ;;  %v1791_v22 = vld [vmem:[#allocation8 + $0x128] sm:$0xff] }
 0x1fb   : > { %v2853_v30 = vpack.c.bf16 %v899_v21, %v891_v52  ;;  %v971_v52 = vld [vmem:[#allocation7 + $0xd18] sm:$0xff] }
 0x1fc   : > { %2812 = vmatpush1.bf16.msra.mxu1 %v2811_v26  ;;  %v2831_v26 = vpack.c.bf16 %v802_v19, %v794_v18  ;;  %3170 = vmatprep.subr.bf16.mxu0 %v3169_v23  ;;  %v2849_v18 = vpack.c.bf16 %v883_v8, %v875_v7  ;;  %v874_v19 = vld [vmem:[#allocation7 + $0xa10] sm:$0xff]  ;;  %v1793_v23 = vld [vmem:[#allocation8 + $0x138] sm:$0xff] }
 0x1fd   : > { %2814 = vmatprep.subr.bf16.mxu1 %v2813_v27  ;;  %v3171_v27 = vpack.c.bf16 %v1772_v25, %v1770_v24  ;;  %v3189_v24 = vpack.c.bf16 %v1793_v23, %v1791_v22  ;;  %v1790_v25 = vld [vmem:[#allocation8 + $0x120] sm:$0xff]  ;;  %v955_v7 = vld [vmem:[#allocation7 + $0xc98] sm:$0xff] }
 0x1fe   : > { %v963_v8 = vld [vmem:[#allocation7 + $0xcd8] sm:$0xff] }
 0x1ff   : > { %3172 = vmatpush1.bf16.msra.mxu0 %v3171_v27  ;;  %v2851_v27 = vpack.c.bf16 %v882_v20, %v874_v19  ;;  %v1808_v20 = vld [vmem:[#allocation8 + $0x1b0] sm:$0xff]  ;;  %v979_v21 = vld [vmem:[#allocation7 + $0xd58] sm:$0xff] }
 0x200   : > { %2816 = vmatpush1.bf16.msra.mxu1 %v2815_v40  ;;  %v1776_v40 = vld [vmem:[#allocation8 + $0xb0] sm:$0xff]  ;;  %3174 = vmatprep.subr.bf16.mxu0 %v3173_v38  ;;  %v1797_v38 = vld [vmem:[#allocation8 + $0x158] sm:$0xff] }
 0x201   : > { %2818 = vmatprep.subr.bf16.mxu1 %v2817_v42  ;;  %v3175_v42 = vpack.c.bf16 %v1776_v40, %v1774_v39  ;;  %v3193_v39 = vpack.c.bf16 %v1797_v38, %v1795_v37  ;;  %v2855_v40 = vpack.c.bf16 %v898_v32, %v890_v31  ;;  %v1812_v32 = vld [vmem:[#allocation8 + $0x1d0] sm:$0xff] }
 0x203   : > { %3176 = vmatpush1.bf16.msra.mxu0 %v3175_v42  ;;  %v1796_v42 = vld [vmem:[#allocation8 + $0x150] sm:$0xff] }
 0x204   : > { %2820 = vmatpush1.bf16.msra.mxu1 %v2819_v55  ;;  %v1780_v55 = vld [vmem:[#allocation8 + $0xd0] sm:$0xff]  ;;  %3178 = vmatprep.subr.bf16.mxu0 %v3177_v51 }
 0x205   : > { %2822 = vmatprep.subr.bf16.mxu1 %v2821_v57  ;;  %v3179_v57 = vpack.c.bf16 %v1780_v55, %v1778_v53  ;;  %v922_v51 = vld [vmem:[#allocation7 + $0xb90] sm:$0xff]  ;;  %v1799_v53 = vld [vmem:[#allocation8 + $0x168] sm:$0xff]  ;;  %v1801_v55 = vld [vmem:[#allocation8 + $0x178] sm:$0xff] }
 0x207   : > { %3180 = vmatpush1.bf16.msra.mxu0 %v3179_v57  ;;  %v930_v57 = vld [vmem:[#allocation7 + $0xbd0] sm:$0xff] }
 0x208   : > { %2824 = vmatpush1.bf16.msra.mxu1 %v2823_v1  ;;  %v1784_v1 = vld [vmem:[#allocation8 + $0xf0] sm:$0xff]  ;;  %3182 = vmatprep.subr.bf16.mxu0 %v3181_v63  ;;  %v2863_v62 = vpack.c.bf16 %v930_v57, %v922_v51  ;;  %v1019_v57 = vld [vmem:[#allocation7 + $0xe98] sm:$0xff] }
 0x209   : > { %2826 = vmatprep.subr.bf16.mxu1 %v2825_v3  ;;  %v3183_v3 = vpack.c.bf16 %v1784_v1, %v1782_v0  ;;  %v938_v63 = vld [vmem:[#allocation7 + $0xc10] sm:$0xff]  ;;  %v1803_v0 = vld [vmem:[#allocation8 + $0x188] sm:$0xff]  ;;  %v1805_v1 = vld [vmem:[#allocation8 + $0x198] sm:$0xff] }
 0x20b   : > { %3184 = vmatpush1.bf16.msra.mxu0 %v3183_v3  ;;  %v946_v3 = vld [vmem:[#allocation7 + $0xc50] sm:$0xff] }
 0x20c   : > { %2828 = vmatpush1.bf16.msra.mxu1 %v2827_v14  ;;  %v1788_v14 = vld [vmem:[#allocation8 + $0x110] sm:$0xff]  ;;  %3186 = vmatprep.subr.bf16.mxu0 %v3185_v12  ;;  %v2867_v11 = vpack.c.bf16 %v946_v3, %v938_v63  ;;  %v1807_v12 = vld [vmem:[#allocation8 + $0x1a8] sm:$0xff]  ;;  %v1051_v3 = vld [vmem:[#allocation7 + $0xf98] sm:$0xff] }
 0x20d   : > { %2830 = vmatprep.subr.bf16.mxu1 %v2829_v17  ;;  %v3187_v17 = vpack.c.bf16 %v1788_v14, %v1786_v13  ;;  %v1809_v13 = vld [vmem:[#allocation8 + $0x1b8] sm:$0xff]  ;;  %v1806_v14 = vld [vmem:[#allocation8 + $0x1a0] sm:$0xff] }
 0x20e   : > { %v3205_v19 = vpack.c.bf16 %v1809_v13, %v1807_v12  ;;  %v3207_v22 = vpack.c.bf16 %v1808_v20, %v1806_v14  ;;  %v558_v14 = vld [vmem:[#allocation7 + $0x30] sm:$0xff] }
 0x20f   : > { %3188 = vmatpush1.bf16.msra.mxu0 %v3187_v17  ;;  %v954_v17 = vld [vmem:[#allocation7 + $0xc90] sm:$0xff] }
 0x210   : > { %2832 = vmatpush1.bf16.msra.mxu1 %v2831_v26  ;;  %v1792_v26 = vld [vmem:[#allocation8 + $0x130] sm:$0xff]  ;;  %3190 = vmatprep.subr.bf16.mxu0 %v3189_v24  ;;  %v1811_v24 = vld [vmem:[#allocation8 + $0x1c8] sm:$0xff] }
 0x211   : > { %2834 = vmatprep.subr.bf16.mxu1 %v2833_v28  ;;  %v3191_v28 = vpack.c.bf16 %v1792_v26, %v1790_v25  ;;  %v1813_v25 = vld [vmem:[#allocation8 + $0x1d8] sm:$0xff]  ;;  %v1810_v26 = vld [vmem:[#allocation8 + $0x1c0] sm:$0xff] }
 0x212   : > { %v3209_v31 = vpack.c.bf16 %v1813_v25, %v1811_v24  ;;  %v3211_v37 = vpack.c.bf16 %v1812_v32, %v1810_v26  ;;  %v1819_v24 = vld [vmem:[#allocation8 + $0x208] sm:$0xff]  ;;  %v1821_v25 = vld [vmem:[#allocation8 + $0x218] sm:$0xff] }
 0x213   : > { %1345 = vmatmul.mubr.f32.vlgmr.msra.gmra.mrb[2].mxu1 %v4113_v15  ;;  %3192 = vmatpush1.bf16.msra.mxu0 %v3191_v28  ;;  %v970_v28 = vld [vmem:[#allocation7 + $0xd10] sm:$0xff]  ;;  %v607_v32 = vld [vmem:[#allocation7 + $0x1b8] sm:$0xff] }
 0x214   : > { %2836 = vmatpush1.bf16.msra.mxu1 %v2835_v6  ;;  %1415 = vmatprep.mubr.f32.mxu1 %v4119_v45  ;;  %v1794_v6 = vld [vmem:[#allocation8 + $0x140] sm:$0xff] }
 0x215   : > { %2838 = vmatprep.subr.bf16.mxu1 %v2837_v43  ;;  %v2857_v43 = vpack.c.bf16 %v915_v36, %v907_v35  ;;  %3194 = vmatprep.subr.bf16.mxu0 %v3193_v39  ;;  %v3195_v47 = vpack.c.bf16 %v1796_v42, %v1794_v6  ;;  %v987_v35 = vld [vmem:[#allocation7 + $0xd98] sm:$0xff]  ;;  %v1815_v39 = vld [vmem:[#allocation8 + $0x1e8] sm:$0xff]  ;;  %v1814_v6 = vld [vmem:[#allocation8 + $0x1e0] sm:$0xff] }
 0x216   : > { %v995_v36 = vld [vmem:[#allocation7 + $0xdd8] sm:$0xff] }
 0x217   : > { %3196 = vmatpush1.bf16.msra.mxu0 %v3195_v47  ;;  %v2877_v42 = vpack.c.bf16 %v995_v36, %v987_v35  ;;  %v1816_v47 = vld [vmem:[#allocation8 + $0x1f0] sm:$0xff]  ;;  %v615_v35 = vld [vmem:[#allocation7 + $0x1f8] sm:$0xff] }
 0x218   : > { %2840 = vmatpush1.bf16.msra.mxu1 %v2839_v56  ;;  %v2861_v56 = vpack.c.bf16 %v931_v49, %v923_v48  ;;  %v1003_v48 = vld [vmem:[#allocation7 + $0xe18] sm:$0xff] }
 0x219   : > { %2842 = vmatprep.subr.bf16.mxu1 %v2841_v54  ;;  %v3197_v54 = vpack.c.bf16 %v1801_v55, %v1799_v53  ;;  %v1011_v49 = vld [vmem:[#allocation7 + $0xe58] sm:$0xff]  ;;  %v1002_v55 = vld [vmem:[#allocation7 + $0xe10] sm:$0xff] }
 0x21a   : > { %v2881_v53 = vpack.c.bf16 %v1011_v49, %v1003_v48 }
 0x21b   : > { %3198 = vmatprep.subr.bf16.mxu0 %v3197_v54  ;;  %v1027_v54 = vld [vmem:[#allocation7 + $0xed8] sm:$0xff] }
 0x21c   : > { %2844 = vmatpush1.bf16.msra.mxu1 %v2843_v2  ;;  %3200 = vmatpush1.bf16.msra.mxu0 %v3199_v61  ;;  %v2865_v2 = vpack.c.bf16 %v947_v60, %v939_v59  ;;  %v2885_v41 = vpack.c.bf16 %v1027_v54, %v1019_v57  ;;  %v1018_v59 = vld [vmem:[#allocation7 + $0xe90] sm:$0xff]  ;;  %v1035_v61 = vld [vmem:[#allocation7 + $0xf18] sm:$0xff] }
 0x21d   : > { %2846 = vmatprep.subr.bf16.mxu1 %v2845_v4  ;;  %v3201_v4 = vpack.c.bf16 %v1805_v1, %v1803_v0  ;;  %v1026_v60 = vld [vmem:[#allocation7 + $0xed0] sm:$0xff] }
 0x21e   : > { %v2887_v63 = vpack.c.bf16 %v1026_v60, %v1018_v59  ;;  %v1034_v1 = vld [vmem:[#allocation7 + $0xf10] sm:$0xff]  ;;  %v679_v59 = vld [vmem:[#allocation7 + $0x3f8] sm:$0xff] }
 0x21f   : > { %3202 = vmatprep.subr.bf16.mxu0 %v3201_v4  ;;  %v1059_v4 = vld [vmem:[#allocation7 + $0xfd8] sm:$0xff]  ;;  %v654_v54 = vld [vmem:[#allocation7 + $0x330] sm:$0xff] }
 0x220   : > { %2848 = vmatpush1.bf16.msra.mxu1 %v2847_v16  ;;  %3204 = vmatpush1.bf16.msra.mxu0 %v3203_v10  ;;  %v2869_v16 = vpack.c.bf16 %v963_v8, %v955_v7  ;;  %v2893_v34 = vpack.c.bf16 %v1059_v4, %v1051_v3  ;;  %v1050_v7 = vld [vmem:[#allocation7 + $0xf90] sm:$0xff]  ;;  %v559_v10 = vld [vmem:[#allocation7 + $0x38] sm:$0xff] }
 0x221   : > { %2850 = vmatprep.subr.bf16.mxu1 %v2849_v18  ;;  %v962_v18 = vld [vmem:[#allocation7 + $0xcd0] sm:$0xff]  ;;  %3206 = vmatprep.subr.bf16.mxu0 %v3205_v19 }
 0x222   : > { %v2871_v23 = vpack.c.bf16 %v962_v18, %v954_v17  ;;  %v1058_v8 = vld [vmem:[#allocation7 + $0xfd0] sm:$0xff]  ;;  %v575_v17 = vld [vmem:[#allocation7 + $0xb8] sm:$0xff] }
 0x223   : > { %v2895_v12 = vpack.c.bf16 %v1058_v8, %v1050_v7  ;;  %v583_v18 = vld [vmem:[#allocation7 + $0xf8] sm:$0xff]  ;;  %v686_v4 = vld [vmem:[#allocation7 + $0x430] sm:$0xff] }
 0x224   : > { %2852 = vmatpush1.bf16.msra.mxu1 %v2851_v27  ;;  %3208 = vmatpush1.bf16.msra.mxu0 %v3207_v22  ;;  %v2873_v27 = vpack.c.bf16 %v979_v21, %v971_v52  ;;  %v3029_v20 = vpack.c.bf16 %v583_v18, %v575_v17  ;;  %v574_v52 = vld [vmem:[#allocation7 + $0xb0] sm:$0xff]  ;;  %v591_v22 = vld [vmem:[#allocation7 + $0x138] sm:$0xff] }
 0x225   : > { %2854 = vmatprep.subr.bf16.mxu1 %v2853_v30  ;;  %v978_v30 = vld [vmem:[#allocation7 + $0xd50] sm:$0xff]  ;;  %3210 = vmatprep.subr.bf16.mxu0 %v3209_v31  ;;  %v711_v7 = vld [vmem:[#allocation7 + $0x4f8] sm:$0xff] }
 0x226   : > { %v2875_v38 = vpack.c.bf16 %v978_v30, %v970_v28  ;;  %v582_v21 = vld [vmem:[#allocation7 + $0xf0] sm:$0xff] }
 0x227   : > { %v3031_v26 = vpack.c.bf16 %v582_v21, %v574_v52  ;;  %v590_v30 = vld [vmem:[#allocation7 + $0x130] sm:$0xff]  ;;  %v743_v52 = vld [vmem:[#allocation7 + $0x5f8] sm:$0xff] }
 0x228   : > { %2856 = vmatpush1.bf16.msra.mxu1 %v2855_v40  ;;  %3212 = vmatpush1.bf16.msra.mxu0 %v3211_v37  ;;  %v1817_v40 = vld [vmem:[#allocation8 + $0x1f8] sm:$0xff]  ;;  %v598_v31 = vld [vmem:[#allocation7 + $0x170] sm:$0xff]  ;;  %v3037_v37 = vpack.c.bf16 %v615_v35, %v607_v32 }
 0x229   : > { %2858 = vmatprep.subr.bf16.mxu1 %v2857_v43  ;;  %v986_v43 = vld [vmem:[#allocation7 + $0xd90] sm:$0xff]  ;;  %v3213_v46 = vpack.c.bf16 %v1817_v40, %v1815_v39  ;;  %v3035_v36 = vpack.c.bf16 %v598_v31, %v590_v30  ;;  %v623_v40 = vld [vmem:[#allocation7 + $0x238] sm:$0xff] }
 0x22a   : > { %v2879_v51 = vpack.c.bf16 %v994_v44, %v986_v43  ;;  %v614_v39 = vld [vmem:[#allocation7 + $0x1f0] sm:$0xff]  ;;  %v767_v32 = vld [vmem:[#allocation7 + $0x6b8] sm:$0xff] }
 0x22b   : > { %3214 = vmatprep.subr.bf16.mxu0 %v3213_v46  ;;  %v622_v43 = vld [vmem:[#allocation7 + $0x230] sm:$0xff]  ;;  %v639_v46 = vld [vmem:[#allocation7 + $0x2b8] sm:$0xff] }
 0x22c   : > { %2860 = vmatpush1.bf16.msra.mxu1 %v2859_v50  ;;  %v3215_v50 = vpack.c.bf16 %v1816_v47, %v1814_v6  ;;  %v631_v6 = vld [vmem:[#allocation7 + $0x278] sm:$0xff]  ;;  %v630_v44 = vld [vmem:[#allocation7 + $0x270] sm:$0xff] }
 0x22d   : > { %2862 = vmatprep.subr.bf16.mxu1 %v2861_v56  ;;  %v1010_v56 = vld [vmem:[#allocation7 + $0xe50] sm:$0xff]  ;;  %v647_v47 = vld [vmem:[#allocation7 + $0x2f8] sm:$0xff]  ;;  %v3043_v48 = vpack.c.bf16 %v630_v44, %v622_v43 }
 0x22e   : > { %3216 = vmatpush1.bf16.msra.mxu0 %v3215_v50  ;;  %v2883_v58 = vpack.c.bf16 %v1010_v56, %v1002_v55  ;;  %v3045_v49 = vpack.c.bf16 %v647_v47, %v639_v46  ;;  %v638_v50 = vld [vmem:[#allocation7 + $0x2b0] sm:$0xff]  ;;  %v663_v55 = vld [vmem:[#allocation7 + $0x378] sm:$0xff] }
 0x22f   : > { %v718_v18 = vld [vmem:[#allocation7 + $0x530] sm:$0xff]  ;;  %v775_v35 = vld [vmem:[#allocation7 + $0x6f8] sm:$0xff] }
 0x230   : > { %2864 = vmatpush1.bf16.msra.mxu1 %v2863_v62  ;;  %v1043_v62 = vld [vmem:[#allocation7 + $0xf58] sm:$0xff]  ;;  %v750_v30 = vld [vmem:[#allocation7 + $0x630] sm:$0xff] }
 0x231   : > { %2866 = vmatprep.subr.bf16.mxu1 %v2865_v2  ;;  %v2889_v0 = vpack.c.bf16 %v1043_v62, %v1035_v61  ;;  %v1042_v2 = vld [vmem:[#allocation7 + $0xf50] sm:$0xff]  ;;  %v799_v46 = vld [vmem:[#allocation7 + $0x7b8] sm:$0xff] }
 0x232   : > { %v2891_v5 = vpack.c.bf16 %v1042_v2, %v1034_v1  ;;  %v670_v62 = vld [vmem:[#allocation7 + $0x3b0] sm:$0xff]  ;;  %v695_v1 = vld [vmem:[#allocation7 + $0x478] sm:$0xff] }
 0x233   : > { %v758_v31 = vld [vmem:[#allocation7 + $0x670] sm:$0xff]  ;;  %v807_v47 = vld [vmem:[#allocation7 + $0x7f8] sm:$0xff] }
 0x234   : > { %2868 = vmatpush1.bf16.msra.mxu1 %v2867_v11  ;;  %v567_v11 = vld [vmem:[#allocation7 + $0x78] sm:$0xff]  ;;  %v782_v43 = vld [vmem:[#allocation7 + $0x730] sm:$0xff] }
 0x235   : > { %2870 = vmatprep.subr.bf16.mxu1 %v2869_v16  ;;  %v3025_v13 = vpack.c.bf16 %v567_v11, %v559_v10  ;;  %v566_v16 = vld [vmem:[#allocation7 + $0x70] sm:$0xff] }
 0x236   : > { %v3027_v19 = vpack.c.bf16 %v566_v16, %v558_v14  ;;  %v702_v11 = vld [vmem:[#allocation7 + $0x4b0] sm:$0xff]  ;;  %v727_v14 = vld [vmem:[#allocation7 + $0x578] sm:$0xff] }
 0x237   : > { %v790_v44 = vld [vmem:[#allocation7 + $0x770] sm:$0xff] }
 0x238   : > { %2872 = vmatpush1.bf16.msra.mxu1 %v2871_v23  ;;  %v599_v23 = vld [vmem:[#allocation7 + $0x178] sm:$0xff] }
 0x239   : > { %2874 = vmatprep.subr.bf16.mxu1 %v2873_v27  ;;  %v3217_v27 = vpack.c.bf16 %v1821_v25, %v1819_v24  ;;  %v3033_v28 = vpack.c.bf16 %v599_v23, %v591_v22  ;;  %v734_v23 = vld [vmem:[#allocation7 + $0x5b0] sm:$0xff]  ;;  %v751_v25 = vld [vmem:[#allocation7 + $0x638] sm:$0xff] }
 0x23a   : > { %v742_v24 = vld [vmem:[#allocation7 + $0x5f0] sm:$0xff] }
 0x23b   : > { %3218 = vmatprep.subr.bf16.mxu0 %v3217_v27  ;;  %v3071_v27 = vpack.c.bf16 %v742_v24, %v734_v23 }
 0x23c   : > { %2876 = vmatpush1.bf16.msra.mxu1 %v2875_v38  ;;  %v606_v38 = vld [vmem:[#allocation7 + $0x1b0] sm:$0xff] }
 0x23d   : > { %2878 = vmatprep.subr.bf16.mxu1 %v2877_v42  ;;  %v3039_v42 = vpack.c.bf16 %v614_v39, %v606_v38  ;;  %v766_v38 = vld [vmem:[#allocation7 + $0x6b0] sm:$0xff] }
 0x23e   : > { %v774_v39 = vld [vmem:[#allocation7 + $0x6f0] sm:$0xff] }
 0x240   : > { %2880 = vmatpush1.bf16.msra.mxu1 %v2879_v51  ;;  %v646_v51 = vld [vmem:[#allocation7 + $0x2f0] sm:$0xff] }
 0x241   : > { %2882 = vmatprep.subr.bf16.mxu1 %v2881_v53  ;;  %v655_v53 = vld [vmem:[#allocation7 + $0x338] sm:$0xff]  ;;  %v3047_v56 = vpack.c.bf16 %v646_v51, %v638_v50  ;;  %v798_v50 = vld [vmem:[#allocation7 + $0x7b0] sm:$0xff] }
 0x242   : > { %v3049_v57 = vpack.c.bf16 %v663_v55, %v655_v53  ;;  %v806_v51 = vld [vmem:[#allocation7 + $0x7f0] sm:$0xff]  ;;  %v815_v53 = vld [vmem:[#allocation7 + $0x838] sm:$0xff] }
 0x243   : > { %v823_v55 = vld [vmem:[#allocation7 + $0x878] sm:$0xff] }
 0x244   : > { %2884 = vmatpush1.bf16.msra.mxu1 %v2883_v58  ;;  %v662_v58 = vld [vmem:[#allocation7 + $0x370] sm:$0xff] }
 0x245   : > { %2886 = vmatprep.subr.bf16.mxu1 %v2885_v41  ;;  %v671_v41 = vld [vmem:[#allocation7 + $0x3b8] sm:$0xff]  ;;  %v3051_v60 = vpack.c.bf16 %v662_v58, %v654_v54  ;;  %v814_v54 = vld [vmem:[#allocation7 + $0x830] sm:$0xff] }
 0x246   : > { %v3053_v61 = vpack.c.bf16 %v679_v59, %v671_v41  ;;  %v822_v58 = vld [vmem:[#allocation7 + $0x870] sm:$0xff]  ;;  %v831_v41 = vld [vmem:[#allocation7 + $0x8b8] sm:$0xff] }
 0x247   : > { %v839_v59 = vld [vmem:[#allocation7 + $0x8f8] sm:$0xff] }
 0x248   : > { %2888 = vmatpush1.bf16.msra.mxu1 %v2887_v63  ;;  %v678_v63 = vld [vmem:[#allocation7 + $0x3f0] sm:$0xff] }
 0x249   : > { %2890 = vmatprep.subr.bf16.mxu1 %v2889_v0  ;;  %v687_v0 = vld [vmem:[#allocation7 + $0x438] sm:$0xff]  ;;  %v3055_v2 = vpack.c.bf16 %v678_v63, %v670_v62  ;;  %v830_v62 = vld [vmem:[#allocation7 + $0x8b0] sm:$0xff] }
 0x24a   : > { %v3057_v3 = vpack.c.bf16 %v695_v1, %v687_v0  ;;  %v838_v63 = vld [vmem:[#allocation7 + $0x8f0] sm:$0xff]  ;;  %v847_v0 = vld [vmem:[#allocation7 + $0x938] sm:$0xff] }
 0x24b   : > { %v855_v1 = vld [vmem:[#allocation7 + $0x978] sm:$0xff] }
 0x24c   : > { %2892 = vmatpush1.bf16.msra.mxu1 %v2891_v5  ;;  %v694_v5 = vld [vmem:[#allocation7 + $0x470] sm:$0xff] }
 0x24d   : > { %2894 = vmatprep.subr.bf16.mxu1 %v2893_v34  ;;  %v703_v34 = vld [vmem:[#allocation7 + $0x4b8] sm:$0xff]  ;;  %v3059_v8 = vpack.c.bf16 %v694_v5, %v686_v4  ;;  %v846_v4 = vld [vmem:[#allocation7 + $0x930] sm:$0xff] }
 0x24e   : > { %v3061_v10 = vpack.c.bf16 %v711_v7, %v703_v34  ;;  %v854_v5 = vld [vmem:[#allocation7 + $0x970] sm:$0xff]  ;;  %v863_v34 = vld [vmem:[#allocation7 + $0x9b8] sm:$0xff] }
 0x24f   : > { %v871_v7 = vld [vmem:[#allocation7 + $0x9f8] sm:$0xff] }
 0x250   : > { %2896 = vmatpush1.bf16.msra.mxu1 %v2895_v12  ;;  %v710_v12 = vld [vmem:[#allocation7 + $0x4f0] sm:$0xff] }
 0x251   : > { %3026 = vmatprep.subr.bf16.mxu1 %v3025_v13  ;;  %v719_v13 = vld [vmem:[#allocation7 + $0x538] sm:$0xff]  ;;  %v3063_v16 = vpack.c.bf16 %v710_v12, %v702_v11  ;;  %v862_v11 = vld [vmem:[#allocation7 + $0x9b0] sm:$0xff] }
 0x252   : > { %v3065_v17 = vpack.c.bf16 %v727_v14, %v719_v13  ;;  %v870_v12 = vld [vmem:[#allocation7 + $0x9f0] sm:$0xff]  ;;  %v879_v13 = vld [vmem:[#allocation7 + $0xa38] sm:$0xff] }
 0x253   : > { %1416 = vmatmul.mubr.f32.vlgmr.msra.gmra.mrb[2].mxu1 %v4132_v29  ;;  %v887_v14 = vld [vmem:[#allocation7 + $0xa78] sm:$0xff] }
 0x254   : > { %3028 = vmatpush1.bf16.msra.mxu1 %v3027_v19  ;;  %1628 = vmatprep.mubr.f32.mxu1 %v4109_v9  ;;  %v3041_v9 = vpack.c.bf16 %v631_v6, %v623_v40  ;;  %v726_v19 = vld [vmem:[#allocation7 + $0x570] sm:$0xff]  ;;  %v783_v40 = vld [vmem:[#allocation7 + $0x738] sm:$0xff] }
 0x255   : > { %3030 = vmatprep.subr.bf16.mxu1 %v3029_v20  ;;  %v735_v20 = vld [vmem:[#allocation7 + $0x5b8] sm:$0xff]  ;;  %v3067_v21 = vpack.c.bf16 %v726_v19, %v718_v18  ;;  %v878_v18 = vld [vmem:[#allocation7 + $0xa30] sm:$0xff] }
 0x256   : > { %v3069_v22 = vpack.c.bf16 %v743_v52, %v735_v20  ;;  %v791_v6 = vld [vmem:[#allocation7 + $0x778] sm:$0xff]  ;;  %v886_v19 = vld [vmem:[#allocation7 + $0xa70] sm:$0xff] }
 0x257   : > { %v895_v20 = vld [vmem:[#allocation7 + $0xab8] sm:$0xff]  ;;  %v3107_v23 = vpack.c.bf16 %v886_v19, %v878_v18 }
 0x258   : > { %3032 = vmatpush1.bf16.msra.mxu1 %v3031_v26  ;;  %v759_v26 = vld [vmem:[#allocation7 + $0x678] sm:$0xff] }
 0x259   : > { %3034 = vmatprep.subr.bf16.mxu1 %v3033_v28  ;;  %v3073_v28 = vpack.c.bf16 %v759_v26, %v751_v25  ;;  %v903_v52 = vld [vmem:[#allocation7 + $0xaf8] sm:$0xff]  ;;  %v894_v26 = vld [vmem:[#allocation7 + $0xab0] sm:$0xff] }
 0x25a   : > { %v3109_v25 = vpack.c.bf16 %v903_v52, %v895_v20  ;;  %v998_v52 = vld [vmem:[#allocation7 + $0xdf0] sm:$0xff] }
 0x25c   : > { %3036 = vmatpush1.bf16.msra.mxu1 %v3035_v36  ;;  %v3075_v36 = vpack.c.bf16 %v758_v31, %v750_v30  ;;  %v919_v30 = vld [vmem:[#allocation7 + $0xb78] sm:$0xff] }
 0x25d   : > { %3038 = vmatprep.subr.bf16.mxu1 %v3037_v37  ;;  %v3077_v37 = vpack.c.bf16 %v775_v35, %v767_v32 }
 0x260   : > { %3040 = vmatpush1.bf16.msra.mxu1 %v3039_v42  ;;  %v3079_v42 = vpack.c.bf16 %v774_v39, %v766_v38  ;;  %v918_v38 = vld [vmem:[#allocation7 + $0xb70] sm:$0xff] }
 0x261   : > { %3042 = vmatprep.subr.bf16.mxu1 %v3041_v9  ;;  %v3081_v9 = vpack.c.bf16 %v791_v6, %v783_v40  ;;  %v927_v6 = vld [vmem:[#allocation7 + $0xbb8] sm:$0xff] }
 0x264   : > { %3044 = vmatpush1.bf16.msra.mxu1 %v3043_v48  ;;  %v3083_v48 = vpack.c.bf16 %v790_v44, %v782_v43 }
 0x265   : > { %3046 = vmatprep.subr.bf16.mxu1 %v3045_v49  ;;  %v3085_v49 = vpack.c.bf16 %v807_v47, %v799_v46 }
 0x268   : > { %3048 = vmatpush1.bf16.msra.mxu1 %v3047_v56  ;;  %v3087_v56 = vpack.c.bf16 %v806_v51, %v798_v50  ;;  %v926_v50 = vld [vmem:[#allocation7 + $0xbb0] sm:$0xff] }
 0x269   : > { %3050 = vmatprep.subr.bf16.mxu1 %v3049_v57  ;;  %v3089_v57 = vpack.c.bf16 %v823_v55, %v815_v53  ;;  %v934_v51 = vld [vmem:[#allocation7 + $0xbf0] sm:$0xff]  ;;  %v943_v55 = vld [vmem:[#allocation7 + $0xc38] sm:$0xff] }
 0x26c   : > { %3052 = vmatpush1.bf16.msra.mxu1 %v3051_v60  ;;  %v3091_v60 = vpack.c.bf16 %v822_v58, %v814_v54  ;;  %v3119_v58 = vpack.c.bf16 %v934_v51, %v926_v50  ;;  %v1826_v50 = vld [vmem:[#allocation8 + $0x240] sm:$0xff]  ;;  %v1828_v51 = vld [vmem:[#allocation8 + $0x250] sm:$0xff] }
 0x26d   : > { %3054 = vmatprep.subr.bf16.mxu1 %v3053_v61  ;;  %v3093_v61 = vpack.c.bf16 %v839_v59, %v831_v41  ;;  %v942_v59 = vld [vmem:[#allocation7 + $0xc30] sm:$0xff] }
 0x270   : > { %3056 = vmatpush1.bf16.msra.mxu1 %v3055_v2  ;;  %v3095_v2 = vpack.c.bf16 %v838_v63, %v830_v62  ;;  %v967_v62 = vld [vmem:[#allocation7 + $0xcf8] sm:$0xff] }
 0x271   : > { %3058 = vmatprep.subr.bf16.mxu1 %v3057_v3  ;;  %v3097_v3 = vpack.c.bf16 %v855_v1, %v847_v0  ;;  %v958_v1 = vld [vmem:[#allocation7 + $0xcb0] sm:$0xff] }
 0x274   : > { %3060 = vmatpush1.bf16.msra.mxu1 %v3059_v8  ;;  %v3099_v8 = vpack.c.bf16 %v854_v5, %v846_v4  ;;  %v983_v4 = vld [vmem:[#allocation7 + $0xd78] sm:$0xff] }
 0x275   : > { %3062 = vmatprep.subr.bf16.mxu1 %v3061_v10  ;;  %v3101_v10 = vpack.c.bf16 %v871_v7, %v863_v34  ;;  %v974_v7 = vld [vmem:[#allocation7 + $0xd30] sm:$0xff] }
 0x278   : > { %3064 = vmatpush1.bf16.msra.mxu1 %v3063_v16  ;;  %v4147_v16 = vsub.s32 5, %v4091_v33 }
 0x279   : > { %3066 = vmatprep.subr.bf16.mxu1 %v3065_v17  ;;  %v3105_v17 = vpack.c.bf16 %v887_v14, %v879_v13  ;;  %v990_v14 = vld [vmem:[#allocation7 + $0xdb0] sm:$0xff] }
 0x27c   : > { %3068 = vmatpush1.bf16.msra.mxu1 %v3067_v21  ;;  %v3587_v21 = vld [vmem:[#allocation10] sm:$0xff] }
 0x27d   : > { %3070 = vmatprep.subr.bf16.mxu1 %v3069_v22  ;;  %v1073_v24 = vrot.slane %v3587_v21, %v4147_v16 }
 0x280   : > { %3072 = vmatpush1.bf16.msra.mxu1 %v3071_v27  ;;  %v902_v27 = vld [vmem:[#allocation7 + $0xaf0] sm:$0xff] }
 0x281   : > { %3074 = vmatprep.subr.bf16.mxu1 %v3073_v28  ;;  %v911_v28 = vld [vmem:[#allocation7 + $0xb38] sm:$0xff]  ;;  %v3111_v35 = vpack.c.bf16 %v902_v27, %v894_v26 }
 0x284   : > { %3076 = vmatpush1.bf16.msra.mxu1 %v3075_v36  ;;  %v3113_v36 = vpack.c.bf16 %v919_v30, %v911_v28  ;;  %v3135_v28 = vpack.c.bf16 %v998_v52, %v990_v14  ;;  %v1006_v30 = vld [vmem:[#allocation7 + $0xe30] sm:$0xff]  ;;  %v1839_v14 = vld [vmem:[#allocation8 + $0x2a8] sm:$0xff] }
 0x285   : > { %3078 = vmatprep.subr.bf16.mxu1 %v3077_v37  ;;  %v910_v37 = vld [vmem:[#allocation7 + $0xb30] sm:$0xff] }
 0x286   : > { %v3115_v47 = vpack.c.bf16 %v918_v38, %v910_v37  ;;  %v1014_v38 = vld [vmem:[#allocation7 + $0xe70] sm:$0xff] }
 0x287   : > { %v1840_v52 = vld [vmem:[#allocation8 + $0x2b0] sm:$0xff] }
 0x288   : > { %3080 = vmatpush1.bf16.msra.mxu1 %v3079_v42  ;;  %v935_v42 = vld [vmem:[#allocation7 + $0xbf8] sm:$0xff] }
 0x289   : > { %3082 = vmatprep.subr.bf16.mxu1 %v3081_v9 }
 0x28c   : > { %3084 = vmatpush1.bf16.msra.mxu1 %v3083_v48 }
 0x28d   : > { %3086 = vmatprep.subr.bf16.mxu1 %v3085_v49  ;;  %v3117_v49 = vpack.c.bf16 %v935_v42, %v927_v6  ;;  %v1829_v6 = vld [vmem:[#allocation8 + $0x258] sm:$0xff] }
 0x28e   : > { %v1023_v42 = vld [vmem:[#allocation7 + $0xeb8] sm:$0xff] }
 0x290   : > { %3088 = vmatpush1.bf16.msra.mxu1 %v3087_v56  ;;  %v951_v56 = vld [vmem:[#allocation7 + $0xc78] sm:$0xff] }
 0x291   : > { %3090 = vmatprep.subr.bf16.mxu1 %v3089_v57  ;;  %v3121_v41 = vpack.c.bf16 %v951_v56, %v943_v55  ;;  %v1831_v55 = vld [vmem:[#allocation8 + $0x268] sm:$0xff]  ;;  %v1833_v56 = vld [vmem:[#allocation8 + $0x278] sm:$0xff] }
 0x293   : > { %1629 = vmatmul.mubr.f32.vlgmr.msra.gmra.mrb[4].mxu1 %v4113_v15  ;;  %v4144_v15 = vsub.s32 1, %v4091_v33 }
 0x294   : > { %3092 = vmatpush1.bf16.msra.mxu1 %v3091_v60  ;;  %1699 = vmatprep.mubr.f32.mxu1 %v4119_v45  ;;  %v3103_v45 = vpack.c.bf16 %v870_v12, %v862_v11  ;;  %v950_v60 = vld [vmem:[#allocation7 + $0xc70] sm:$0xff]  ;;  %v999_v11 = vld [vmem:[#allocation7 + $0xdf8] sm:$0xff] }
 0x295   : > { %3094 = vmatprep.subr.bf16.mxu1 %v3093_v61  ;;  %v1069_v22 = vrot.slane %v3587_v21, %v4144_v15  ;;  %v1113_v32 = vrot.slane %v1073_v24, %v4144_v15  ;;  %v959_v61 = vld [vmem:[#allocation7 + $0xcb8] sm:$0xff]  ;;  %v3123_v63 = vpack.c.bf16 %v950_v60, %v942_v59  ;;  %v1823_v21 = vld [vmem:[#allocation8 + $0x228] sm:$0xff]  ;;  %v1038_v59 = vld [vmem:[#allocation7 + $0xf30] sm:$0xff]  ;;  %v3229_v60 = vpack.c.bf16 %v1833_v56, %v1831_v55 }
 0x296   : > { %v3125_v0 = vpack.c.bf16 %v967_v62, %v959_v61  ;;  %v1007_v24 = vld [vmem:[#allocation7 + $0xe38] sm:$0xff]  ;;  %v1830_v61 = vld [vmem:[#allocation8 + $0x260] sm:$0xff]  ;;  %v1832_v62 = vld [vmem:[#allocation8 + $0x270] sm:$0xff] }
 0x297   : > { %v1109_v31 = vrot.slane %v1069_v22, %v4144_v15  ;;  %v1825_v22 = vld [vmem:[#allocation8 + $0x238] sm:$0xff]  ;;  %v1858_v55 = vld [vmem:[#allocation8 + $0x340] sm:$0xff]  ;;  %v1860_v56 = vld [vmem:[#allocation8 + $0x350] sm:$0xff] }
 0x298   : > { %3096 = vmatpush1.bf16.msra.mxu1 %v3095_v2  ;;  %v966_v2 = vld [vmem:[#allocation7 + $0xcf0] sm:$0xff] }
 0x299   : > { %3098 = vmatprep.subr.bf16.mxu1 %v3097_v3  ;;  %v975_v3 = vld [vmem:[#allocation7 + $0xd38] sm:$0xff]  ;;  %v3127_v5 = vpack.c.bf16 %v966_v2, %v958_v1  ;;  %v1835_v1 = vld [vmem:[#allocation8 + $0x288] sm:$0xff] }
 0x29a   : > { %v3129_v34 = vpack.c.bf16 %v983_v4, %v975_v3  ;;  %v1837_v2 = vld [vmem:[#allocation8 + $0x298] sm:$0xff] }
 0x29b   : > { %v1055_v3 = vld [vmem:[#allocation7 + $0xfb8] sm:$0xff] }
 0x29c   : > { %3100 = vmatpush1.bf16.msra.mxu1 %v3099_v8  ;;  %v982_v8 = vld [vmem:[#allocation7 + $0xd70] sm:$0xff]  ;;  %v1063_v4 = vld [vmem:[#allocation7 + $0xff8] sm:$0xff] }
 0x29d   : > { %3102 = vmatprep.subr.bf16.mxu1 %v3101_v10  ;;  %v991_v10 = vld [vmem:[#allocation7 + $0xdb8] sm:$0xff]  ;;  %v3131_v13 = vpack.c.bf16 %v982_v8, %v974_v7  ;;  %v1054_v7 = vld [vmem:[#allocation7 + $0xfb0] sm:$0xff]  ;;  %v3233_v8 = vpack.c.bf16 %v1837_v2, %v1835_v1  ;;  %v1866_v1 = vld [vmem:[#allocation8 + $0x380] sm:$0xff] }
 0x29e   : > { %v3133_v20 = vpack.c.bf16 %v999_v11, %v991_v10  ;;  %v1834_v10 = vld [vmem:[#allocation8 + $0x280] sm:$0xff]  ;;  %v1836_v11 = vld [vmem:[#allocation8 + $0x290] sm:$0xff] }
 0x29f   : > { %v1868_v2 = vld [vmem:[#allocation8 + $0x390] sm:$0xff] }
 0x2a0   : > { %3104 = vmatpush1.bf16.msra.mxu1 %v3103_v45  ;;  %v1818_v45 = vld [vmem:[#allocation8 + $0x200] sm:$0xff] }
 0x2a1   : > { %3106 = vmatprep.subr.bf16.mxu1 %v3105_v17  ;;  %v1820_v17 = vld [vmem:[#allocation8 + $0x210] sm:$0xff] }
 0x2a2   : > { %v3219_v26 = vpack.c.bf16 %v1820_v17, %v1818_v45  ;;  %v1841_v45 = vld [vmem:[#allocation8 + $0x2b8] sm:$0xff]  ;;  %v3235_v17 = vpack.c.bf16 %v1836_v11, %v1834_v10  ;;  %v1875_v10 = vld [vmem:[#allocation8 + $0x3c8] sm:$0xff] }
 0x2a3   : > { %v1877_v11 = vld [vmem:[#allocation8 + $0x3d8] sm:$0xff] }
 0x2a4   : > { %3108 = vmatpush1.bf16.msra.mxu1 %v3107_v23 }
 0x2a5   : > { %3110 = vmatprep.subr.bf16.mxu1 %v3109_v25  ;;  %v1015_v25 = vld [vmem:[#allocation7 + $0xe78] sm:$0xff] }
 0x2a6   : > { %v1275_v39 = vpop.f32.mrb[0].mxu1  ;;  %v4153_v40 = vpop.f32.mrb[4].mxu0  ;;  %v3137_v37 = vpack.c.bf16 %v1015_v25, %v1007_v24  ;;  %v1842_v25 = vld [vmem:[#allocation8 + $0x2c0] sm:$0xff] }
 0x2a7   : > { %v4155_v9 = vadd.f32 %v1275_v39, %v1109_v31  ;;  %v1277_v43 = vpop.f32.mrb[1].mxu1  ;;  %v4157_v44 = vpop.f32.mrb[5].mxu0  ;;  %v3221_v31 = vpack.c.bf16 %v1825_v22, %v1823_v21  ;;  %v1827_v39 = vld [vmem:[#allocation8 + $0x248] sm:$0xff]  ;;  %v1845_v22 = vld [vmem:[#allocation8 + $0x2d8] sm:$0xff] }
 0x2a8   : > { %v3442_v46 = vadd.f32 %v1277_v43, %v1113_v32  ;;  %3112 = vmatpush1.bf16.msra.mxu1 %v3111_v35  ;;  %v1822_v32 = vld [vmem:[#allocation8 + $0x220] sm:$0xff]  ;;  %v1824_v35 = vld [vmem:[#allocation8 + $0x230] sm:$0xff]  ;;  %v1031_v43 = vld [vmem:[#allocation7 + $0xef8] sm:$0xff] }
 0x2a9   : > { %v1714_v48 = vmin.f32 %v4155_v9, 0.0  ;;  %3114 = vmatprep.subr.bf16.mxu1 %v3113_v36  ;;  %vm1706_vm6 = vcmp.gt.f32.partialorder %v4155_v9, 0.0  ;;  %v1843_v21 = vld [vmem:[#allocation8 + $0x2c8] sm:$0xff] }
 0x2aa   : > { %v1715_v53 = vmin.f32 %v3442_v46, 0.0  ;;  %vm1707_vm5 = vcmp.gt.f32.partialorder %v3442_v46, 0.0  ;;  %v3241_v24 = vpack.c.bf16 %v1845_v22, %v1843_v21  ;;  %v1880_v21 = vld [vmem:[#allocation8 + $0x3f0] sm:$0xff]  ;;  %v1883_v22 = vld [vmem:[#allocation8 + $0x408] sm:$0xff] }
 0x2ab   : > { %v1722_v57 = vmul.f32 1.442695, %v1714_v48  ;;  %v1022_v48 = vld [vmem:[#allocation7 + $0xeb0] sm:$0xff] }
 0x2ac   : > { %v1724_v54 = vmul.f32 1.442695, %v1715_v53  ;;  %3116 = vmatpush1.bf16.msra.mxu1 %v3115_v47  ;;  %v3223_v47 = vpack.c.bf16 %v1824_v35, %v1822_v32  ;;  %v3141_v53 = vpack.c.bf16 %v1031_v43, %v1023_v42  ;;  %v1846_v32 = vld [vmem:[#allocation8 + $0x2e0] sm:$0xff]  ;;  %v1848_v35 = vld [vmem:[#allocation8 + $0x2f0] sm:$0xff]  ;;  %v1855_v43 = vld [vmem:[#allocation8 + $0x328] sm:$0xff] }
 0x2ad   : > { %3567 = vpow2.f32 %v1722_v57  ;;  %3118 = vmatprep.subr.bf16.mxu1 %v3117_v49  ;;  %v3225_v49 = vpack.c.bf16 %v1829_v6, %v1827_v39  ;;  %v1039_v57 = vld [vmem:[#allocation7 + $0xf38] sm:$0xff]  ;;  %v1850_v6 = vld [vmem:[#allocation8 + $0x300] sm:$0xff]  ;;  %v1852_v42 = vld [vmem:[#allocation8 + $0x310] sm:$0xff] }
 0x2ae   : > { %3569 = vpow2.f32 %v1724_v54  ;;  %v1047_v54 = vld [vmem:[#allocation7 + $0xf78] sm:$0xff] }
 0x2b0   : > { %3120 = vmatpush1.bf16.msra.mxu1 %v3119_v58  ;;  %v3227_v58 = vpack.c.bf16 %v1828_v51, %v1826_v50  ;;  %v1859_v50 = vld [vmem:[#allocation8 + $0x348] sm:$0xff]  ;;  %v1861_v51 = vld [vmem:[#allocation8 + $0x358] sm:$0xff] }
 0x2b1   : > { %3122 = vmatprep.subr.bf16.mxu1 %v3121_v41 }
 0x2b4   : > { %3124 = vmatpush1.bf16.msra.mxu1 %v3123_v63  ;;  %v3145_v63 = vpack.c.bf16 %v1047_v54, %v1039_v57  ;;  %v1863_v57 = vld [vmem:[#allocation8 + $0x368] sm:$0xff]  ;;  %v1865_v54 = vld [vmem:[#allocation8 + $0x378] sm:$0xff] }
 0x2b5   : > { %3126 = vmatprep.subr.bf16.mxu1 %v3125_v0  ;;  %v1046_v0 = vld [vmem:[#allocation7 + $0xf70] sm:$0xff] }
 0x2b7   : > { %v3568_v12 = vpop.eup %3567 }
 0x2b8   : > { %3128 = vmatpush1.bf16.msra.mxu1 %v3127_v5  ;;  %v3570_v18 = vpop.eup %3569  ;;  %v2576_v19 = vadd.f32 -1.0, %v3568_v12  ;;  %v3231_v5 = vpack.c.bf16 %v1832_v62, %v1830_v61  ;;  %v3149_v12 = vpack.c.bf16 %v1063_v4, %v1055_v3  ;;  %v1867_v61 = vld [vmem:[#allocation8 + $0x388] sm:$0xff]  ;;  %v1869_v62 = vld [vmem:[#allocation8 + $0x398] sm:$0xff] }
 0x2b9   : > { %3130 = vmatprep.subr.bf16.mxu1 %v3129_v34  ;;  %v2577_v23 = vadd.f32 -1.0, %v3570_v18  ;;  %v3147_v34 = vpack.c.bf16 %v1046_v0, %v1038_v59  ;;  %v1862_v59 = vld [vmem:[#allocation8 + $0x360] sm:$0xff]  ;;  %v3265_v0 = vpack.c.bf16 %v1869_v62, %v1867_v61  ;;  %v1871_v3 = vld [vmem:[#allocation8 + $0x3a8] sm:$0xff]  ;;  %v1873_v4 = vld [vmem:[#allocation8 + $0x3b8] sm:$0xff] }
 0x2ba   : > { %v1746_v36 = vsel %vm1706_vm6, %v4155_v9, %v2576_v19  ;;  %v1030_v9 = vld [vmem:[#allocation7 + $0xef0] sm:$0xff]  ;;  %v3237_v19 = vpack.c.bf16 %v1841_v45, %v1839_v14  ;;  %v1874_v14 = vld [vmem:[#allocation8 + $0x3c0] sm:$0xff] }
 0x2bb   : > { %v1747_v27 = vsel %vm1707_vm5, %v3442_v46, %v2577_v23  ;;  %v3139_v46 = vpack.c.bf16 %v1014_v38, %v1006_v30  ;;  %v3143_v41 = vpack.c.bf16 %v1030_v9, %v1022_v48  ;;  %v3247_v38 = vpack.c.bf16 %v1848_v35, %v1846_v32  ;;  %v1854_v48 = vld [vmem:[#allocation8 + $0x320] sm:$0xff]  ;;  %v1876_v45 = vld [vmem:[#allocation8 + $0x3d0] sm:$0xff] }
 0x2bc   : > { %3132 = vmatpush1.bf16.msra.mxu1 %v3131_v13  ;;  %2092 = vmatprep.mubr.f32.mxu0 %v1747_v27  ;;  %v1062_v13 = vld [vmem:[#allocation7 + $0xff0] sm:$0xff]  ;;  %v1847_v27 = vld [vmem:[#allocation8 + $0x2e8] sm:$0xff]  ;;  %v3257_v9 = vpack.c.bf16 %v1861_v51, %v1859_v50  ;;  %v1882_v51 = vld [vmem:[#allocation8 + $0x400] sm:$0xff] }
 0x2bd   : > { %3134 = vmatprep.subr.bf16.mxu1 %v3133_v20  ;;  %2093 = vmatmul.mubr.f32.vlgmr.msra.gmra.mrb[6].mxu0 %v1746_v36  ;;  %v3151_v18 = vpack.c.bf16 %v1062_v13, %v1054_v7  ;;  %v1838_v20 = vld [vmem:[#allocation8 + $0x2a0] sm:$0xff]  ;;  %v1851_v36 = vld [vmem:[#allocation8 + $0x308] sm:$0xff]  ;;  %v3273_v13 = vpack.c.bf16 %v1877_v11, %v1875_v10  ;;  %v1888_v62 = vld [vmem:[#allocation8 + $0x430] sm:$0xff] }
 0x2be   : > { %3220 = vmatpush1.bf16.msra.mxu0 %v3219_v26  ;;  %v3239_v23 = vpack.c.bf16 %v1840_v52, %v1838_v20  ;;  %v1844_v26 = vld [vmem:[#allocation8 + $0x2d0] sm:$0xff]  ;;  %v1870_v7 = vld [vmem:[#allocation8 + $0x3a0] sm:$0xff]  ;;  %v2325_v11 = vld [vmem:[%s4339_s4 + $0x8] sm:$0xff] }
 0x2bf   : > { %3222 = vmatprep.subr.bf16.mxu0 %v3221_v31  ;;  %v3243_v30 = vpack.c.bf16 %v1844_v26, %v1842_v25  ;;  %v1878_v52 = vld [vmem:[#allocation8 + $0x3e0] sm:$0xff]  ;;  %v4163_v26 = vld [vmem:[#allocation10 + $0x10] sm:$0xff] }
 0x2c0   : > { %3136 = vmatpush1.bf16.msra.mxu1 %v3135_v28  ;;  %v1849_v28 = vld [vmem:[#allocation8 + $0x2f8] sm:$0xff]  ;;  %v1886_v61 = vld [vmem:[#allocation8 + $0x420] sm:$0xff] }
 0x2c1   : > { %3138 = vmatprep.subr.bf16.mxu1 %v3137_v37  ;;  %v3245_v31 = vpack.c.bf16 %v1849_v28, %v1847_v27  ;;  %v1853_v37 = vld [vmem:[#allocation8 + $0x318] sm:$0xff]  ;;  %v1089_v27 = vrot.slane %v4163_v26, %v4147_v16 }
 0x2c2   : > { %3224 = vmatpush1.bf16.msra.mxu0 %v3223_v47  ;;  %v3249_v39 = vpack.c.bf16 %v1853_v37, %v1851_v36  ;;  %v1857_v47 = vld [vmem:[#allocation8 + $0x338] sm:$0xff] }
 0x2c3   : > { %3226 = vmatprep.subr.bf16.mxu0 %v3225_v49  ;;  %v1856_v49 = vld [vmem:[#allocation8 + $0x330] sm:$0xff]  ;;  %v1129_v28 = vrot.slane %v1089_v27, %v4144_v15 }
 0x2c4   : > { %3140 = vmatpush1.bf16.msra.mxu1 %v3139_v46  ;;  %v3251_v46 = vpack.c.bf16 %v1852_v42, %v1850_v6 }
 0x2c5   : > { %3142 = vmatprep.subr.bf16.mxu1 %v3141_v53  ;;  %v3255_v53 = vpack.c.bf16 %v1856_v49, %v1854_v48  ;;  %v3446_v32 = vadd.f32 %v4157_v44, %v1129_v28  ;;  %v1894_v28 = vld [vmem:[#allocation8 + $0x460] sm:$0xff] }
 0x2c6   : > { %3228 = vmatpush1.bf16.msra.mxu0 %v3227_v58  ;;  %v3259_v58 = vpack.c.bf16 %v1860_v56, %v1858_v55  ;;  %v1887_v56 = vld [vmem:[#allocation8 + $0x428] sm:$0xff] }
 0x2c7   : > { %3230 = vmatprep.subr.bf16.mxu0 %v3229_v60  ;;  %v1864_v60 = vld [vmem:[#allocation8 + $0x370] sm:$0xff]  ;;  %v1719_v37 = vmin.f32 %v3446_v32, 0.0  ;;  %vm1711_vm9 = vcmp.gt.f32.partialorder %v3446_v32, 0.0 }
 0x2c8   : > { %3144 = vmatpush1.bf16.msra.mxu1 %v3143_v41  ;;  %v3261_v41 = vpack.c.bf16 %v1865_v54, %v1863_v57  ;;  %v1889_v57 = vld [vmem:[#allocation8 + $0x438] sm:$0xff] }
 0x2c9   : > { %3146 = vmatprep.subr.bf16.mxu1 %v3145_v63  ;;  %v3263_v63 = vpack.c.bf16 %v1864_v60, %v1862_v59  ;;  %v3285_v60 = vpack.c.bf16 %v1889_v57, %v1887_v56  ;;  %v1910_v57 = vld [vmem:[#allocation8 + $0x4e0] sm:$0xff] }
 0x2ca   : > { %3232 = vmatpush1.bf16.msra.mxu0 %v3231_v5  ;;  %v3267_v5 = vpack.c.bf16 %v1868_v2, %v1866_v1  ;;  %v1893_v1 = vld [vmem:[#allocation8 + $0x458] sm:$0xff] }
 0x2cb   : > { %3234 = vmatprep.subr.bf16.mxu0 %v3233_v8  ;;  %v1872_v8 = vld [vmem:[#allocation8 + $0x3b0] sm:$0xff] }
 0x2cc   : > { %3148 = vmatpush1.bf16.msra.mxu1 %v3147_v34  ;;  %v3269_v34 = vpack.c.bf16 %v1873_v4, %v1871_v3  ;;  %v1890_v3 = vld [vmem:[#allocation8 + $0x440] sm:$0xff]  ;;  %v1892_v4 = vld [vmem:[#allocation8 + $0x450] sm:$0xff] }
 0x2cd   : > { %3150 = vmatprep.subr.bf16.mxu1 %v3149_v12  ;;  %v3271_v12 = vpack.c.bf16 %v1872_v8, %v1870_v7  ;;  %v2324_v7 = vld [vmem:[%s4339_s4] sm:$0xff]  ;;  %v3287_v8 = vpack.c.bf16 %v1888_v62, %v1886_v61  ;;  %v1914_v62 = vld [vmem:[#allocation8 + $0x500] sm:$0xff] }
 0x2ce   : > { %3236 = vmatpush1.bf16.msra.mxu0 %v3235_v17  ;;  %v1879_v17 = vld [vmem:[#allocation8 + $0x3e8] sm:$0xff] }
 0x2cf   : > { %3238 = vmatprep.subr.bf16.mxu0 %v3237_v19  ;;  %v3275_v19 = vpack.c.bf16 %v1876_v45, %v1874_v14  ;;  %v3411_v45 = vpack.c.bf16 %v2325_v11, %v2324_v7  ;;  %v1923_v7 = vld [vmem:[#allocation8 + $0x548] sm:$0xff] }
 0x2d0   : > { %3152 = vmatpush1.bf16.msra.mxu1 %v3151_v18  ;;  %v1881_v18 = vld [vmem:[#allocation8 + $0x3f8] sm:$0xff] }
 0x2d1   : > { %v3277_v20 = vpack.c.bf16 %v1881_v18, %v1879_v17  ;;  %v2326_v18 = vld [vmem:[%s4339_s4 + $0x10] sm:$0xff] }
 0x2d2   : > { %3240 = vmatpush1.bf16.msra.mxu0 %v3239_v23  ;;  %v1885_v23 = vld [vmem:[#allocation8 + $0x418] sm:$0xff] }
 0x2d3   : > { %1700 = vmatmul.mubr.f32.vlgmr.msra.gmra.mrb[4].mxu1 %v4132_v29  ;;  %3242 = vmatprep.subr.bf16.mxu0 %v3241_v24  ;;  %v3253_v29 = vpack.c.bf16 %v1857_v47, %v1855_v43  ;;  %v3279_v24 = vpack.c.bf16 %v1880_v21, %v1878_v52  ;;  %v3281_v25 = vpack.c.bf16 %v1885_v23, %v1883_v22  ;;  %v1732_v43 = vmul.f32 1.442695, %v1719_v37  ;;  %v1895_v52 = vld [vmem:[#allocation8 + $0x468] sm:$0xff]  ;;  %v1897_v21 = vld [vmem:[#allocation8 + $0x478] sm:$0xff]  ;;  %v1898_v37 = vld [vmem:[#allocation8 + $0x480] sm:$0xff] }
 0x2d4   : > { %v2345_v22 = vld [vmem:[%s4339_s4 + $0xa8] sm:$0xff]  ;;  %v3293_v27 = vpack.c.bf16 %v1897_v21, %v1895_v52  ;;  %v1928_v52 = vld [vmem:[#allocation8 + $0x570] sm:$0xff]  ;;  %v1931_v21 = vld [vmem:[#allocation8 + $0x588] sm:$0xff] }
 0x2d5   : > { %3571 = vpow2.f32 %v1732_v43 }
 0x2d6   : > { %3244 = vmatpush1.bf16.msra.mxu0 %v3243_v30  ;;  %v3588_v30 = vld [vmem:[#allocation10 + $0x8] sm:$0xff] }
 0x2d7   : > { %3246 = vmatprep.subr.bf16.mxu0 %v3245_v31  ;;  %v1077_v31 = vrot.slane %v3588_v30, %v4144_v15  ;;  %v1081_v35 = vrot.slane %v3588_v30, %v4147_v16  ;;  %v1896_v30 = vld [vmem:[#allocation8 + $0x470] sm:$0xff] }
 0x2d9   : > { %v1117_v36 = vrot.slane %v1077_v31, %v4144_v15  ;;  %v1899_v31 = vld [vmem:[#allocation8 + $0x488] sm:$0xff] }
 0x2da   : > { %3248 = vmatpush1.bf16.msra.mxu0 %v3247_v38  ;;  %v1121_v38 = vrot.slane %v1081_v35, %v4144_v15  ;;  %v3295_v35 = vpack.c.bf16 %v1896_v30, %v1894_v28  ;;  %v1935_v28 = vld [vmem:[#allocation8 + $0x5a8] sm:$0xff]  ;;  %v1937_v30 = vld [vmem:[#allocation8 + $0x5b8] sm:$0xff] }
 0x2db   : > { %3250 = vmatprep.subr.bf16.mxu0 %v3249_v39 }
 0x2de   : > { %3252 = vmatpush1.bf16.msra.mxu0 %v3251_v46 }
 0x2df   : > { %3254 = vmatprep.subr.bf16.mxu0 %v3253_v29  ;;  %v3572_v44 = vpop.eup %3571 }
 0x2e2   : > { %3256 = vmatpush1.bf16.msra.mxu0 %v3255_v53  ;;  %v1884_v53 = vld [vmem:[#allocation8 + $0x410] sm:$0xff] }
 0x2e3   : > { %3258 = vmatprep.subr.bf16.mxu0 %v3257_v9 }
 0x2e6   : > { %3260 = vmatpush1.bf16.msra.mxu0 %v3259_v58  ;;  %v2581_v58 = vadd.f32 -1.0, %v3572_v44 }
 0x2e7   : > { %3262 = vmatprep.subr.bf16.mxu0 %v3261_v41  ;;  %v3283_v41 = vpack.c.bf16 %v1884_v53, %v1882_v51  ;;  %v1908_v51 = vld [vmem:[#allocation8 + $0x4d0] sm:$0xff]  ;;  %v1911_v53 = vld [vmem:[#allocation8 + $0x4e8] sm:$0xff] }
 0x2e8   : > { %v1751_v2 = vsel %vm1711_vm9, %v3446_v32, %v2581_v58  ;;  %v1901_v32 = vld [vmem:[#allocation8 + $0x498] sm:$0xff]  ;;  %v1915_v58 = vld [vmem:[#allocation8 + $0x508] sm:$0xff] }
 0x2ea   : > { %3264 = vmatpush1.bf16.msra.mxu0 %v3263_v63 }
 0x2eb   : > { %3266 = vmatprep.subr.bf16.mxu0 %v3265_v0  ;;  %v1891_v0 = vld [vmem:[#allocation8 + $0x448] sm:$0xff] }
 0x2ec   : > { %v3289_v14 = vpack.c.bf16 %v1893_v1, %v1891_v0  ;;  %v1919_v0 = vld [vmem:[#allocation8 + $0x528] sm:$0xff]  ;;  %v1921_v1 = vld [vmem:[#allocation8 + $0x538] sm:$0xff] }
 0x2ee   : > { %3268 = vmatpush1.bf16.msra.mxu0 %v3267_v5  ;;  %v2340_v5 = vld [vmem:[%s4339_s4 + $0x80] sm:$0xff] }
 0x2ef   : > { %3270 = vmatprep.subr.bf16.mxu0 %v3269_v34  ;;  %v2341_v34 = vld [vmem:[%s4339_s4 + $0x88] sm:$0xff] }
 0x2f0   : > { %v3409_v10 = vpack.c.bf16 %v2341_v34, %v2340_v5  ;;  %v1918_v5 = vld [vmem:[#allocation8 + $0x520] sm:$0xff]  ;;  %v1920_v34 = vld [vmem:[#allocation8 + $0x530] sm:$0xff] }
 0x2f2   : > { %3272 = vmatpush1.bf16.msra.mxu0 %v3271_v12  ;;  %v2342_v12 = vld [vmem:[%s4339_s4 + $0x90] sm:$0xff]  ;;  %3410 = vmatprep.subr.bf16.mxu1 %v3409_v10  ;;  %v3319_v10 = vpack.c.bf16 %v1920_v34, %v1918_v5  ;;  %v1956_v5 = vld [vmem:[#allocation8 + $0x650] sm:$0xff]  ;;  %v1959_v34 = vld [vmem:[#allocation8 + $0x668] sm:$0xff] }
 0x2f3   : > { %3274 = vmatprep.subr.bf16.mxu0 %v3273_v13  ;;  %v2343_v13 = vld [vmem:[%s4339_s4 + $0x98] sm:$0xff]  ;;  %3412 = vmatpush3.bf16.msra.mxu1 %v3411_v45  ;;  %v1929_v45 = vld [vmem:[#allocation8 + $0x578] sm:$0xff] }
 0x2f4   : > { %v3413_v17 = vpack.c.bf16 %v2343_v13, %v2342_v12  ;;  %v1922_v12 = vld [vmem:[#allocation8 + $0x540] sm:$0xff]  ;;  %v1924_v13 = vld [vmem:[#allocation8 + $0x550] sm:$0xff] }
 0x2f6   : > { %3276 = vmatpush1.bf16.msra.mxu0 %v3275_v19  ;;  %v2327_v19 = vld [vmem:[%s4339_s4 + $0x18] sm:$0xff]  ;;  %3414 = vmatprep.subr.bf16.mxu1 %v3413_v17  ;;  %v3323_v17 = vpack.c.bf16 %v1924_v13, %v1922_v12  ;;  %v1960_v12 = vld [vmem:[#allocation8 + $0x670] sm:$0xff] }
 0x2f7   : > { %3278 = vmatprep.subr.bf16.mxu0 %v3277_v20  ;;  %v2344_v20 = vld [vmem:[%s4339_s4 + $0xa0] sm:$0xff]  ;;  %v3415_v23 = vpack.c.bf16 %v2327_v19, %v2326_v18  ;;  %v1963_v13 = vld [vmem:[#allocation8 + $0x688] sm:$0xff] }
 0x2f9   : > { %3416 = vmatpush3.bf16.msra.mxu1 %v3415_v23 }
 0x2fa   : > { %3280 = vmatpush1.bf16.msra.mxu0 %v3279_v24  ;;  %v3291_v24 = vpack.c.bf16 %v1892_v4, %v1890_v3  ;;  %v3317_v4 = vpack.c.bf16 %v1921_v1, %v1919_v0  ;;  %v1955_v0 = vld [vmem:[#allocation8 + $0x648] sm:$0xff]  ;;  %v1957_v1 = vld [vmem:[#allocation8 + $0x658] sm:$0xff] }
 0x2fb   : > { %3282 = vmatprep.subr.bf16.mxu0 %v3281_v25  ;;  %v3417_v25 = vpack.c.bf16 %v2345_v22, %v2344_v20  ;;  %v1926_v20 = vld [vmem:[#allocation8 + $0x560] sm:$0xff]  ;;  %v1933_v22 = vld [vmem:[#allocation8 + $0x598] sm:$0xff] }
 0x2fc   : > { %v3327_v23 = vpack.c.bf16 %v1928_v52, %v1926_v20  ;;  %v1969_v20 = vld [vmem:[#allocation8 + $0x6b8] sm:$0xff] }
 0x2fd   : > { %3418 = vmatprep.subr.bf16.mxu1 %v3417_v25  ;;  %v1930_v25 = vld [vmem:[#allocation8 + $0x580] sm:$0xff] }
 0x326   : > { %v1417_v39 = vpop.f32.mrb[2].mxu1 }
 0x327   : > { %v3443_v6 = vadd.f32 %v1417_v39, %v1117_v36  ;;  %v1419_v42 = vpop.f32.mrb[3].mxu1  ;;  %v3297_v36 = vpack.c.bf16 %v1901_v32, %v1899_v31  ;;  %v1903_v39 = vld [vmem:[#allocation8 + $0x4a8] sm:$0xff]  ;;  %v3333_v32 = vpack.c.bf16 %v1937_v30, %v1935_v28  ;;  %v1970_v28 = vld [vmem:[#allocation8 + $0x6c0] sm:$0xff]  ;;  %v1972_v30 = vld [vmem:[#allocation8 + $0x6d0] sm:$0xff] }
 0x328   : > { %v3444_v47 = vadd.f32 %v1419_v42, %v1121_v38  ;;  %v1900_v38 = vld [vmem:[#allocation8 + $0x490] sm:$0xff] }
 0x329   : > { %v1716_v46 = vmin.f32 %v3443_v6, 0.0  ;;  %vm1708_vm8 = vcmp.gt.f32.partialorder %v3443_v6, 0.0  ;;  %v3299_v42 = vpack.c.bf16 %v1900_v38, %v1898_v37  ;;  %v1939_v37 = vld [vmem:[#allocation8 + $0x5c8] sm:$0xff]  ;;  %v1941_v38 = vld [vmem:[#allocation8 + $0x5d8] sm:$0xff] }
 0x32a   : > { %v1717_v29 = vmin.f32 %v3444_v47, 0.0  ;;  %vm1709_vm7 = vcmp.gt.f32.partialorder %v3444_v47, 0.0 }
 0x32b   : > { %v1726_v48 = vmul.f32 1.442695, %v1716_v46  ;;  %v1904_v46 = vld [vmem:[#allocation8 + $0x4b0] sm:$0xff] }
 0x32c   : > { %v1728_v49 = vmul.f32 1.442695, %v1717_v29  ;;  %v1907_v29 = vld [vmem:[#allocation8 + $0x4c8] sm:$0xff] }
 0x32d   : > { %3573 = vpow2.f32 %v1726_v48  ;;  %v1909_v48 = vld [vmem:[#allocation8 + $0x4d8] sm:$0xff] }
 0x32e   : > { %3575 = vpow2.f32 %v1728_v49  ;;  %v3305_v44 = vpack.c.bf16 %v1909_v48, %v1907_v29 }
 0x337   : > { %v3574_v50 = vpop.eup %3573 }
 0x338   : > { %v3576_v9 = vpop.eup %3575  ;;  %v2578_v55 = vadd.f32 -1.0, %v3574_v50  ;;  %v1906_v50 = vld [vmem:[#allocation8 + $0x4c0] sm:$0xff] }
 0x339   : > { %v2579_v54 = vadd.f32 -1.0, %v3576_v9  ;;  %v1913_v9 = vld [vmem:[#allocation8 + $0x4f8] sm:$0xff] }
 0x33a   : > { %v1748_v63 = vsel %vm1708_vm8, %v3443_v6, %v2578_v55  ;;  %v1905_v6 = vld [vmem:[#allocation8 + $0x4b8] sm:$0xff]  ;;  %v3307_v55 = vpack.c.bf16 %v1908_v51, %v1906_v50  ;;  %v3309_v56 = vpack.c.bf16 %v1913_v9, %v1911_v53  ;;  %v1947_v50 = vld [vmem:[#allocation8 + $0x608] sm:$0xff] }
 0x33b   : > { %v1749_v59 = vsel %vm1709_vm7, %v3444_v47, %v2579_v54  ;;  %v3301_v43 = vpack.c.bf16 %v1905_v6, %v1903_v39  ;;  %v1902_v47 = vld [vmem:[#allocation8 + $0x4a0] sm:$0xff]  ;;  %v1912_v54 = vld [vmem:[#allocation8 + $0x4f0] sm:$0xff]  ;;  %v3337_v6 = vpack.c.bf16 %v1941_v38, %v1939_v37  ;;  %v1949_v51 = vld [vmem:[#allocation8 + $0x618] sm:$0xff] }
 0x33c   : > { %2163 = vmatprep.mubr.f32.mxu0 %v1749_v59  ;;  %v3303_v49 = vpack.c.bf16 %v1904_v46, %v1902_v47  ;;  %v3311_v59 = vpack.c.bf16 %v1912_v54, %v1910_v57  ;;  %v1943_v47 = vld [vmem:[#allocation8 + $0x5e8] sm:$0xff]  ;;  %v1945_v46 = vld [vmem:[#allocation8 + $0x5f8] sm:$0xff]  ;;  %v1948_v57 = vld [vmem:[#allocation8 + $0x610] sm:$0xff] }
 0x33d   : > { %2164 = vmatmul.mubr.f32.vlgmr.msra.gmra.mrb[6].mxu0 %v1748_v63  ;;  %v1916_v63 = vld [vmem:[#allocation8 + $0x510] sm:$0xff]  ;;  %v3341_v48 = vpack.c.bf16 %v1945_v46, %v1943_v47  ;;  %v1974_v37 = vld [vmem:[#allocation8 + $0x6e0] sm:$0xff] }
 0x33e   : > { %3284 = vmatpush1.bf16.msra.mxu0 %v3283_v41  ;;  %2234 = vmatprep.mubr.f32.mxu0 %v1751_v2  ;;  %v1917_v41 = vld [vmem:[#allocation8 + $0x518] sm:$0xff]  ;;  %v3315_v2 = vpack.c.bf16 %v1916_v63, %v1914_v62  ;;  %v1952_v62 = vld [vmem:[#allocation8 + $0x630] sm:$0xff]  ;;  %v1978_v47 = vld [vmem:[#allocation8 + $0x700] sm:$0xff] }
 0x33f   : > { %3286 = vmatprep.subr.bf16.mxu0 %v3285_v60  ;;  %v1085_v60 = vrot.slane %v4163_v26, %v4144_v15  ;;  %v3313_v61 = vpack.c.bf16 %v1917_v41, %v1915_v58  ;;  %v1951_v58 = vld [vmem:[#allocation8 + $0x628] sm:$0xff]  ;;  %v1953_v41 = vld [vmem:[#allocation8 + $0x638] sm:$0xff]  ;;  %v1976_v38 = vld [vmem:[#allocation8 + $0x6f0] sm:$0xff] }
 0x340   : > { %v1980_v46 = vld [vmem:[#allocation8 + $0x710] sm:$0xff] }
 0x341   : > { %v1125_v3 = vrot.slane %v1085_v60, %v4144_v15  ;;  %v3349_v60 = vpack.c.bf16 %v1953_v41, %v1951_v58  ;;  %v1986_v58 = vld [vmem:[#allocation8 + $0x740] sm:$0xff]  ;;  %v1988_v41 = vld [vmem:[#allocation8 + $0x750] sm:$0xff] }
 0x342   : > { %3288 = vmatpush1.bf16.msra.mxu0 %v3287_v8  ;;  %v1925_v8 = vld [vmem:[#allocation8 + $0x558] sm:$0xff] }
 0x343   : > { %3290 = vmatprep.subr.bf16.mxu0 %v3289_v14  ;;  %v4207_v26 = vadd.f32 %v4153_v40, %v1125_v3  ;;  %v3321_v11 = vpack.c.bf16 %v1925_v8, %v1923_v7  ;;  %v1927_v14 = vld [vmem:[#allocation8 + $0x568] sm:$0xff]  ;;  %v3353_v3 = vpack.c.bf16 %v1957_v1, %v1955_v0  ;;  %v1961_v7 = vld [vmem:[#allocation8 + $0x678] sm:$0xff]  ;;  %v1990_v1 = vld [vmem:[#allocation8 + $0x760] sm:$0xff] }
 0x344   : > { %v3325_v19 = vpack.c.bf16 %v1929_v45, %v1927_v14  ;;  %v1965_v14 = vld [vmem:[#allocation8 + $0x698] sm:$0xff] }
 0x345   : > { %v1718_v18 = vmin.f32 %v4207_v26, 0.0  ;;  %vm1710_vm10 = vcmp.gt.f32.partialorder %v4207_v26, 0.0  ;;  %v3361_v45 = vpack.c.bf16 %v1965_v14, %v1963_v13  ;;  %v1999_v14 = vld [vmem:[#allocation8 + $0x7a8] sm:$0xff] }
 0x346   : > { %3292 = vmatpush1.bf16.msra.mxu0 %v3291_v24  ;;  %v3329_v24 = vpack.c.bf16 %v1933_v22, %v1931_v21  ;;  %v1966_v22 = vld [vmem:[#allocation8 + $0x6a0] sm:$0xff] }
 0x347   : > { %3294 = vmatprep.subr.bf16.mxu0 %v3293_v27  ;;  %v1730_v40 = vmul.f32 1.442695, %v1718_v18  ;;  %v1932_v27 = vld [vmem:[#allocation8 + $0x590] sm:$0xff] }
 0x348   : > { %v3331_v31 = vpack.c.bf16 %v1932_v27, %v1930_v25  ;;  %v1964_v18 = vld [vmem:[#allocation8 + $0x690] sm:$0xff] }
 0x349   : > { %3577 = vpow2.f32 %v1730_v40  ;;  %v1971_v40 = vld [vmem:[#allocation8 + $0x6c8] sm:$0xff] }
 0x34a   : > { %3296 = vmatpush1.bf16.msra.mxu0 %v3295_v35  ;;  %v1934_v35 = vld [vmem:[#allocation8 + $0x5a0] sm:$0xff] }
 0x34b   : > { %3298 = vmatprep.subr.bf16.mxu0 %v3297_v36  ;;  %v1936_v36 = vld [vmem:[#allocation8 + $0x5b0] sm:$0xff] }
 0x34c   : > { %v3335_v39 = vpack.c.bf16 %v1936_v36, %v1934_v35  ;;  %v3371_v35 = vpack.c.bf16 %v1972_v30, %v1970_v28  ;;  %v2007_v28 = vld [vmem:[#allocation8 + $0x7e8] sm:$0xff]  ;;  %v2009_v30 = vld [vmem:[#allocation8 + $0x7f8] sm:$0xff] }
 0x34e   : > { %3300 = vmatpush1.bf16.msra.mxu0 %v3299_v42  ;;  %v1938_v42 = vld [vmem:[#allocation8 + $0x5c0] sm:$0xff] }
 0x34f   : > { %3302 = vmatprep.subr.bf16.mxu0 %v3301_v43  ;;  %v1940_v43 = vld [vmem:[#allocation8 + $0x5d0] sm:$0xff] }
 0x350   : > { %v3339_v29 = vpack.c.bf16 %v1940_v43, %v1938_v42  ;;  %v3375_v42 = vpack.c.bf16 %v1976_v38, %v1974_v37 }
 0x352   : > { %3304 = vmatpush1.bf16.msra.mxu0 %v3303_v49  ;;  %v1942_v49 = vld [vmem:[#allocation8 + $0x5e0] sm:$0xff] }
 0x353   : > { %3306 = vmatprep.subr.bf16.mxu0 %v3305_v44  ;;  %v1944_v44 = vld [vmem:[#allocation8 + $0x5f0] sm:$0xff]  ;;  %v3578_v53 = vpop.eup %3577 }
 0x354   : > { %v3343_v9 = vpack.c.bf16 %v1944_v44, %v1942_v49  ;;  %v2580_v54 = vadd.f32 -1.0, %v3578_v53  ;;  %v3379_v49 = vpack.c.bf16 %v1980_v46, %v1978_v47  ;;  %v1987_v53 = vld [vmem:[#allocation8 + $0x748] sm:$0xff]  ;;  %v2328_v46 = vld [vmem:[%s4339_s4 + $0x20] sm:$0xff] }
 0x356   : > { %3308 = vmatpush1.bf16.msra.mxu0 %v3307_v55  ;;  %v3345_v55 = vpack.c.bf16 %v1949_v51, %v1947_v50  ;;  %v1750_v63 = vsel %vm1710_vm10, %v4207_v26, %v2580_v54  ;;  %v1982_v50 = vld [vmem:[#allocation8 + $0x720] sm:$0xff]  ;;  %v1984_v51 = vld [vmem:[#allocation8 + $0x730] sm:$0xff] }
 0x357   : > { %3310 = vmatprep.subr.bf16.mxu0 %v3309_v56  ;;  %v1946_v56 = vld [vmem:[#allocation8 + $0x600] sm:$0xff] }
 0x35a   : > { %3312 = vmatpush1.bf16.msra.mxu0 %v3311_v59  ;;  %v3347_v59 = vpack.c.bf16 %v1948_v57, %v1946_v56  ;;  %v3383_v56 = vpack.c.bf16 %v1984_v51, %v1982_v50  ;;  %v2330_v51 = vld [vmem:[%s4339_s4 + $0x30] sm:$0xff] }
 0x35b   : > { %3314 = vmatprep.subr.bf16.mxu0 %v3313_v61  ;;  %v1950_v61 = vld [vmem:[#allocation8 + $0x620] sm:$0xff] }
 0x35e   : > { %3316 = vmatpush1.bf16.msra.mxu0 %v3315_v2  ;;  %v3351_v2 = vpack.c.bf16 %v1952_v62, %v1950_v61  ;;  %v1993_v61 = vld [vmem:[#allocation8 + $0x778] sm:$0xff]  ;;  %v3387_v62 = vpack.c.bf16 %v1988_v41, %v1986_v58  ;;  %v2350_v41 = vld [vmem:[%s4339_s4 + $0xd0] sm:$0xff] }
 0x35f   : > { %3318 = vmatprep.subr.bf16.mxu0 %v3317_v4  ;;  %v1954_v4 = vld [vmem:[#allocation8 + $0x640] sm:$0xff]  ;;  %v2333_v58 = vld [vmem:[%s4339_s4 + $0x48] sm:$0xff] }
 0x360   : > { %v3355_v8 = vpack.c.bf16 %v1956_v5, %v1954_v4  ;;  %v1995_v4 = vld [vmem:[#allocation8 + $0x788] sm:$0xff]  ;;  %v1997_v5 = vld [vmem:[#allocation8 + $0x798] sm:$0xff] }
 0x362   : > { %3320 = vmatpush1.bf16.msra.mxu0 %v3319_v10  ;;  %v3357_v10 = vpack.c.bf16 %v1961_v7, %v1959_v34 }
 0x363   : > { %3322 = vmatprep.subr.bf16.mxu0 %v3321_v11  ;;  %v1958_v11 = vld [vmem:[#allocation8 + $0x660] sm:$0xff] }
 0x364   : > { %v3359_v26 = vpack.c.bf16 %v1960_v12, %v1958_v11  ;;  %v1994_v11 = vld [vmem:[#allocation8 + $0x780] sm:$0xff]  ;;  %v1996_v12 = vld [vmem:[#allocation8 + $0x790] sm:$0xff] }
 0x366   : > { %3324 = vmatpush1.bf16.msra.mxu0 %v3323_v17  ;;  %v1962_v17 = vld [vmem:[#allocation8 + $0x680] sm:$0xff] }
 0x367   : > { %3326 = vmatprep.subr.bf16.mxu0 %v3325_v19  ;;  %v1967_v19 = vld [vmem:[#allocation8 + $0x6a8] sm:$0xff]  ;;  %v3363_v52 = vpack.c.bf16 %v1964_v18, %v1962_v17  ;;  %v3395_v18 = vpack.c.bf16 %v1996_v12, %v1994_v11 }
 0x368   : > { %v3365_v21 = vpack.c.bf16 %v1969_v20, %v1967_v19  ;;  %v1998_v20 = vld [vmem:[#allocation8 + $0x7a0] sm:$0xff]  ;;  %v2339_v11 = vld [vmem:[%s4339_s4 + $0x78] sm:$0xff] }
 0x36a   : > { %3328 = vmatpush1.bf16.msra.mxu0 %v3327_v23  ;;  %v1968_v23 = vld [vmem:[#allocation8 + $0x6b0] sm:$0xff] }
 0x36b   : > { %3330 = vmatprep.subr.bf16.mxu0 %v3329_v24  ;;  %v1973_v24 = vld [vmem:[#allocation8 + $0x6d8] sm:$0xff]  ;;  %v3367_v25 = vpack.c.bf16 %v1968_v23, %v1966_v22  ;;  %v2003_v22 = vld [vmem:[#allocation8 + $0x7c8] sm:$0xff] }
 0x36c   : > { %v3369_v27 = vpack.c.bf16 %v1973_v24, %v1971_v40  ;;  %v2005_v23 = vld [vmem:[#allocation8 + $0x7d8] sm:$0xff] }
 0x36d   : > { %v3401_v24 = vpack.c.bf16 %v2005_v23, %v2003_v22 }
 0x36e   : > { %3332 = vmatpush1.bf16.msra.mxu0 %v3331_v31  ;;  %v1975_v31 = vld [vmem:[#allocation8 + $0x6e8] sm:$0xff] }
 0x36f   : > { %3334 = vmatprep.subr.bf16.mxu0 %v3333_v32  ;;  %v1977_v32 = vld [vmem:[#allocation8 + $0x6f8] sm:$0xff] }
 0x370   : > { %v3373_v36 = vpack.c.bf16 %v1977_v32, %v1975_v31  ;;  %v3405_v32 = vpack.c.bf16 %v2009_v30, %v2007_v28 }
 0x372   : > { %3336 = vmatpush1.bf16.msra.mxu0 %v3335_v39  ;;  %v1979_v39 = vld [vmem:[#allocation8 + $0x708] sm:$0xff] }
 0x373   : > { %3338 = vmatprep.subr.bf16.mxu0 %v3337_v6  ;;  %v1981_v6 = vld [vmem:[#allocation8 + $0x718] sm:$0xff] }
 0x374   : > { %v3377_v43 = vpack.c.bf16 %v1981_v6, %v1979_v39 }
 0x376   : > { %3340 = vmatpush1.bf16.msra.mxu0 %v3339_v29  ;;  %v1983_v29 = vld [vmem:[#allocation8 + $0x728] sm:$0xff] }
 0x377   : > { %3342 = vmatprep.subr.bf16.mxu0 %v3341_v48  ;;  %v1985_v48 = vld [vmem:[#allocation8 + $0x738] sm:$0xff] }
 0x378   : > { %v3381_v44 = vpack.c.bf16 %v1985_v48, %v1983_v29  ;;  %v2329_v29 = vld [vmem:[%s4339_s4 + $0x28] sm:$0xff] }
 0x379   : > { %v3419_v48 = vpack.c.bf16 %v2329_v29, %v2328_v46 }
 0x37a   : > { %3344 = vmatpush1.bf16.msra.mxu0 %v3343_v9  ;;  %v1989_v9 = vld [vmem:[#allocation8 + $0x758] sm:$0xff] }
 0x37b   : > { %3346 = vmatprep.subr.bf16.mxu0 %v3345_v55  ;;  %v326_v55 = vld [vmem:[#allocation10 + $0x18] sm:$0xff]  ;;  %v3385_v57 = vpack.c.bf16 %v1989_v9, %v1987_v53  ;;  %3420 = vmatpush3.bf16.msra.mxu1 %v3419_v48  ;;  %v2331_v53 = vld [vmem:[%s4339_s4 + $0x38] sm:$0xff] }
 0x37c   : > { %v1093_v54 = vrot.slane %v326_v55, %v4144_v15  ;;  %v3423_v9 = vpack.c.bf16 %v2331_v53, %v2330_v51 }
 0x37d   : > { %2235 = vmatmul.mubr.f32.vlgmr.msra.gmra.mrb[6].mxu0 %v1750_v63 }
 0x37e   : > { %3348 = vmatpush1.bf16.msra.mxu0 %v3347_v59  ;;  %v1097_v59 = vrot.slane %v326_v55, %v4147_v16  ;;  %v1133_v63 = vrot.slane %v1093_v54, %v4144_v15  ;;  %v3393_v16 = vpack.c.bf16 %v1997_v5, %v1995_v4  ;;  %v2348_v55 = vld [vmem:[%s4339_s4 + $0xc0] sm:$0xff]  ;;  %v2337_v5 = vld [vmem:[%s4339_s4 + $0x68] sm:$0xff] }
 0x37f   : > { %3350 = vmatprep.subr.bf16.mxu0 %v3349_v60  ;;  %v1991_v60 = vld [vmem:[#allocation8 + $0x768] sm:$0xff]  ;;  %v2332_v54 = vld [vmem:[%s4339_s4 + $0x40] sm:$0xff] }
 0x380   : > { %v3389_v0 = vpack.c.bf16 %v1993_v61, %v1991_v60  ;;  %v2351_v60 = vld [vmem:[%s4339_s4 + $0xd8] sm:$0xff]  ;;  %v2334_v61 = vld [vmem:[%s4339_s4 + $0x50] sm:$0xff]  ;;  %v2336_v4 = vld [vmem:[%s4339_s4 + $0x60] sm:$0xff] }
 0x382   : > { %3352 = vmatpush1.bf16.msra.mxu0 %v3351_v2  ;;  %v1992_v2 = vld [vmem:[#allocation8 + $0x770] sm:$0xff] }
 0x383   : > { %3354 = vmatprep.subr.bf16.mxu0 %v3353_v3  ;;  %v1137_v3 = vrot.slane %v1097_v59, %v4144_v15  ;;  %v3391_v7 = vpack.c.bf16 %v1992_v2, %v1990_v1  ;;  %v3427_v59 = vpack.c.bf16 %v2333_v58, %v2332_v54  ;;  %v2353_v1 = vld [vmem:[%s4339_s4 + $0xe8] sm:$0xff] }
 0x386   : > { %3356 = vmatpush1.bf16.msra.mxu0 %v3355_v8 }
 0x387   : > { %3358 = vmatprep.subr.bf16.mxu0 %v3357_v10 }
 0x38a   : > { %3360 = vmatpush1.bf16.msra.mxu0 %v3359_v26  ;;  %v2001_v26 = vld [vmem:[#allocation8 + $0x7b8] sm:$0xff] }
 0x38b   : > { %3362 = vmatprep.subr.bf16.mxu0 %v3361_v45  ;;  %v3397_v15 = vpack.c.bf16 %v2001_v26, %v1999_v14  ;;  %v2016_v14 = vsub.s32 6, %v4091_v33  ;;  %v3589_v26 = vld [vmem:[#allocation10] sm:$0xff] }
 0x38e   : > { %3364 = vmatpush1.bf16.msra.mxu0 %v3363_v52  ;;  %v2000_v52 = vld [vmem:[#allocation8 + $0x7b0] sm:$0xff] }
 0x38f   : > { %3366 = vmatprep.subr.bf16.mxu0 %v3365_v21  ;;  %v3399_v40 = vpack.c.bf16 %v2000_v52, %v1998_v20 }
 0x392   : > { %3368 = vmatpush1.bf16.msra.mxu0 %v3367_v25  ;;  %v2002_v25 = vld [vmem:[#allocation8 + $0x7c0] sm:$0xff] }
 0x393   : > { %3370 = vmatprep.subr.bf16.mxu0 %v3369_v27  ;;  %v2004_v27 = vld [vmem:[#allocation8 + $0x7d0] sm:$0xff] }
 0x394   : > { %v3403_v31 = vpack.c.bf16 %v2004_v27, %v2002_v25 }
 0x396   : > { %3372 = vmatpush1.bf16.msra.mxu0 %v3371_v35  ;;  %v2006_v35 = vld [vmem:[#allocation8 + $0x7e0] sm:$0xff] }
 0x397   : > { %3374 = vmatprep.subr.bf16.mxu0 %v3373_v36  ;;  %v2008_v36 = vld [vmem:[#allocation8 + $0x7f0] sm:$0xff] }
 0x398   : > { %v3407_v37 = vpack.c.bf16 %v2008_v36, %v2006_v35  ;;  %v2358_v35 = vsub.s32 3, %v4091_v33 }
 0x39a   : > { %3376 = vmatpush1.bf16.msra.mxu0 %v3375_v42 }
 0x39b   : > { %3378 = vmatprep.subr.bf16.mxu0 %v3377_v43 }
 0x39e   : > { %3380 = vmatpush1.bf16.msra.mxu0 %v3379_v49  ;;  %v2346_v49 = vld [vmem:[%s4339_s4 + $0xb0] sm:$0xff] }
 0x39f   : > { %3382 = vmatprep.subr.bf16.mxu0 %v3381_v44  ;;  %v2347_v44 = vld [vmem:[%s4339_s4 + $0xb8] sm:$0xff] }
 0x3a0   : > { %v3421_v50 = vpack.c.bf16 %v2347_v44, %v2346_v49 }
 0x3a2   : > { %3384 = vmatpush1.bf16.msra.mxu0 %v3383_v56  ;;  %3422 = vmatprep.subr.bf16.mxu1 %v3421_v50  ;;  %v2349_v56 = vld [vmem:[%s4339_s4 + $0xc8] sm:$0xff] }
 0x3a3   : > { %3386 = vmatprep.subr.bf16.mxu0 %v3385_v57  ;;  %3424 = vmatpush3.bf16.msra.mxu1 %v3423_v9  ;;  %v3425_v57 = vpack.c.bf16 %v2349_v56, %v2348_v55 }
 0x3a5   : > { %3426 = vmatprep.subr.bf16.mxu1 %v3425_v57 }
 0x3a6   : > { %v1701_v34 = vpop.f32.mrb[4].mxu1  ;;  %3388 = vmatpush1.bf16.msra.mxu0 %v3387_v62  ;;  %v2335_v62 = vld [vmem:[%s4339_s4 + $0x58] sm:$0xff] }
 0x3a7   : > { %v3447_v8 = vadd.f32 %v1701_v34, %v1133_v63  ;;  %v1703_v10 = vpop.f32.mrb[5].mxu1  ;;  %3390 = vmatprep.subr.bf16.mxu0 %v3389_v0  ;;  %v3429_v63 = vpack.c.bf16 %v2351_v60, %v2350_v41  ;;  %v2352_v0 = vld [vmem:[%s4339_s4 + $0xe0] sm:$0xff]  ;;  %3428 = vmatpush3.bf16.msra.mxu1 %v3427_v59  ;;  %v3431_v2 = vpack.c.bf16 %v2335_v62, %v2334_v61  ;;  %v2354_v34 = vld [vmem:[%s4339_s4 + $0xf0] sm:$0xff] }
 0x3a8   : > { %v3448_v13 = vadd.f32 %v1703_v10, %v1137_v3  ;;  %v3433_v3 = vpack.c.bf16 %v2353_v1, %v2352_v0 }
 0x3a9   : > { %v1720_v45 = vmin.f32 %v3447_v8, 0.0  ;;  %vm1712_vm12 = vcmp.gt.f32.partialorder %v3447_v8, 0.0  ;;  %3430 = vmatprep.subr.bf16.mxu1 %v3429_v63 }
 0x3aa   : > { %v1721_v17 = vmin.f32 %v3448_v13, 0.0  ;;  %3392 = vmatpush1.bf16.msra.mxu0 %v3391_v7  ;;  %vm1713_vm11 = vcmp.gt.f32.partialorder %v3448_v13, 0.0  ;;  %v2355_v7 = vld [vmem:[%s4339_s4 + $0xf8] sm:$0xff] }
 0x3ab   : > { %v1734_v19 = vmul.f32 1.442695, %v1720_v45  ;;  %3394 = vmatprep.subr.bf16.mxu0 %v3393_v16  ;;  %3432 = vmatpush3.bf16.msra.mxu1 %v3431_v2  ;;  %v3437_v10 = vpack.c.bf16 %v2355_v7, %v2354_v34  ;;  %v2338_v16 = vld [vmem:[%s4339_s4 + $0x70] sm:$0xff] }
 0x3ac   : > { %v1736_v21 = vmul.f32 1.442695, %v1721_v17  ;;  %3434 = vmatprep.subr.bf16.mxu1 %v3433_v3  ;;  %v3439_v12 = vpack.c.bf16 %v2339_v11, %v2338_v16  ;;  %v2017_v17 = vrot.slane %v3589_v26, %v2016_v14 }
 0x3ad   : > { %3579 = vpow2.f32 %v1734_v19 }
 0x3ae   : > { %3581 = vpow2.f32 %v1736_v21  ;;  %3396 = vmatpush1.bf16.msra.mxu0 %v3395_v18 }
 0x3af   : > { %3398 = vmatprep.subr.bf16.mxu0 %v3397_v15 }
 0x3b2   : > { %3400 = vmatpush1.bf16.msra.mxu0 %v3399_v40 }
 0x3b3   : > { %3402 = vmatprep.subr.bf16.mxu0 %v3401_v24 }
 0x3b6   : > { %3404 = vmatpush1.bf16.msra.mxu0 %v3403_v31 }
 0x3b7   : > { %v3580_v38 = vpop.eup %3579  ;;  %3406 = vmatprep.subr.bf16.mxu0 %v3405_v32 }
 0x3b8   : > { %v3582_v39 = vpop.eup %3581  ;;  %v2582_v6 = vadd.f32 -1.0, %v3580_v38 }
 0x3b9   : > { %v2583_v42 = vadd.f32 -1.0, %v3582_v39 }
 0x3ba   : > { %3408 = vmatpush1.bf16.msra.mxu0 %v3407_v37  ;;  %v1752_v47 = vsel %vm1712_vm12, %v3447_v8, %v2582_v6  ;;  %v3435_v8 = vpack.c.bf16 %v2337_v5, %v2336_v4  ;;  %v2359_v37 = vrot.slane %v3589_v26, %v2358_v35 }
 0x3bb   : > { %v1753_v43 = vsel %vm1713_vm11, %v3448_v13, %v2583_v42  ;;  %v2012_v13 = vsub.s32 2, %v4091_v33 }
 0x3bc   : > { %2305 = vmatprep.mubr.f32.mxu0 %v1753_v43  ;;  %3436 = vmatpush3.bf16.msra.mxu1 %v3435_v8 }
 0x3bd   : > { %2306 = vmatmul.mubr.f32.vlgmr.msra.gmra.mrb[6].mxu0 %v1752_v47  ;;  %3438 = vmatprep.subr.bf16.mxu1 %v3437_v10  ;;  %v2013_v45 = vrot.slane %v3589_v26, %v2012_v13  ;;  %v2027_v19 = vrot.slane %v2017_v17, %v2012_v13 }
 0x3bf   : > { %v2023_v18 = vrot.slane %v2013_v45, %v2012_v13 }
 0x3c0   : > { %3440 = vmatpush3.bf16.msra.mxu1 %v3439_v12 }
 0x490   : > { %v2307_v15 = vpop.f32.mrb[6].mxu0 }
 0x491   : > { %v3449_v20 = vadd.f32 %v2307_v15, %v2023_v18  ;;  %v2309_v52 = vpop.f32.mrb[7].mxu0 }
 0x492   : > { %v3450_v21 = vadd.f32 %v2309_v52, %v2027_v19 }
 0x493   : > { %v2314_v22 = vmin.f32 %v3449_v20, 0.0  ;;  %vm2312_vm14 = vcmp.gt.f32.partialorder %v3449_v20, 0.0 }
 0x494   : > { %v2315_v23 = vmin.f32 %v3450_v21, 0.0  ;;  %vm2313_vm13 = vcmp.gt.f32.partialorder %v3450_v21, 0.0 }
 0x495   : > { %v2316_v40 = vmul.f32 1.442695, %v2314_v22 }
 0x496   : > { %v2318_v24 = vmul.f32 1.442695, %v2315_v23 }
 0x497   : > { %3583 = vpow2.f32 %v2316_v40 }
 0x498   : > { %3585 = vpow2.f32 %v2318_v24 }
 0x4a1   : > { %v3584_v25 = vpop.eup %3583 }
 0x4a2   : > { %v3586_v27 = vpop.eup %3585  ;;  %v2584_v28 = vadd.f32 -1.0, %v3584_v25 }
 0x4a3   : > { %v2585_v30 = vadd.f32 -1.0, %v3586_v27 }
 0x4a4   : > { %v2322_v32 = vsel %vm2312_vm14, %v3449_v20, %v2584_v28 }
 0x4a5   : > { %v2323_v31 = vsel %vm2313_vm13, %v3450_v21, %v2585_v30 }
 0x4a6   : > { %2424 = vmatprep.mubr.f32.mxu1 %v2323_v31 }
 0x4a7   : > { %2425 = vmatmul.mubr.f32.vlgmr.msra.gmra.mrb[6].mxu1 %v2322_v32 }
 0x57a   : > { %v2622_v36 = vpop.f32.mrb[6].mxu1 }
 0x57b   : > { %v2623_v38 = vpop.f32.mrb[7].mxu1 }
 0x57c   : > { %v2624_v39 = vadd.f32 %v2623_v38, %v2622_v36 }
 0x57e   : > { %v2427_v6 = vadd.f32 %v2624_v39, %v2359_v37 }
 0x580   : > { %2431 = vst.msk [vmem:[%s322_s28] sm:$0xff] %vm2430_vm15, %v2427_v6 }
 0x581   : > { %3745 = shalt.err (!%p3742_p12)
}
 0x582   : > { %s3746_s30 = scalar_lea.hbm %s4291_s14, 128  ;;  %s3750_s16 = scalar_lea.hbm %s4341_s6, 256 }
 0x583   : > { %p3747_p13 = scmp.ne.s32.totalorder %s4291_s14, %s3746_s30  ;;  %p3751_p9 = scmp.lt.u32.totalorder %s4291_s14, %s4341_s6 }
 0x584   : > { %p3752_p4 = scmp.lt.u32.totalorder %s3750_s16, %s3746_s30  ;;  %p3754_p6 = scmp.lt.u32.totalorder %s3746_s30, %s4291_s14 }
 0x585   : > { %p3748_p3 = pnand %p3747_p13, %p4359_p0 }
 0x586   : > { %p3753_p8 = por %p3752_p4, %p3751_p9 }
 0x587   : > { %p3749_p7 = pneg %p3748_p3 }
 0x588   : > { %p3755_p2 = por %p3754_p6, %p3753_p8 }
 0x58a   : > { %p3756_p5 = pnand %p3755_p2, %p3749_p7 }
 0x58c   : > { %3759 = shalt.err (!%p3756_p5)
}
 0x58d   : > { %3483 = dma.vmem_to_hbm [thread:$0]  (%p4359_p0), %s4293_s18, 128, %s4291_s14, %s2433_s15  }
 0x58e PF: > { %s2458_s28 = sand.u32 1, %s3794_s21   ;;  %p4360_p10 = scmp.ne.s32.totalorder %s4352_s25, 0 }
 0x58f   : > { %p4361_p1 = scmp.ge.s32.totalorder %s3806_s24, 2  ;;  %s2459_s12 = scalar_lea.sflag [#allocation4], %s2458_s28 }
 0x591   : > { %p3503_p11 = pnand %p4361_p1, %p4360_p10 }
 0x593   : > { %3789 = dma.done.wait (!%p3503_p11), %s2459_s12, 128  }
 0x594   : > { %3791 = vsyncadd (!%p3503_p11), %s2459_s12, 4294967168  ;;  %p21_p12 = scmp.ge.s32.totalorder %s3992_s7, 4   ;;  %s4362_s21 = smov %s3798_s22 }
 0x595   : > { %s4363_s22 = smov %s3802_s23  ;;  %s4364_s23 = smov %s4003_s26 }
 0x596   : > { %s4365_s24 = smov %s3992_s7  ;;  %23 = sbr.rel (!%p21_p12) target bundleno = 7 (0x7), region = 105 }
 0x59d   :  { %2464 = vsyncpa [#allocation3], 1 }
 0x59e   :  { %2466 = vsyncpa [#allocation3 + $0x1], 1 }
 0x59f   :  { %2467 = vsyncpa [#allocation6], 1 }
 0x5a0   :  { %2468 = vsyncpa [#allocation9], 1 }
 0x5a1   :  { %2469 = vsyncpa [#allocation4], 1 }
 0x5a2   :  { %2471 = vsyncpa [#allocation4 + $0x1], 1 }

</bundles_post_ra>
